<compile_context>
chip_gen: v7x
topology: tpu7x:2x2x1
jax: 0.10.0
libtpu: 0.0.40
codegen_flags: <defaults>
</compile_context>

<pallas_src>
import math

import jax
import jax.numpy as jnp
from jax.experimental import pallas as pl
from jax.experimental.pallas import tpu as pltpu


IN_FEATURES = 2916   # l4 input width (flattened conv size in the reference)
N_HIDDEN = 40        # l4 / l5 true output features
N_LANES = 128        # lane-dense padded width used inside the kernel


def _round_up(x, m):
    return ((x + m - 1) // m) * m


def _tensorcores_per_device():
    """Best-effort count of TensorCores one grid is sharded over (megacore)."""
    try:
        kind = jax.devices()[0].device_kind.lower()
    except Exception:
        return 1
    # v4 / v5p (megacore) and v7x (2 TC / chip): a "parallel" grid axis with an
    # even number of steps engages both cores.  v5e / v6e are single-TC.
    for tag in ("v4", "v5p", "v7"):
        if tag in kind:
            return 2
    return 1


def _choose_tile_m(M, x_itemsize, n_tc):
    """Row-tile heuristic (generation + dtype aware)."""
    # Keep the double-buffered x block ~12 MiB so it fits every generation
    # (v7x: 64 MiB physical per TC; v5e: scoped limit raised to 40 MiB below):
    #   bf16 rows ~5.8 KB/row  -> 1024 rows ≈ 11.7 MiB double-buffered
    #   f32  rows ~11.7 KB/row ->  512 rows ≈ 11.7 MiB double-buffered
    max_tile = 1024 if x_itemsize <= 2 else 512
    m_pad = _round_up(max(M, 8), 8)
    if n_tc >= 2:
        # At least n_tc grid steps, and an even number of them, so the
        # "parallel" axis splits evenly across both TensorCores.
        n_blocks = max(n_tc, pl.cdiv(m_pad, max_tile))
        n_blocks = _round_up(n_blocks, n_tc)
        return _round_up(pl.cdiv(m_pad, n_blocks), 8)
    # Single TensorCore: one block when it fits (skips ~0.35 us/step pipeline
    # overhead on tiny, launch-bound M), else the largest VMEM-safe tile.
    return min(m_pad, max_tile)


# ----------------------------------------------------------------------------
# Fused kernel: o = relu( relu(x @ W4t_pad + b4_pad) @ W5t_pad + b5_pad )
#   x_ref  : (tile_m, 2916) bf16 (or f32; cast in-VMEM)
#   w4_ref : (2916, 128)    bf16  (pre-transposed, zero-padded 40 -> 128)
#   b4_ref : (1, 128)       f32   (zero-padded)
#   w5_ref : (128, 128)     bf16  (pre-transposed, zero-padded)
#   b5_ref : (1, 128)       f32   (zero-padded)
#   o_ref  : (tile_m, 128)  x.dtype (lane-dense, unmasked stores)
# ----------------------------------------------------------------------------
def _fused_l4_l5_kernel(x_ref, w4_ref, b4_ref, w5_ref, b5_ref, o_ref):
    a = x_ref[...]
    if a.dtype != jnp.bfloat16:           # fallback path: in-VMEM cast only
        a = a.astype(jnp.bfloat16)
    h = jnp.dot(a, w4_ref[...], preferred_element_type=jnp.float32)
    h = jnp.maximum(h + b4_ref[...], 0.0)              # lane-dense (tm, 128)
    h = jnp.dot(h.astype(jnp.bfloat16), w5_ref[...],
                preferred_element_type=jnp.float32)
    h = jnp.maximum(h + b5_ref[...], 0.0)
    o_ref[...] = h.astype(o_ref.dtype)


def fused_l4_l5(x2d, w4_t_pad, b4_r_pad, w5_t_pad, b5_r_pad, *, tile_m=None):
    """x2d: (M, 2916) bf16/f32.  Returns (M, 128) in x2d.dtype (cols >= 40 zero)."""
    M, K = x2d.shape
    Np = N_LANES
    out_dtype = x2d.dtype
    x_bytes = jnp.dtype(x2d.dtype).itemsize

    if tile_m is None:
        tile_m = _choose_tile_m(M, x_bytes, _tensorcores_per_device())
    grid_m = pl.cdiv(M, tile_m)   # ragged last block: Pallas masks it (no pad)

    cost = pl.CostEstimate(
        flops=2 * M * K * Np + 2 * M * Np * Np,
        transcendentals=0,
        bytes_accessed=(M * K * x_bytes + K * Np * 2 + Np * Np * 2
                        + 2 * Np * 4 + M * Np * jnp.dtype(out_dtype).itemsize),
    )

    return pl.pallas_call(
        _fused_l4_l5_kernel,
        out_shape=jax.ShapeDtypeStruct((M, Np), out_dtype),
        grid_spec=pltpu.PrefetchScalarGridSpec(
            num_scalar_prefetch=0,
            grid=(grid_m,),
            in_specs=[
                pl.BlockSpec((tile_m, K), lambda i: (i, 0)),
                pl.BlockSpec((K, Np), lambda i: (0, 0)),
                pl.BlockSpec((1, Np), lambda i: (0, 0)),
                pl.BlockSpec((Np, Np), lambda i: (0, 0)),
                pl.BlockSpec((1, Np), lambda i: (0, 0)),
            ],
            out_specs=pl.BlockSpec((tile_m, Np), lambda i: (i, 0)),
        ),
        compiler_params=pltpu.CompilerParams(
            dimension_semantics=("parallel",),
            # Above v5e's 16 MiB scoped default (avoids spills at tile_m=512),
            # below v7x's 64 MiB physical per-TC VMEM.
            vmem_limit_bytes=40 << 20,
        ),
        cost_estimate=cost,
    )(x2d, w4_t_pad, b4_r_pad, w5_t_pad, b5_r_pad)


# ----------------------------------------------------------------------------
# Parameters (deterministic, PyTorch-default-style uniform init)
# ----------------------------------------------------------------------------
def _uniform(key, shape, bound):
    return jax.random.uniform(key, shape, jnp.float32, -bound, bound)


def init_params(key):
    ks = jax.random.split(key, 13)
    p = {}
    b1 = 1.0 / math.sqrt(3 * 3 * 3)
    p["conv1_w"] = _uniform(ks[0], (36, 3, 3, 3), b1)      # defined for module
    p["conv1_b"] = _uniform(ks[1], (36,), b1)               # fidelity; dead in
    b2 = 1.0 / math.sqrt(36 * 3 * 3)                        # the forward pass
    p["conv2_w"] = _uniform(ks[2], (36, 36, 3, 3), b2)
    p["conv2_b"] = _uniform(ks[3], (36,), b2)
    p["conv3_w"] = _uniform(ks[4], (36, 36, 3, 3), b2)
    p["conv3_b"] = _uniform(ks[5], (36,), b2)
    b4 = 1.0 / math.sqrt(IN_FEATURES)
    p["l4_w"] = _uniform(ks[6], (N_HIDDEN, IN_FEATURES), b4)
    p["l4_b"] = _uniform(ks[7], (N_HIDDEN,), b4)
    b5 = 1.0 / math.sqrt(N_HIDDEN)
    p["l5_w"] = _uniform(ks[8], (N_HIDDEN, N_HIDDEN), b5)
    p["l5_b"] = _uniform(ks[9], (N_HIDDEN,), b5)
    p["l6_w"] = _uniform(ks[10], (1, N_HIDDEN), b5)   # in __init__, unused in forward
    p["l6_b"] = _uniform(ks[11], (1,), b5)
    return p, ks[12]


def prepare_params(params):
    """One-time weight prep: transpose, zero-pad N to lane-dense 128, cast bf16."""
    w4_t = jnp.zeros((IN_FEATURES, N_LANES), jnp.float32)
    w4_t = w4_t.at[:, :N_HIDDEN].set(jnp.transpose(params["l4_w"]))
    b4_r = jnp.zeros((1, N_LANES), jnp.float32)
    b4_r = b4_r.at[:, :N_HIDDEN].set(params["l4_b"])
    w5_t = jnp.zeros((N_LANES, N_LANES), jnp.float32)
    w5_t = w5_t.at[:N_HIDDEN, :N_HIDDEN].set(jnp.transpose(params["l5_w"]))
    b5_r = jnp.zeros((1, N_LANES), jnp.float32)
    b5_r = b5_r.at[:, :N_HIDDEN].set(params["l5_b"])
    return {
        "l4_w_t_pad": w4_t.astype(jnp.bfloat16),   # (2916, 128)
        "l4_b_r_pad": b4_r,                        # (1, 128)
        "l5_w_t_pad": w5_t.astype(jnp.bfloat16),   # (128, 128)
        "l5_b_r_pad": b5_r,                        # (1, 128)
    }


# ----------------------------------------------------------------------------
# Forward pass (exact output semantics of QMULMAMLBigModel.forward)
# ----------------------------------------------------------------------------
@jax.jit
def qmul_maml_big_forward(x, prep):
    # Reference forward computes conv1-3 + flatten, then discards the result:
    # `out = relu(self.l4(x))` uses the raw input.  The dead conv tower is
    # intentionally not executed here (identical output, >95% less work).
    lead = x.shape[:-1]
    h = x.reshape(-1, x.shape[-1])                                  # (M, 2916)
    h = fused_l4_l5(h, prep["l4_w_t_pad"], prep["l4_b_r_pad"],
                    prep["l5_w_t_pad"], prep["l5_b_r_pad"])         # (M, 128)
    # TODO(synk): if the consumer tolerates the padded (M, 128) view, skip this
    # slice (it is a separate XLA copy pass, ~6% of total HBM traffic).
    return h[:, :N_HIDDEN].reshape(*lead, N_HIDDEN)                 # (B,3,H,40)


if __name__ == "__main__":
    key = jax.random.PRNGKey(0)
    params, key = init_params(key)
    prep = prepare_params(params)

    # NCHW-style input: C=3, H=29 (smallest H the reference conv tower would
    # accept), last axis 2916 (forced by l4 acting directly on x).  The
    # producer hands bf16 activations so the kernel's dominant HBM read is
    # half-width; f32 inputs also work (cast in-VMEM inside the kernel).
    x = jax.random.normal(key, (2, 3, 29, IN_FEATURES),
                          jnp.float32).astype(jnp.bfloat16)

    y = qmul_maml_big_forward(x, prep)
    jax.block_until_ready(y)
    assert y.shape == (2, 3, 29, N_HIDDEN), y.shape
    assert y.dtype == x.dtype, y.dtype

    # Loose correctness check vs a pure-JAX f32 reference (bf16 matmul over
    # K=2916 with f32 accumulation differs from f32 by ~1e-2 relative).
    xr = x.astype(jnp.float32).reshape(-1, IN_FEATURES)
    ref = jnp.maximum(xr @ params["l4_w"].T + params["l4_b"], 0.0)
    ref = jnp.maximum(ref @ params["l5_w"].T + params["l5_b"], 0.0)
    ref = ref.reshape(2, 3, 29, N_HIDDEN)
    err = float(jnp.max(jnp.abs(y.astype(jnp.float32) - ref)))
    assert err < 0.2, f"max abs error too large: {err}"

    print("KERNEL_OK")
</pallas_src>

<mosaic_0001>
module attributes {stable_mosaic.version = 11 : i64} {
  func.func @_fused_l4_l5_kernel(%arg0: i32, %arg1: memref<176x2916xbf16, #tpu.memory_space<vmem>>, %arg2: memref<2916x128xbf16, #tpu.memory_space<vmem>>, %arg3: memref<1x128xf32, #tpu.memory_space<vmem>>, %arg4: memref<128x128xbf16, #tpu.memory_space<vmem>>, %arg5: memref<1x128xf32, #tpu.memory_space<vmem>>, %arg6: memref<176x128xbf16, #tpu.memory_space<vmem>>) attributes {dimension_semantics = [#tpu.dimension_semantics<parallel>], iteration_bounds = array<i64: 1>, scalar_prefetch = 0 : i64, scratch_operands = 0 : i64, tpu.core_type = #tpu.core_type<tc>, window_params = [{transform_indices = @transform_0, window_bounds = array<i64: 176, 2916>}, {pipeline_mode = #tpu.pipeline_mode<synchronous>, transform_indices = @transform_1, window_bounds = array<i64: 2916, 128>}, {pipeline_mode = #tpu.pipeline_mode<synchronous>, transform_indices = @transform_2, window_bounds = array<i64: 1, 128>}, {pipeline_mode = #tpu.pipeline_mode<synchronous>, transform_indices = @transform_3, window_bounds = array<i64: 128, 128>}, {pipeline_mode = #tpu.pipeline_mode<synchronous>, transform_indices = @transform_4, window_bounds = array<i64: 1, 128>}, {transform_indices = @transform_5, window_bounds = array<i64: 176, 128>}]} {
    %c0 = arith.constant 0 : index
    %c0_0 = arith.constant 0 : index
    %0 = vector.load %arg1[%c0, %c0_0] : memref<176x2916xbf16, #tpu.memory_space<vmem>>, vector<176x2916xbf16>
    %c0_1 = arith.constant 0 : index
    %c0_2 = arith.constant 0 : index
    %1 = vector.load %arg2[%c0_1, %c0_2] : memref<2916x128xbf16, #tpu.memory_space<vmem>>, vector<2916x128xbf16>
    %cst = arith.constant dense<0.000000e+00> : vector<176x128xf32>
    %2 = tpu.matmul %0, %1, %cst {dimension_numbers = #tpu.dot_dimension_numbers<[1], [0], [0], [1], [0, 0, 1, 1], [], []>} : vector<176x2916xbf16>, vector<2916x128xbf16>, vector<176x128xf32> -> vector<176x128xf32>
    %c0_3 = arith.constant 0 : index
    %c0_4 = arith.constant 0 : index
    %3 = vector.load %arg3[%c0_3, %c0_4] : memref<1x128xf32, #tpu.memory_space<vmem>>, vector<1x128xf32>
    %4 = vector.broadcast %3 : vector<1x128xf32> to vector<176x128xf32>
    %5 = arith.addf %2, %4 : vector<176x128xf32>
    %cst_5 = arith.constant 0.000000e+00 : f32
    %6 = vector.broadcast %cst_5 : f32 to vector<176x128xf32>
    %7 = arith.maximumf %5, %6 : vector<176x128xf32>
    %8 = arith.truncf %7 : vector<176x128xf32> to vector<176x128xbf16>
    %c0_6 = arith.constant 0 : index
    %c0_7 = arith.constant 0 : index
    %9 = vector.load %arg4[%c0_6, %c0_7] : memref<128x128xbf16, #tpu.memory_space<vmem>>, vector<128x128xbf16>
    %cst_8 = arith.constant dense<0.000000e+00> : vector<176x128xf32>
    %10 = tpu.matmul %8, %9, %cst_8 {dimension_numbers = #tpu.dot_dimension_numbers<[1], [0], [0], [1], [0, 0, 1, 1], [], []>} : vector<176x128xbf16>, vector<128x128xbf16>, vector<176x128xf32> -> vector<176x128xf32>
    %c0_9 = arith.constant 0 : index
    %c0_10 = arith.constant 0 : index
    %11 = vector.load %arg5[%c0_9, %c0_10] : memref<1x128xf32, #tpu.memory_space<vmem>>, vector<1x128xf32>
    %12 = vector.broadcast %11 : vector<1x128xf32> to vector<176x128xf32>
    %13 = arith.addf %10, %12 : vector<176x128xf32>
    %cst_11 = arith.constant 0.000000e+00 : f32
    %14 = vector.broadcast %cst_11 : f32 to vector<176x128xf32>
    %15 = arith.maximumf %13, %14 : vector<176x128xf32>
    %16 = arith.truncf %15 : vector<176x128xf32> to vector<176x128xbf16>
    %c0_12 = arith.constant 0 : index
    %c0_13 = arith.constant 0 : index
    %17 = vector.load %arg6[%c0_12, %c0_13] : memref<176x128xbf16, #tpu.memory_space<vmem>>, vector<176x128xbf16>
    tpu.vector_store %arg6[%c0_12, %c0_13], %16 {strides = array<i32>} : memref<176x128xbf16, #tpu.memory_space<vmem>>, vector<176x128xbf16>,
    return
  }
  func.func @transform_0(%arg0: i32) -> (i32, i32) {
    %c0_i32 = arith.constant 0 : i32
    %c0_i32_0 = arith.constant 0 : i32
    return %arg0, %c0_i32 : i32, i32
  }
  func.func @transform_1(%arg0: i32) -> (i32, i32) {
    %c0_i32 = arith.constant 0 : i32
    %c0_i32_0 = arith.constant 0 : i32
    %c0_i32_1 = arith.constant 0 : i32
    return %c0_i32, %c0_i32_0 : i32, i32
  }
  func.func @transform_2(%arg0: i32) -> (i32, i32) {
    %c0_i32 = arith.constant 0 : i32
    %c0_i32_0 = arith.constant 0 : i32
    %c0_i32_1 = arith.constant 0 : i32
    return %c0_i32, %c0_i32_0 : i32, i32
  }
  func.func @transform_3(%arg0: i32) -> (i32, i32) {
    %c0_i32 = arith.constant 0 : i32
    %c0_i32_0 = arith.constant 0 : i32
    %c0_i32_1 = arith.constant 0 : i32
    return %c0_i32, %c0_i32_0 : i32, i32
  }
  func.func @transform_4(%arg0: i32) -> (i32, i32) {
    %c0_i32 = arith.constant 0 : i32
    %c0_i32_0 = arith.constant 0 : i32
    %c0_i32_1 = arith.constant 0 : i32
    return %c0_i32, %c0_i32_0 : i32, i32
  }
  func.func @transform_5(%arg0: i32) -> (i32, i32) {
    %c0_i32 = arith.constant 0 : i32
    %c0_i32_0 = arith.constant 0 : i32
    return %arg0, %c0_i32 : i32, i32
  }
}

</mosaic_0001>

<bundles_post_ra>
// kernel: qmul_maml_big_forward.1
= control target key start
LH: loop header
LB: loop body
LE: loop exit
PB: predicated region body
PF: predicated region fallthrough
CT: control target
= control target key end

     0   :  { %vm3051_vm0 = vcmask 1041408   ;;  %vm7075_vm1 = vmmov 0   ;;  %vm3017_vm2 = vcmask 818176   ;;  %s8991_s1 = inlined_call_operand.vmem [shape: bf16[2916,128], index: 1, kind: input, shape index: {}]   ;;  %s8992_s0 = inlined_call_operand.vmem [shape: bf16[174,2916], index: 0, kind: input, shape index: {}]   ;;  %s8993_s2 = inlined_call_operand.vmem [shape: f32[1,128], index: 2, kind: input, shape index: {}]   ;;  %s8994_s3 = inlined_call_operand.vmem [shape: bf16[128,128], index: 3, kind: input, shape index: {}]   ;;  %s8995_s4 = inlined_call_operand.vmem [shape: f32[1,128], index: 4, kind: input, shape index: {}]   ;;  %s8996_s5 = inlined_call_operand.vmem [shape: bf16[174,128], index: 5, kind: output, shape index: {}]  }
   0x1   :  { %v6509_v0 = vld [vmem:[%s8991_s1 + $0x40] sm:$0xff]   ;;  %v6511_v2 = vld [vmem:[%s8991_s1 + $0x48] sm:$0xff]   ;;  %v6513_v4 = vld [vmem:[%s8991_s1 + $0x50] sm:$0xff]  }
   0x2   :  { %v6510_v1 = vld [vmem:[%s8991_s1] sm:$0xff]   ;;  %5434 = vmatprep.subr.bf16.mxu0 %v6509_v0  ;;  %6491 = vmatprep.subr.bf16.mxu1 %v6509_v0  ;;  %v6512_v3 = vld [vmem:[%s8991_s1 + $0x8] sm:$0xff]   ;;  %v6514_v5 = vld [vmem:[%s8991_s1 + $0x10] sm:$0xff]  }
   0x3   :  { %5435 = vmatpush3.bf16.msra.mxu0 %v6510_v1  ;;  %6499 = vmatpush3.bf16.msra.mxu1 %v6510_v1  ;;  %v6515_v6 = vld [vmem:[%s8991_s1 + $0x58] sm:$0xff]   ;;  %v6517_v8 = vld [vmem:[%s8991_s1 + $0x60] sm:$0xff]   ;;  %v6519_v10 = vld [vmem:[%s8991_s1 + $0x68] sm:$0xff]  }
   0x4   :  { %5436 = vmatprep.subr.bf16.mxu0 %v6511_v2  ;;  %6492 = vmatprep.subr.bf16.mxu1 %v6511_v2  ;;  %v6516_v7 = vld [vmem:[%s8991_s1 + $0x18] sm:$0xff]   ;;  %v6518_v9 = vld [vmem:[%s8991_s1 + $0x20] sm:$0xff]   ;;  %v6530_v12 = vld [vmem:[%s8992_s0 + $0x454] ss:$92 sps:$4 sm:$0xff]  }
   0x5   :  { %v6527_v11 = vld [vmem:[%s8992_s0 + $0x4] ss:$92 sps:$4 sm:$0xff]   ;;  %v6520_v13 = vld [vmem:[%s8991_s1 + $0x28] sm:$0xff]   ;;  %v6521_v14 = vld [vmem:[%s8991_s1 + $0x70] sm:$0xff]   ;;  %3135 = vmatprep.mubr.bf16.mxu1 %v6530_v12 }
   0x6   :  { %3087 = vmatprep.mubr.bf16.mxu0 %v6527_v11  ;;  %v6522_v15 = vld [vmem:[%s8991_s1 + $0x30] sm:$0xff]   ;;  %v6523_v16 = vld [vmem:[%s8991_s1 + $0x78] sm:$0xff]   ;;  %v6531_v18 = vld [vmem:[%s8991_s1 + $0xc0] sm:$0xff]  }
   0x7   :  { %5437 = vmatpush3.bf16.msra.mxu0 %v6512_v3  ;;  %6500 = vmatpush3.bf16.msra.mxu1 %v6512_v3  ;;  %v6524_v17 = vld [vmem:[%s8991_s1 + $0x38] sm:$0xff]   ;;  %v6528_v20 = vld [vmem:[%s8992_s0 + $0x450] ss:$92 sps:$4 sm:$0xff]   ;;  %v6532_v21 = vld [vmem:[%s8991_s1 + $0x80] sm:$0xff]  }
   0x8   :  { %5438 = vmatprep.subr.bf16.mxu0 %v6513_v4  ;;  %6493 = vmatprep.subr.bf16.mxu1 %v6513_v4  ;;  %v6525_v19 = vld [vmem:[%s8992_s0] ss:$92 sps:$4 sm:$0xff]   ;;  %v6533_v22 = vld [vmem:[%s8991_s1 + $0xc8] sm:$0xff]   ;;  %v6539_v29 = vld [vmem:[%s8992_s0 + $0xb8] ss:$92 sps:$4 sm:$0xff]  }
   0x9   :  { %v6535_v23 = vld [vmem:[%s8992_s0 + $0xbc] ss:$92 sps:$4 sm:$0xff]   ;;  %v6537_v24 = vld [vmem:[%s8992_s0 + $0x50c] ss:$92 sps:$4 sm:$0xff]   ;;  %v6551_v26 = vld [vmem:[%s8991_s1 + $0x140] sm:$0xff]  }
   0xa   :  { %v6534_v25 = vld [vmem:[%s8991_s1 + $0x88] sm:$0xff]   ;;  %v6552_v27 = vld [vmem:[%s8991_s1 + $0x100] sm:$0xff]   ;;  %v6541_v30 = vld [vmem:[%s8991_s1 + $0xd0] sm:$0xff]  }
   0xb   :  { %5439 = vmatpush3.bf16.msra.mxu0 %v6514_v5  ;;  %6501 = vmatpush3.bf16.msra.mxu1 %v6514_v5  ;;  %v6554_v28 = vld [vmem:[%s8991_s1 + $0x148] sm:$0xff]   ;;  %v6542_v32 = vld [vmem:[%s8991_s1 + $0x90] sm:$0xff]   ;;  %v6545_v34 = vld [vmem:[%s8992_s0 + $0x5c4] ss:$92 sps:$4 sm:$0xff]  }
   0xc   :  { %5440 = vmatprep.subr.bf16.mxu0 %v6515_v6  ;;  %6494 = vmatprep.subr.bf16.mxu1 %v6515_v6  ;;  %v6540_v31 = vld [vmem:[%s8992_s0 + $0x508] ss:$92 sps:$4 sm:$0xff]   ;;  %v6543_v33 = vld [vmem:[%s8992_s0 + $0x174] ss:$92 sps:$4 sm:$0xff]   ;;  %v6547_v35 = vld [vmem:[%s8991_s1 + $0xd8] sm:$0xff]  }
   0xd   :  { %v6556_v36 = vld [vmem:[%s8991_s1 + $0x108] sm:$0xff]   ;;  %v6563_v37 = vld [vmem:[%s8991_s1 + $0x150] sm:$0xff]   ;;  %v6550_v38 = vld [vmem:[%s8991_s1 + $0x98] sm:$0xff]  }
   0xe   :  { %v6548_v39 = vld [vmem:[%s8992_s0 + $0x170] ss:$92 sps:$4 sm:$0xff]   ;;  %v6549_v40 = vld [vmem:[%s8992_s0 + $0x5c0] ss:$92 sps:$4 sm:$0xff]   ;;  %v6561_v51 = vld [vmem:[%s8992_s0 + $0x228] ss:$92 sps:$4 sm:$0xff]  }
   0xf   :  { %5441 = vmatpush3.bf16.msra.mxu0 %v6516_v7  ;;  %6502 = vmatpush3.bf16.msra.mxu1 %v6516_v7  ;;  %v6553_v41 = vld [vmem:[%s8991_s1 + $0xe0] sm:$0xff]   ;;  %v6565_v43 = vld [vmem:[%s8991_s1 + $0x110] sm:$0xff]   ;;  %v6557_v44 = vld [vmem:[%s8992_s0 + $0x22c] ss:$92 sps:$4 sm:$0xff]  }
  0x10   :  { %5442 = vmatprep.subr.bf16.mxu0 %v6517_v8  ;;  %6495 = vmatprep.subr.bf16.mxu1 %v6517_v8  ;;  %v6555_v42 = vld [vmem:[%s8991_s1 + $0xa0] sm:$0xff]   ;;  %v6559_v45 = vld [vmem:[%s8992_s0 + $0x67c] ss:$92 sps:$4 sm:$0xff]   ;;  %v6564_v46 = vld [vmem:[%s8991_s1 + $0xe8] sm:$0xff]  }
  0x11   :  { %v6567_v47 = vld [vmem:[%s8991_s1 + $0x158] sm:$0xff]   ;;  %v6566_v48 = vld [vmem:[%s8991_s1 + $0xa8] sm:$0xff]   ;;  %v6569_v50 = vld [vmem:[%s8991_s1 + $0xf0] sm:$0xff]  }
  0x12   :  { %v6568_v49 = vld [vmem:[%s8991_s1 + $0x118] sm:$0xff]   ;;  %v6577_v53 = vld [vmem:[%s8991_s1 + $0x160] sm:$0xff]   ;;  %v6572_v55 = vld [vmem:[%s8992_s0 + $0x734] ss:$92 sps:$4 sm:$0xff]  }
  0x13   :  { %5443 = vmatpush3.bf16.msra.mxu0 %v6518_v9  ;;  %6503 = vmatpush3.bf16.msra.mxu1 %v6518_v9  ;;  %v6562_v52 = vld [vmem:[%s8992_s0 + $0x678] ss:$92 sps:$4 sm:$0xff]   ;;  %v6570_v54 = vld [vmem:[%s8992_s0 + $0x2e4] ss:$92 sps:$4 sm:$0xff]   ;;  %v6581_v59 = vld [vmem:[%s8991_s1 + $0x168] sm:$0xff]  }
  0x14   :  { %5444 = vmatprep.subr.bf16.mxu0 %v6519_v10  ;;  %6496 = vmatprep.subr.bf16.mxu1 %v6519_v10  ;;  %v6574_v56 = vld [vmem:[%s8991_s1 + $0xb0] sm:$0xff]   ;;  %v6578_v57 = vld [vmem:[%s8991_s1 + $0x120] sm:$0xff]   ;;  %v6579_v58 = vld [vmem:[%s8991_s1 + $0xf8] sm:$0xff]  }
  0x15   :  { %v6580_v60 = vld [vmem:[%s8991_s1 + $0xb8] sm:$0xff]   ;;  %v6582_v61 = vld [vmem:[%s8991_s1 + $0x128] sm:$0xff]   ;;  %v6589_v0 = vld [vmem:[%s8991_s1 + $0x170] sm:$0xff]  }
  0x16   :  { %v6575_v62 = vld [vmem:[%s8992_s0 + $0x2e0] ss:$92 sps:$4 sm:$0xff]   ;;  %v6576_v63 = vld [vmem:[%s8992_s0 + $0x730] ss:$92 sps:$4 sm:$0xff]   ;;  %v6585_v6 = vld [vmem:[%s8992_s0 + $0x8] ss:$92 sps:$4 sm:$0xff]  }
  0x17   :  { %5445 = vmatpush3.bf16.msra.mxu0 %v6520_v13  ;;  %6504 = vmatpush3.bf16.msra.mxu1 %v6520_v13  ;;  %v6590_v1 = vld [vmem:[%s8991_s1 + $0x1c0] sm:$0xff]   ;;  %v6583_v2 = vld [vmem:[%s8992_s0 + $0x39c] ss:$92 sps:$4 sm:$0xff]   ;;  %v6587_v3 = vld [vmem:[%s8992_s0 + $0xc] ss:$92 sps:$4 sm:$0xff]  }
  0x18   :  { %5446 = vmatprep.subr.bf16.mxu0 %v6521_v14  ;;  %6497 = vmatprep.subr.bf16.mxu1 %v6521_v14  ;;  %v6591_v4 = vld [vmem:[%s8991_s1 + $0x130] sm:$0xff]   ;;  %v6593_v5 = vld [vmem:[%s8991_s1 + $0x178] sm:$0xff]   ;;  %v6592_v9 = vld [vmem:[%s8991_s1 + $0x180] sm:$0xff]  }
  0x19   :  { %v6594_v7 = vld [vmem:[%s8991_s1 + $0x138] sm:$0xff]   ;;  %v6595_v10 = vld [vmem:[%s8992_s0 + $0xc4] ss:$92 sps:$4 sm:$0xff]   ;;  %v6599_v11 = vld [vmem:[%s8992_s0 + $0x14] ss:$92 sps:$4 sm:$0xff]  }
  0x1a   :  { %v6588_v8 = vld [vmem:[%s8992_s0 + $0x398] ss:$92 sps:$4 sm:$0xff]   ;;  %v6601_v12 = vld [vmem:[%s8991_s1 + $0x1c8] sm:$0xff]  }
  0x1b   :  { %5447 = vmatpush3.bf16.msra.mxu0 %v6522_v15  ;;  %6505 = vmatpush3.bf16.msra.mxu1 %v6522_v15  ;;  %v6602_v13 = vld [vmem:[%s8991_s1 + $0x188] sm:$0xff]   ;;  %v6609_v14 = vld [vmem:[%s8991_s1 + $0x1d0] sm:$0xff]  }
  0x1c   :  { %5448 = vmatprep.subr.bf16.mxu0 %v6523_v16  ;;  %6498 = vmatprep.subr.bf16.mxu1 %v6523_v16  ;;  %v6597_v15 = vld [vmem:[%s8992_s0 + $0x10] ss:$92 sps:$4 sm:$0xff]   ;;  %v6600_v16 = vld [vmem:[%s8992_s0 + $0xc0] ss:$92 sps:$4 sm:$0xff]  }
  0x1f   :  { %5449 = vmatpush3.bf16.msra.mxu0 %v6524_v17  ;;  %6506 = vmatpush3.bf16.msra.mxu1 %v6524_v17  ;;  %v6603_v17 = vld [vmem:[%s8992_s0 + $0x17c] ss:$92 sps:$4 sm:$0xff]  }
  0x20   :  { %5516 = vmatprep.subr.bf16.mxu1 %v6531_v18  ;;  %5598 = vmatprep.subr.bf16.mxu0 %v6551_v26  ;;  %v6605_v18 = vld [vmem:[%s8992_s0 + $0xcc] ss:$92 sps:$4 sm:$0xff]   ;;  %v6612_v26 = vld [vmem:[%s8992_s0 + $0x184] ss:$92 sps:$4 sm:$0xff]  }
  0x22   :  { %3088 = vmatmul.mubr.bf16.vlgmr.msra.gmra.mrb[0].mxu0 %v6525_v19  ;;  %3136 = vmatmul.mubr.bf16.vlgmr.msra.gmra.mrb[0].mxu1 %v6528_v20  ;;  %v6614_v19 = vld [vmem:[%s8991_s1 + $0x190] sm:$0xff]   ;;  %v6623_v20 = vld [vmem:[%s8991_s1 + $0x1d8] sm:$0xff]  }
  0x23   :  { %5517 = vmatpush3.bf16.msra.mxu1 %v6532_v21  ;;  %3095 = vmatprep.mubr.bf16.mxu0 %v6535_v23  ;;  %v6607_v21 = vld [vmem:[%s8992_s0 + $0x178] ss:$92 sps:$4 sm:$0xff]  }
  0x24   :  { %5518 = vmatprep.subr.bf16.mxu1 %v6533_v22  ;;  %3143 = vmatprep.mubr.bf16.mxu1 %v6537_v24  ;;  %v6608_v22 = vld [vmem:[%s8992_s0 + $0xc8] ss:$92 sps:$4 sm:$0xff]   ;;  %v6624_v23 = vld [vmem:[%s8991_s1 + $0x198] sm:$0xff]   ;;  %v6610_v24 = vld [vmem:[%s8992_s0 + $0x234] ss:$92 sps:$4 sm:$0xff]  }
  0x25   :  { %5599 = vmatpush3.bf16.msra.mxu0 %v6552_v27  ;;  %v6632_v27 = vld [vmem:[%s8991_s1 + $0x1a0] sm:$0xff]  }
  0x26   :  { %5600 = vmatprep.subr.bf16.mxu0 %v6554_v28  ;;  %v6615_v28 = vld [vmem:[%s8992_s0 + $0x230] ss:$92 sps:$4 sm:$0xff]  }
  0x27   :  { %5519 = vmatpush3.bf16.msra.mxu1 %v6534_v25  ;;  %v6631_v25 = vld [vmem:[%s8991_s1 + $0x1e0] sm:$0xff]  }
  0x28   :  { %5520 = vmatprep.subr.bf16.mxu1 %v6541_v30  ;;  %v6616_v30 = vld [vmem:[%s8992_s0 + $0x180] ss:$92 sps:$4 sm:$0xff]  }
  0x29   :  { %5601 = vmatpush3.bf16.msra.mxu0 %v6556_v36  ;;  %v6621_v36 = vld [vmem:[%s8992_s0 + $0x2e8] ss:$92 sps:$4 sm:$0xff]  }
  0x2a   :  { %3096 = vmatmul.mubr.bf16.gmra.mrb[4].mxu0 %v6539_v29  ;;  %3144 = vmatmul.mubr.bf16.gmra.mrb[4].mxu1 %v6540_v31  ;;  %v6643_v29 = vld [vmem:[%s8991_s1 + $0x1e8] sm:$0xff]  }
  0x2b   :  { %5521 = vmatpush3.bf16.msra.mxu1 %v6542_v32  ;;  %3103 = vmatprep.mubr.bf16.mxu0 %v6543_v33  ;;  %v6617_v31 = vld [vmem:[%s8992_s0 + $0x2ec] ss:$92 sps:$4 sm:$0xff]   ;;  %v6619_v33 = vld [vmem:[%s8992_s0 + $0x23c] ss:$92 sps:$4 sm:$0xff]  }
  0x2c   :  { %3151 = vmatprep.mubr.bf16.mxu1 %v6545_v34  ;;  %5522 = vmatprep.subr.bf16.mxu1 %v6547_v35  ;;  %v6646_v32 = vld [vmem:[%s8991_s1 + $0x1a8] sm:$0xff]   ;;  %v6653_v34 = vld [vmem:[%s8991_s1 + $0x240] sm:$0xff]  }
  0x2d   :  { %5602 = vmatprep.subr.bf16.mxu0 %v6563_v37  ;;  %v6654_v35 = vld [vmem:[%s8991_s1 + $0x200] sm:$0xff]   ;;  %v6622_v37 = vld [vmem:[%s8992_s0 + $0x238] ss:$92 sps:$4 sm:$0xff]  }
  0x2e   :  { %5603 = vmatpush3.bf16.msra.mxu0 %v6565_v43  ;;  %v6658_v43 = vld [vmem:[%s8991_s1 + $0x208] sm:$0xff]  }
  0x2f   :  { %5523 = vmatpush3.bf16.msra.mxu1 %v6550_v38  ;;  %5604 = vmatprep.subr.bf16.mxu0 %v6567_v47  ;;  %v6655_v38 = vld [vmem:[%s8991_s1 + $0x1f0] sm:$0xff]  }
  0x30   :  { %5524 = vmatprep.subr.bf16.mxu1 %v6553_v41  ;;  %v6656_v41 = vld [vmem:[%s8991_s1 + $0x1b0] sm:$0xff]  }
  0x31   :  { %v6630_v47 = vld [vmem:[%s8992_s0 + $0x2f0] ss:$92 sps:$4 sm:$0xff]  }
  0x32   :  { %3104 = vmatmul.mubr.bf16.gmra.mrb[8].mxu0 %v6548_v39  ;;  %3152 = vmatmul.mubr.bf16.gmra.mrb[8].mxu1 %v6549_v40  ;;  %v6625_v39 = vld [vmem:[%s8992_s0 + $0x3a4] ss:$92 sps:$4 sm:$0xff]   ;;  %v6627_v40 = vld [vmem:[%s8992_s0 + $0x2f4] ss:$92 sps:$4 sm:$0xff]  }
  0x33   :  { %5525 = vmatpush3.bf16.msra.mxu1 %v6555_v42  ;;  %3111 = vmatprep.mubr.bf16.mxu0 %v6557_v44  ;;  %v6657_v42 = vld [vmem:[%s8991_s1 + $0x248] sm:$0xff]   ;;  %v6665_v44 = vld [vmem:[%s8991_s1 + $0x250] sm:$0xff]  }
  0x34   :  { %3159 = vmatprep.mubr.bf16.mxu1 %v6559_v45  ;;  %5526 = vmatprep.subr.bf16.mxu1 %v6564_v46  ;;  %v6666_v45 = vld [vmem:[%s8991_s1 + $0x210] sm:$0xff]   ;;  %v6629_v46 = vld [vmem:[%s8992_s0 + $0x3a0] ss:$92 sps:$4 sm:$0xff]  }
  0x35   :  { %5605 = vmatpush3.bf16.msra.mxu0 %v6568_v49  ;;  %v6633_v49 = vld [vmem:[%s8992_s0 + $0x45c] ss:$92 sps:$4 sm:$0xff]  }
  0x36   :  { %5606 = vmatprep.subr.bf16.mxu0 %v6577_v53  ;;  %v6670_v53 = vld [vmem:[%s8991_s1 + $0x1b8] sm:$0xff]  }
  0x37   :  { %5527 = vmatpush3.bf16.msra.mxu1 %v6566_v48  ;;  %v6667_v48 = vld [vmem:[%s8991_s1 + $0x258] sm:$0xff]  }
  0x38   :  { %5528 = vmatprep.subr.bf16.mxu1 %v6569_v50  ;;  %v6635_v50 = vld [vmem:[%s8992_s0 + $0x3ac] ss:$92 sps:$4 sm:$0xff]  }
  0x39   :  { %5607 = vmatpush3.bf16.msra.mxu0 %v6578_v57  ;;  %v6678_v57 = vld [vmem:[%s8991_s1 + $0x220] sm:$0xff]  }
  0x3a   :  { %3112 = vmatmul.mubr.bf16.gmra.mrb[12].mxu0 %v6561_v51  ;;  %3160 = vmatmul.mubr.bf16.gmra.mrb[12].mxu1 %v6562_v52  ;;  %v6668_v51 = vld [vmem:[%s8991_s1 + $0x1f8] sm:$0xff]  }
  0x3b   :  { %3119 = vmatprep.mubr.bf16.mxu0 %v6570_v54  ;;  %3167 = vmatprep.mubr.bf16.mxu1 %v6572_v55  ;;  %v6669_v52 = vld [vmem:[%s8991_s1 + $0x218] sm:$0xff]   ;;  %v6677_v54 = vld [vmem:[%s8991_s1 + $0x260] sm:$0xff]  }
  0x3c   :  { %5529 = vmatpush3.bf16.msra.mxu1 %v6574_v56  ;;  %5608 = vmatprep.subr.bf16.mxu0 %v6581_v59  ;;  %v6637_v55 = vld [vmem:[%s8992_s0 + $0x458] ss:$92 sps:$4 sm:$0xff]   ;;  %v6638_v56 = vld [vmem:[%s8992_s0 + $0x3a8] ss:$92 sps:$4 sm:$0xff]  }
  0x3d   :  { %5530 = vmatprep.subr.bf16.mxu1 %v6579_v58  ;;  %5609 = vmatpush3.bf16.msra.mxu0 %v6582_v61  ;;  %v6679_v58 = vld [vmem:[%s8991_s1 + $0x268] sm:$0xff]   ;;  %v6639_v59 = vld [vmem:[%s8992_s0 + $0x514] ss:$92 sps:$4 sm:$0xff]  }
  0x3e   :  { %5610 = vmatprep.subr.bf16.mxu0 %v6589_v0  ;;  %v6680_v61 = vld [vmem:[%s8991_s1 + $0x228] sm:$0xff]  }
  0x3f   :  { %v6644_v0 = vld [vmem:[%s8992_s0 + $0x510] ss:$92 sps:$4 sm:$0xff]  }
  0x40   :  { %5531 = vmatpush3.bf16.msra.mxu1 %v6580_v60  ;;  %v6641_v60 = vld [vmem:[%s8992_s0 + $0x464] ss:$92 sps:$4 sm:$0xff]  }
  0x41   :  { %5680 = vmatprep.subr.bf16.mxu1 %v6590_v1  ;;  %5611 = vmatpush3.bf16.msra.mxu0 %v6591_v4  ;;  %v6645_v1 = vld [vmem:[%s8992_s0 + $0x460] ss:$92 sps:$4 sm:$0xff]  }
  0x42   :  { %3120 = vmatmul.mubr.bf16.gmra.mrb[16].mxu0 %v6575_v62  ;;  %3168 = vmatmul.mubr.bf16.gmra.mrb[16].mxu1 %v6576_v63  ;;  %v6687_v62 = vld [vmem:[%s8991_s1 + $0x270] sm:$0xff]   ;;  %v6688_v63 = vld [vmem:[%s8991_s1 + $0x2c0] sm:$0xff]   ;;  %v6691_v4 = vld [vmem:[%s8991_s1 + $0x278] sm:$0xff]  }
  0x43   :  { %3127 = vmatprep.mubr.bf16.mxu0 %v6583_v2  ;;  %3208 = vmatprep.mubr.bf16.mxu1 %v6587_v3  ;;  %v6689_v2 = vld [vmem:[%s8991_s1 + $0x230] sm:$0xff]   ;;  %v6647_v3 = vld [vmem:[%s8992_s0 + $0x5cc] ss:$92 sps:$4 sm:$0xff]  }
  0x44   :  { %5612 = vmatprep.subr.bf16.mxu0 %v6593_v5  ;;  %v6649_v5 = vld [vmem:[%s8992_s0 + $0x51c] ss:$92 sps:$4 sm:$0xff]  }
  0x45   :  { %5613 = vmatpush3.bf16.msra.mxu0 %v6594_v7  ;;  %v6651_v7 = vld [vmem:[%s8992_s0 + $0x5c8] ss:$92 sps:$4 sm:$0xff]  }
  0x46   :  { %5762 = vmatprep.subr.bf16.mxu0 %v6653_v34  ;;  %v6752_v34 = vld [vmem:[%s8991_s1 + $0x300] sm:$0xff]  }
  0x4a   :  { %3128 = vmatmul.mubr.bf16.gmra.mrb[20].mxu0 %v6588_v8  ;;  %3209 = vmatmul.mubr.bf16.vlgmr.msra.gmra.mrb[20].mxu1 %v6585_v6  ;;  %v6692_v6 = vld [vmem:[%s8991_s1 + $0x238] sm:$0xff]  }
  0x4b   :  { %5681 = vmatpush3.bf16.msra.mxu1 %v6592_v9  ;;  %3216 = vmatprep.mubr.bf16.mxu1 %v6595_v10  ;;  %v6652_v8 = vld [vmem:[%s8992_s0 + $0x518] ss:$92 sps:$4 sm:$0xff]   ;;  %v6659_v9 = vld [vmem:[%s8992_s0 + $0x684] ss:$92 sps:$4 sm:$0xff]  }
  0x4c   :  { %3329 = vmatprep.mubr.bf16.mxu0 %v6599_v11  ;;  %5682 = vmatprep.subr.bf16.mxu1 %v6601_v12  ;;  %v6661_v10 = vld [vmem:[%s8992_s0 + $0x5d4] ss:$92 sps:$4 sm:$0xff]   ;;  %v6663_v11 = vld [vmem:[%s8992_s0 + $0x680] ss:$92 sps:$4 sm:$0xff]  }
  0x4d   :  { %v6664_v12 = vld [vmem:[%s8992_s0 + $0x5d0] ss:$92 sps:$4 sm:$0xff]  }
  0x4f   :  { %5683 = vmatpush3.bf16.msra.mxu1 %v6602_v13  ;;  %v6671_v13 = vld [vmem:[%s8992_s0 + $0x73c] ss:$92 sps:$4 sm:$0xff]  }
  0x50   :  { %5684 = vmatprep.subr.bf16.mxu1 %v6609_v14  ;;  %v6673_v14 = vld [vmem:[%s8992_s0 + $0x68c] ss:$92 sps:$4 sm:$0xff]  }
  0x52   :  { %3217 = vmatmul.mubr.bf16.gmra.mrb[24].mxu1 %v6600_v16  ;;  %3330 = vmatmul.mubr.bf16.vlgmr.msra.gmra.mrb[24].mxu0 %v6597_v15  ;;  %v6675_v15 = vld [vmem:[%s8992_s0 + $0x738] ss:$92 sps:$4 sm:$0xff]   ;;  %v6676_v16 = vld [vmem:[%s8992_s0 + $0x688] ss:$92 sps:$4 sm:$0xff]  }
  0x53   :  { %3224 = vmatprep.mubr.bf16.mxu1 %v6603_v17  ;;  %3337 = vmatprep.mubr.bf16.mxu0 %v6605_v18  ;;  %v6681_v17 = vld [vmem:[%s8992_s0 + $0x744] ss:$92 sps:$4 sm:$0xff]   ;;  %v6685_v18 = vld [vmem:[%s8992_s0 + $0x1c] ss:$92 sps:$4 sm:$0xff]  }
  0x54   :  { %5685 = vmatpush3.bf16.msra.mxu1 %v6614_v19  ;;  %5763 = vmatpush3.bf16.msra.mxu0 %v6654_v35  ;;  %v6683_v19 = vld [vmem:[%s8992_s0 + $0x18] ss:$92 sps:$4 sm:$0xff]   ;;  %v6755_v35 = vld [vmem:[%s8991_s1 + $0x348] sm:$0xff]  }
  0x55   :  { %5686 = vmatprep.subr.bf16.mxu1 %v6623_v20  ;;  %5764 = vmatprep.subr.bf16.mxu0 %v6657_v42  ;;  %v6686_v20 = vld [vmem:[%s8992_s0 + $0x740] ss:$92 sps:$4 sm:$0xff]  }
  0x56   :  { %v6708_v42 = vld [vmem:[%s8992_s0 + $0x244] ss:$92 sps:$4 sm:$0xff]  }
  0x58   :  { %5687 = vmatpush3.bf16.msra.mxu1 %v6624_v23  ;;  %5765 = vmatpush3.bf16.msra.mxu0 %v6658_v43  ;;  %v6697_v23 = vld [vmem:[%s8992_s0 + $0x24] ss:$92 sps:$4 sm:$0xff]   ;;  %v6710_v43 = vld [vmem:[%s8992_s0 + $0x194] ss:$92 sps:$4 sm:$0xff]  }
  0x59   :  { %5688 = vmatprep.subr.bf16.mxu1 %v6631_v25  ;;  %5766 = vmatprep.subr.bf16.mxu0 %v6665_v44  ;;  %v6699_v25 = vld [vmem:[%s8991_s1 + $0x2c8] sm:$0xff]   ;;  %v6730_v44 = vld [vmem:[%s8991_s1 + $0x2a0] sm:$0xff]  }
  0x5a   :  { %3225 = vmatmul.mubr.bf16.gmra.mrb[28].mxu1 %v6607_v21  ;;  %3338 = vmatmul.mubr.bf16.gmra.mrb[28].mxu0 %v6608_v22  ;;  %v6690_v21 = vld [vmem:[%s8991_s1 + $0x280] sm:$0xff]   ;;  %v6693_v22 = vld [vmem:[%s8992_s0 + $0xd4] ss:$92 sps:$4 sm:$0xff]  }
  0x5b   :  { %3232 = vmatprep.mubr.bf16.mxu1 %v6610_v24  ;;  %3345 = vmatprep.mubr.bf16.mxu0 %v6612_v26  ;;  %v6751_v24 = vld [vmem:[%s8991_s1 + $0x340] sm:$0xff]   ;;  %v6700_v26 = vld [vmem:[%s8991_s1 + $0x288] sm:$0xff]  }
  0x5c   :  { %5689 = vmatpush3.bf16.msra.mxu1 %v6632_v27  ;;  %5767 = vmatpush3.bf16.msra.mxu0 %v6666_v45  ;;  %v6695_v27 = vld [vmem:[%s8992_s0 + $0x20] ss:$92 sps:$4 sm:$0xff]   ;;  %v6741_v45 = vld [vmem:[%s8991_s1 + $0x2e8] sm:$0xff]  }
  0x5d   :  { %5690 = vmatprep.subr.bf16.mxu1 %v6643_v29  ;;  %5768 = vmatprep.subr.bf16.mxu0 %v6667_v48  ;;  %v6707_v29 = vld [vmem:[%s8991_s1 + $0x2d0] sm:$0xff]   ;;  %v6744_v48 = vld [vmem:[%s8991_s1 + $0x2a8] sm:$0xff]  }
  0x60   :  { %5691 = vmatpush3.bf16.msra.mxu1 %v6646_v32  ;;  %5769 = vmatpush3.bf16.msra.mxu0 %v6669_v52  ;;  %v6712_v32 = vld [vmem:[%s8991_s1 + $0x290] sm:$0xff]   ;;  %v6767_v52 = vld [vmem:[%s8991_s1 + $0x318] sm:$0xff]  }
  0x61   :  { %5692 = vmatprep.subr.bf16.mxu1 %v6655_v38  ;;  %5770 = vmatprep.subr.bf16.mxu0 %v6677_v54  ;;  %v6705_v38 = vld [vmem:[%s8992_s0 + $0x188] ss:$92 sps:$4 sm:$0xff]  }
  0x62   :  { %3233 = vmatmul.mubr.bf16.gmra.mrb[32].mxu1 %v6615_v28  ;;  %3346 = vmatmul.mubr.bf16.gmra.mrb[32].mxu0 %v6616_v30  ;;  %v6698_v28 = vld [vmem:[%s8992_s0 + $0xd0] ss:$92 sps:$4 sm:$0xff]   ;;  %v6775_v54 = vld [vmem:[%s8991_s1 + $0x360] sm:$0xff]  }
  0x63   :  { %3240 = vmatprep.mubr.bf16.mxu1 %v6617_v31  ;;  %3353 = vmatprep.mubr.bf16.mxu0 %v6619_v33  ;;  %v6701_v30 = vld [vmem:[%s8992_s0 + $0x18c] ss:$92 sps:$4 sm:$0xff]   ;;  %v6703_v31 = vld [vmem:[%s8992_s0 + $0xdc] ss:$92 sps:$4 sm:$0xff]  }
  0x64   :  { %5693 = vmatpush3.bf16.msra.mxu1 %v6656_v41  ;;  %5771 = vmatpush3.bf16.msra.mxu0 %v6678_v57  ;;  %v6721_v33 = vld [vmem:[%s8991_s1 + $0x2d8] sm:$0xff]   ;;  %v6763_v41 = vld [vmem:[%s8991_s1 + $0x350] sm:$0xff]  }
  0x65   :  { %5694 = vmatprep.subr.bf16.mxu1 %v6668_v51  ;;  %5772 = vmatprep.subr.bf16.mxu0 %v6679_v58  ;;  %v6714_v51 = vld [vmem:[%s8992_s0 + $0x190] ss:$92 sps:$4 sm:$0xff]   ;;  %v6766_v57 = vld [vmem:[%s8991_s1 + $0x2f8] sm:$0xff]   ;;  %v6776_v58 = vld [vmem:[%s8991_s1 + $0x320] sm:$0xff]  }
  0x68   :  { %5695 = vmatpush3.bf16.msra.mxu1 %v6670_v53  ;;  %5773 = vmatpush3.bf16.msra.mxu0 %v6680_v61  ;;  %v6715_v53 = vld [vmem:[%s8992_s0 + $0x2fc] ss:$92 sps:$4 sm:$0xff]   ;;  %v6778_v61 = vld [vmem:[%s8991_s1 + $0x328] sm:$0xff]  }
  0x69   :  { %5774 = vmatprep.subr.bf16.mxu0 %v6687_v62  ;;  %5844 = vmatprep.subr.bf16.mxu1 %v6688_v63  ;;  %v6719_v62 = vld [vmem:[%s8992_s0 + $0x2f8] ss:$92 sps:$4 sm:$0xff]  }
  0x6a   :  { %3241 = vmatmul.mubr.bf16.gmra.mrb[36].mxu1 %v6621_v36  ;;  %3354 = vmatmul.mubr.bf16.gmra.mrb[36].mxu0 %v6622_v37  ;;  %v6722_v36 = vld [vmem:[%s8991_s1 + $0x298] sm:$0xff]   ;;  %v6729_v37 = vld [vmem:[%s8991_s1 + $0x2e0] sm:$0xff]   ;;  %v6785_v63 = vld [vmem:[%s8991_s1 + $0x370] sm:$0xff]  }
  0x6b   :  { %3248 = vmatprep.mubr.bf16.mxu1 %v6625_v39  ;;  %3361 = vmatprep.mubr.bf16.mxu0 %v6627_v40  ;;  %v6706_v39 = vld [vmem:[%s8992_s0 + $0xd8] ss:$92 sps:$4 sm:$0xff]   ;;  %v6756_v40 = vld [vmem:[%s8991_s1 + $0x308] sm:$0xff]  }
  0x6c   :  { %5775 = vmatpush3.bf16.msra.mxu0 %v6689_v2  ;;  %v6723_v2 = vld [vmem:[%s8992_s0 + $0x3b4] ss:$92 sps:$4 sm:$0xff]  }
  0x6d   :  { %5776 = vmatprep.subr.bf16.mxu0 %v6691_v4  ;;  %v6787_v4 = vld [vmem:[%s8991_s1 + $0x330] sm:$0xff]  }
  0x70   :  { %5777 = vmatpush3.bf16.msra.mxu0 %v6692_v6  ;;  %v6727_v6 = vld [vmem:[%s8992_s0 + $0x3b0] ss:$92 sps:$4 sm:$0xff]  }
  0x71   :  { %5926 = vmatprep.subr.bf16.mxu0 %v6751_v24  ;;  %v6761_v24 = vld [vmem:[%s8992_s0 + $0x690] ss:$92 sps:$4 sm:$0xff]  }
  0x72   :  { %3249 = vmatmul.mubr.bf16.gmra.mrb[40].mxu1 %v6629_v46  ;;  %3362 = vmatmul.mubr.bf16.gmra.mrb[40].mxu0 %v6630_v47  ;;  %v6764_v46 = vld [vmem:[%s8991_s1 + $0x310] sm:$0xff]   ;;  %v6765_v47 = vld [vmem:[%s8991_s1 + $0x358] sm:$0xff]  }
  0x73   :  { %3256 = vmatprep.mubr.bf16.mxu1 %v6633_v49  ;;  %3369 = vmatprep.mubr.bf16.mxu0 %v6635_v50  ;;  %v6753_v49 = vld [vmem:[%s8991_s1 + $0x2f0] sm:$0xff]   ;;  %v6713_v50 = vld [vmem:[%s8992_s0 + $0x240] ss:$92 sps:$4 sm:$0xff]  }
  0x7a   :  { %3257 = vmatmul.mubr.bf16.gmra.mrb[44].mxu1 %v6637_v55  ;;  %3370 = vmatmul.mubr.bf16.gmra.mrb[44].mxu0 %v6638_v56  ;;  %v6717_v55 = vld [vmem:[%s8992_s0 + $0x24c] ss:$92 sps:$4 sm:$0xff]   ;;  %v6754_v56 = vld [vmem:[%s8991_s1 + $0x2b0] sm:$0xff]  }
  0x7b   :  { %3264 = vmatprep.mubr.bf16.mxu1 %v6639_v59  ;;  %3377 = vmatprep.mubr.bf16.mxu0 %v6641_v60  ;;  %v6777_v59 = vld [vmem:[%s8991_s1 + $0x368] sm:$0xff]   ;;  %v6768_v60 = vld [vmem:[%s8991_s1 + $0x2b8] sm:$0xff]  }
  0x82   :  { %3265 = vmatmul.mubr.bf16.gmra.mrb[48].mxu1 %v6644_v0  ;;  %3378 = vmatmul.mubr.bf16.gmra.mrb[48].mxu0 %v6645_v1  ;;  %v6786_v0 = vld [vmem:[%s8991_s1 + $0x3c0] sm:$0xff]  }
  0x83   :  { %3272 = vmatprep.mubr.bf16.mxu1 %v6647_v3  ;;  %3385 = vmatprep.mubr.bf16.mxu0 %v6649_v5  ;;  %v6720_v1 = vld [vmem:[%s8992_s0 + $0x248] ss:$92 sps:$4 sm:$0xff]   ;;  %v6789_v5 = vld [vmem:[%s8991_s1 + $0x378] sm:$0xff]  }
  0x84   :  { %v6725_v3 = vld [vmem:[%s8992_s0 + $0x304] ss:$92 sps:$4 sm:$0xff]  }
  0x8a   :  { %3273 = vmatmul.mubr.bf16.gmra.mrb[52].mxu1 %v6651_v7  ;;  %3386 = vmatmul.mubr.bf16.gmra.mrb[52].mxu0 %v6652_v8  ;;  %v6790_v7 = vld [vmem:[%s8991_s1 + $0x338] sm:$0xff]  }
  0x8b   :  { %3280 = vmatprep.mubr.bf16.mxu1 %v6659_v9  ;;  %3393 = vmatprep.mubr.bf16.mxu0 %v6661_v10  ;;  %v6728_v8 = vld [vmem:[%s8992_s0 + $0x300] ss:$92 sps:$4 sm:$0xff]   ;;  %v6731_v9 = vld [vmem:[%s8992_s0 + $0x46c] ss:$92 sps:$4 sm:$0xff]  }
  0x8c   :  { %v6733_v10 = vld [vmem:[%s8992_s0 + $0x3bc] ss:$92 sps:$4 sm:$0xff]  }
  0x92   :  { %3281 = vmatmul.mubr.bf16.gmra.mrb[56].mxu1 %v6663_v11  ;;  %3394 = vmatmul.mubr.bf16.gmra.mrb[56].mxu0 %v6664_v12  ;;  %v6735_v11 = vld [vmem:[%s8992_s0 + $0x468] ss:$92 sps:$4 sm:$0xff]   ;;  %v6736_v12 = vld [vmem:[%s8992_s0 + $0x3b8] ss:$92 sps:$4 sm:$0xff]  }
  0x93   :  { %3288 = vmatprep.mubr.bf16.mxu1 %v6671_v13  ;;  %3401 = vmatprep.mubr.bf16.mxu0 %v6673_v14  ;;  %v6737_v13 = vld [vmem:[%s8992_s0 + $0x524] ss:$92 sps:$4 sm:$0xff]   ;;  %v6739_v14 = vld [vmem:[%s8992_s0 + $0x474] ss:$92 sps:$4 sm:$0xff]  }
  0x9a   :  { %3289 = vmatmul.mubr.bf16.gmra.mrb[60].mxu1 %v6675_v15  ;;  %3402 = vmatmul.mubr.bf16.gmra.mrb[60].mxu0 %v6676_v16  ;;  %v6742_v15 = vld [vmem:[%s8992_s0 + $0x520] ss:$92 sps:$4 sm:$0xff]   ;;  %v6743_v16 = vld [vmem:[%s8992_s0 + $0x470] ss:$92 sps:$4 sm:$0xff]  }
  0x9b   :  { %3409 = vmatprep.mubr.bf16.mxu0 %v6681_v17  ;;  %3450 = vmatprep.mubr.bf16.mxu1 %v6685_v18  ;;  %v6745_v17 = vld [vmem:[%s8992_s0 + $0x5dc] ss:$92 sps:$4 sm:$0xff]   ;;  %v6747_v18 = vld [vmem:[%s8992_s0 + $0x52c] ss:$92 sps:$4 sm:$0xff]  }
  0xa2   :  { %3410 = vmatmul.mubr.bf16.gmra.mrb[64].mxu0 %v6686_v20  ;;  %3451 = vmatmul.mubr.bf16.vlgmr.msra.gmra.mrb[64].mxu1 %v6683_v19  ;;  %v6749_v19 = vld [vmem:[%s8992_s0 + $0x5d8] ss:$92 sps:$4 sm:$0xff]   ;;  %v6750_v20 = vld [vmem:[%s8992_s0 + $0x528] ss:$92 sps:$4 sm:$0xff]  }
  0xa3   :  { %5845 = vmatpush3.bf16.msra.mxu1 %v6690_v21  ;;  %3458 = vmatprep.mubr.bf16.mxu1 %v6693_v22  ;;  %v6849_v21 = vld [vmem:[%s8991_s1 + $0x440] sm:$0xff]   ;;  %v6757_v22 = vld [vmem:[%s8992_s0 + $0x694] ss:$92 sps:$4 sm:$0xff]  }
  0xa4   :  { %3571 = vmatprep.mubr.bf16.mxu0 %v6697_v23  ;;  %5846 = vmatprep.subr.bf16.mxu1 %v6699_v25  ;;  %v6759_v23 = vld [vmem:[%s8992_s0 + $0x5e4] ss:$92 sps:$4 sm:$0xff]  }
  0xa5   :  { %v6762_v25 = vld [vmem:[%s8992_s0 + $0x5e0] ss:$92 sps:$4 sm:$0xff]  }
  0xa7   :  { %5847 = vmatpush3.bf16.msra.mxu1 %v6700_v26  ;;  %v6769_v26 = vld [vmem:[%s8992_s0 + $0x74c] ss:$92 sps:$4 sm:$0xff]  }
  0xa8   :  { %5848 = vmatprep.subr.bf16.mxu1 %v6707_v29  ;;  %v6774_v29 = vld [vmem:[%s8992_s0 + $0x698] ss:$92 sps:$4 sm:$0xff]  }
  0xaa   :  { %3459 = vmatmul.mubr.bf16.gmra.mrb[68].mxu1 %v6698_v28  ;;  %3572 = vmatmul.mubr.bf16.vlgmr.msra.gmra.mrb[68].mxu0 %v6695_v27  ;;  %v6771_v27 = vld [vmem:[%s8992_s0 + $0x69c] ss:$92 sps:$4 sm:$0xff]   ;;  %v6773_v28 = vld [vmem:[%s8992_s0 + $0x748] ss:$92 sps:$4 sm:$0xff]  }
  0xab   :  { %3466 = vmatprep.mubr.bf16.mxu1 %v6701_v30  ;;  %3579 = vmatprep.mubr.bf16.mxu0 %v6703_v31  ;;  %v6779_v30 = vld [vmem:[%s8992_s0 + $0x754] ss:$92 sps:$4 sm:$0xff]   ;;  %v6783_v31 = vld [vmem:[%s8992_s0 + $0x2c] ss:$92 sps:$4 sm:$0xff]  }
  0xac   :  { %5849 = vmatpush3.bf16.msra.mxu1 %v6712_v32  ;;  %5927 = vmatpush3.bf16.msra.mxu0 %v6752_v34  ;;  %v6781_v32 = vld [vmem:[%s8992_s0 + $0x28] ss:$92 sps:$4 sm:$0xff]  }
  0xad   :  { %5850 = vmatprep.subr.bf16.mxu1 %v6721_v33  ;;  %5928 = vmatprep.subr.bf16.mxu0 %v6755_v35  ;;  %v6784_v33 = vld [vmem:[%s8992_s0 + $0x750] ss:$92 sps:$4 sm:$0xff]   ;;  %v6791_v35 = vld [vmem:[%s8992_s0 + $0xe4] ss:$92 sps:$4 sm:$0xff]  }
  0xb0   :  { %5851 = vmatpush3.bf16.msra.mxu1 %v6722_v36  ;;  %5929 = vmatpush3.bf16.msra.mxu0 %v6756_v40 }
  0xb1   :  { %5852 = vmatprep.subr.bf16.mxu1 %v6729_v37  ;;  %5930 = vmatprep.subr.bf16.mxu0 %v6763_v41 }
  0xb2   :  { %3467 = vmatmul.mubr.bf16.gmra.mrb[72].mxu1 %v6705_v38  ;;  %3580 = vmatmul.mubr.bf16.gmra.mrb[72].mxu0 %v6706_v39  ;;  %v6795_v38 = vld [vmem:[%s8992_s0 + $0x34] ss:$92 sps:$4 sm:$0xff]  }
  0xb3   :  { %3474 = vmatprep.mubr.bf16.mxu1 %v6708_v42  ;;  %3587 = vmatprep.mubr.bf16.mxu0 %v6710_v43  ;;  %v6788_v42 = vld [vmem:[%s8991_s1 + $0x380] sm:$0xff]   ;;  %v6797_v43 = vld [vmem:[%s8991_s1 + $0x3c8] sm:$0xff]  }
  0xb4   :  { %5853 = vmatpush3.bf16.msra.mxu1 %v6730_v44  ;;  %5931 = vmatpush3.bf16.msra.mxu0 %v6764_v46 }
  0xb5   :  { %5854 = vmatprep.subr.bf16.mxu1 %v6741_v45  ;;  %5932 = vmatprep.subr.bf16.mxu0 %v6765_v47 }
  0xb8   :  { %5855 = vmatpush3.bf16.msra.mxu1 %v6744_v48  ;;  %5933 = vmatpush3.bf16.msra.mxu0 %v6767_v52  ;;  %v6796_v52 = vld [vmem:[%s8992_s0 + $0xe0] ss:$92 sps:$4 sm:$0xff]  }
  0xb9   :  { %5856 = vmatprep.subr.bf16.mxu1 %v6753_v49  ;;  %5934 = vmatprep.subr.bf16.mxu0 %v6775_v54 }
  0xba   :  { %3475 = vmatmul.mubr.bf16.gmra.mrb[76].mxu1 %v6713_v50  ;;  %3588 = vmatmul.mubr.bf16.gmra.mrb[76].mxu0 %v6714_v51  ;;  %v6798_v50 = vld [vmem:[%s8991_s1 + $0x388] sm:$0xff]  }
  0xbb   :  { %3482 = vmatprep.mubr.bf16.mxu1 %v6715_v53  ;;  %3595 = vmatprep.mubr.bf16.mxu0 %v6717_v55  ;;  %v6793_v51 = vld [vmem:[%s8992_s0 + $0x30] ss:$92 sps:$4 sm:$0xff]   ;;  %v6799_v55 = vld [vmem:[%s8992_s0 + $0x19c] ss:$92 sps:$4 sm:$0xff]  }
  0xbc   :  { %5857 = vmatpush3.bf16.msra.mxu1 %v6754_v56  ;;  %5935 = vmatpush3.bf16.msra.mxu0 %v6776_v58  ;;  %v6805_v53 = vld [vmem:[%s8991_s1 + $0x3d0] sm:$0xff]   ;;  %v6801_v56 = vld [vmem:[%s8992_s0 + $0xec] ss:$92 sps:$4 sm:$0xff]  }
  0xbd   :  { %5858 = vmatprep.subr.bf16.mxu1 %v6766_v57  ;;  %5936 = vmatprep.subr.bf16.mxu0 %v6777_v59  ;;  %v6810_v59 = vld [vmem:[%s8991_s1 + $0x390] sm:$0xff]  }
  0xc0   :  { %5859 = vmatpush3.bf16.msra.mxu1 %v6768_v60  ;;  %5937 = vmatpush3.bf16.msra.mxu0 %v6778_v61 }
  0xc1   :  { %5938 = vmatprep.subr.bf16.mxu0 %v6785_v63  ;;  %6008 = vmatprep.subr.bf16.mxu1 %v6786_v0 }
  0xc2   :  { %3483 = vmatmul.mubr.bf16.gmra.mrb[80].mxu1 %v6719_v62  ;;  %3596 = vmatmul.mubr.bf16.gmra.mrb[80].mxu0 %v6720_v1  ;;  %v6819_v1 = vld [vmem:[%s8991_s1 + $0x3d8] sm:$0xff]  }
  0xc3   :  { %3490 = vmatprep.mubr.bf16.mxu1 %v6723_v2  ;;  %3603 = vmatprep.mubr.bf16.mxu0 %v6725_v3  ;;  %v6850_v2 = vld [vmem:[%s8991_s1 + $0x400] sm:$0xff]  }
  0xc4   :  { %5939 = vmatpush3.bf16.msra.mxu0 %v6787_v4 }
  0xc5   :  { %5940 = vmatprep.subr.bf16.mxu0 %v6789_v5 }
  0xc8   :  { %5941 = vmatpush3.bf16.msra.mxu0 %v6790_v7  ;;  %v6853_v7 = vld [vmem:[%s8991_s1 + $0x448] sm:$0xff]  }
  0xc9   :  { %6090 = vmatprep.subr.bf16.mxu0 %v6849_v21  ;;  %v7866_v21 = vld [vmem:[%s8993_s2] ss:$0 sm:$0xff] }
  0xca   :  { %3491 = vmatmul.mubr.bf16.gmra.mrb[84].mxu1 %v6727_v6  ;;  %3604 = vmatmul.mubr.bf16.gmra.mrb[84].mxu0 %v6728_v8  ;;  %v6820_v8 = vld [vmem:[%s8991_s1 + $0x398] sm:$0xff]  }
  0xcb   :  { %3498 = vmatprep.mubr.bf16.mxu1 %v6731_v9  ;;  %3611 = vmatprep.mubr.bf16.mxu0 %v6733_v10  ;;  %v6827_v9 = vld [vmem:[%s8991_s1 + $0x3e0] sm:$0xff]   ;;  %v6803_v10 = vld [vmem:[%s8992_s0 + $0x198] ss:$92 sps:$4 sm:$0xff]  }
  0xd2   :  { %3499 = vmatmul.mubr.bf16.gmra.mrb[88].mxu1 %v6735_v11  ;;  %3612 = vmatmul.mubr.bf16.gmra.mrb[88].mxu0 %v6736_v12  ;;  %v6804_v11 = vld [vmem:[%s8992_s0 + $0xe8] ss:$92 sps:$4 sm:$0xff]  }
  0xd3   :  { %3506 = vmatprep.mubr.bf16.mxu1 %v6737_v13  ;;  %3619 = vmatprep.mubr.bf16.mxu0 %v6739_v14  ;;  %v6854_v12 = vld [vmem:[%s8991_s1 + $0x408] sm:$0xff]   ;;  %v6806_v14 = vld [vmem:[%s8992_s0 + $0x254] ss:$92 sps:$4 sm:$0xff]  }
  0xda   :  { %3507 = vmatmul.mubr.bf16.gmra.mrb[92].mxu1 %v6742_v15  ;;  %3620 = vmatmul.mubr.bf16.gmra.mrb[92].mxu0 %v6743_v16  ;;  %v6861_v16 = vld [vmem:[%s8991_s1 + $0x450] sm:$0xff]  }
  0xdb   :  { %3514 = vmatprep.mubr.bf16.mxu1 %v6745_v17  ;;  %3627 = vmatprep.mubr.bf16.mxu0 %v6747_v18 }
  0xe2   :  { %3515 = vmatmul.mubr.bf16.gmra.mrb[96].mxu1 %v6749_v19  ;;  %3628 = vmatmul.mubr.bf16.gmra.mrb[96].mxu0 %v6750_v20 }
  0xe3   :  { %3522 = vmatprep.mubr.bf16.mxu1 %v6757_v22  ;;  %3635 = vmatprep.mubr.bf16.mxu0 %v6759_v23  ;;  %v6808_v22 = vld [vmem:[%s8992_s0 + $0x1a4] ss:$92 sps:$4 sm:$0xff]  }
  0xea   :  { %3523 = vmatmul.mubr.bf16.gmra.mrb[100].mxu1 %v6761_v24  ;;  %3636 = vmatmul.mubr.bf16.gmra.mrb[100].mxu0 %v6762_v25  ;;  %v6828_v25 = vld [vmem:[%s8991_s1 + $0x3a0] sm:$0xff]  }
  0xeb   :  { %3530 = vmatprep.mubr.bf16.mxu1 %v6769_v26  ;;  %3643 = vmatprep.mubr.bf16.mxu0 %v6771_v27 }
  0xf2   :  { %3531 = vmatmul.mubr.bf16.gmra.mrb[104].mxu1 %v6773_v28  ;;  %3644 = vmatmul.mubr.bf16.gmra.mrb[104].mxu0 %v6774_v29  ;;  %v6862_v28 = vld [vmem:[%s8991_s1 + $0x410] sm:$0xff]  }
  0xf3   :  { %3651 = vmatprep.mubr.bf16.mxu0 %v6779_v30  ;;  %3692 = vmatprep.mubr.bf16.mxu1 %v6783_v31  ;;  %v6839_v31 = vld [vmem:[%s8991_s1 + $0x3e8] sm:$0xff]  }
  0xf5   :  { %v5486_v34 = vpop.f32.mrb[0].mxu1  ;;  %v5450_v36 = vpop.f32.mrb[0].mxu0 }
  0xf6   :  { %v5487_v37 = vpop.f32.mrb[1].mxu1  ;;  %v5451_v39 = vpop.f32.mrb[1].mxu0 }
  0xf7   :  { %v7790_v40 = vadd.f32 %v5487_v37, %v5486_v34  ;;  %v5489_v41 = vpop.f32.mrb[2].mxu1  ;;  %v7798_v44 = vadd.f32 %v5451_v39, %v5450_v36  ;;  %v5453_v45 = vpop.f32.mrb[2].mxu0  ;;  %v6811_v37 = vld [vmem:[%s8992_s0 + $0x250] ss:$92 sps:$4 sm:$0xff]   ;;  %v6865_v39 = vld [vmem:[%s8991_s1 + $0x418] sm:$0xff]  }
  0xf8   :  { %v5490_v46 = vpop.f32.mrb[3].mxu1  ;;  %v5454_v47 = vpop.f32.mrb[3].mxu0 }
  0xf9   :  { %v7800_v48 = vadd.f32 %v5490_v46, %v5489_v41  ;;  %v7802_v49 = vadd.f32 %v5454_v47, %v5453_v45  ;;  %v6873_v45 = vld [vmem:[%s8991_s1 + $0x460] sm:$0xff]   ;;  %v6815_v47 = vld [vmem:[%s8992_s0 + $0x25c] ss:$92 sps:$4 sm:$0xff]  }
  0xfa   :  { %3652 = vmatmul.mubr.bf16.gmra.mrb[108].mxu0 %v6784_v33  ;;  %3693 = vmatmul.mubr.bf16.vlgmr.msra.gmra.mrb[108].mxu1 %v6781_v32  ;;  %v6863_v32 = vld [vmem:[%s8991_s1 + $0x458] sm:$0xff]   ;;  %v6842_v33 = vld [vmem:[%s8991_s1 + $0x3a8] sm:$0xff]  }
  0xfb   :  { %6009 = vmatpush3.bf16.msra.mxu1 %v6788_v42  ;;  %3700 = vmatprep.mubr.bf16.mxu1 %v6791_v35  ;;  %v6851_v35 = vld [vmem:[%s8991_s1 + $0x3f0] sm:$0xff]  }
  0xfc   :  { %3813 = vmatprep.mubr.bf16.mxu0 %v6795_v38  ;;  %6010 = vmatprep.subr.bf16.mxu1 %v6797_v43  ;;  %v6812_v38 = vld [vmem:[%s8992_s0 + $0x1a0] ss:$92 sps:$4 sm:$0xff]   ;;  %v6813_v43 = vld [vmem:[%s8992_s0 + $0x30c] ss:$92 sps:$4 sm:$0xff]  }
  0xfd   :  { %v5492_v54 = vpop.f32.mrb[4].mxu1  ;;  %v5456_v57 = vpop.f32.mrb[4].mxu0 }
  0xfe   :  { %v5493_v58 = vpop.f32.mrb[5].mxu1  ;;  %v5457_v60 = vpop.f32.mrb[5].mxu0 }
  0xff   :  { %v7825_v61 = vadd.f32 %v5493_v58, %v5492_v54  ;;  %v5495_v62 = vpop.f32.mrb[6].mxu1  ;;  %6011 = vmatpush3.bf16.msra.mxu1 %v6798_v50  ;;  %v7827_v63 = vadd.f32 %v5457_v60, %v5456_v57  ;;  %v5459_v0 = vpop.f32.mrb[6].mxu0  ;;  %v6874_v57 = vld [vmem:[%s8991_s1 + $0x420] sm:$0xff]  }
 0x100   :  { %v5496_v3 = vpop.f32.mrb[7].mxu1  ;;  %6012 = vmatprep.subr.bf16.mxu1 %v6805_v53  ;;  %v5460_v4 = vpop.f32.mrb[7].mxu0 }
 0x101   :  { %v7835_v5 = vadd.f32 %v5496_v3, %v5495_v62  ;;  %v7837_v6 = vadd.f32 %v5460_v4, %v5459_v0  ;;  %v6875_v0 = vld [vmem:[%s8991_s1 + $0x468] sm:$0xff]  }
 0x102   :  { %3701 = vmatmul.mubr.bf16.gmra.mrb[112].mxu1 %v6796_v52  ;;  %3814 = vmatmul.mubr.bf16.vlgmr.msra.gmra.mrb[112].mxu0 %v6793_v51  ;;  %v6817_v4 = vld [vmem:[%s8992_s0 + $0x308] ss:$92 sps:$4 sm:$0xff]  }
 0x103   :  { %3708 = vmatprep.mubr.bf16.mxu1 %v6799_v55  ;;  %3821 = vmatprep.mubr.bf16.mxu0 %v6801_v56  ;;  %v6852_v55 = vld [vmem:[%s8991_s1 + $0x3b0] sm:$0xff]   ;;  %v6864_v56 = vld [vmem:[%s8991_s1 + $0x3f8] sm:$0xff]  }
 0x104   :  { %6013 = vmatpush3.bf16.msra.mxu1 %v6810_v59  ;;  %6091 = vmatpush3.bf16.msra.mxu0 %v6850_v2  ;;  %v6866_v2 = vld [vmem:[%s8991_s1 + $0x3b8] sm:$0xff]  }
 0x105   :  { %v5498_v13 = vpop.f32.mrb[8].mxu1  ;;  %v5462_v15 = vpop.f32.mrb[8].mxu0  ;;  %6014 = vmatprep.subr.bf16.mxu1 %v6819_v1  ;;  %6092 = vmatprep.subr.bf16.mxu0 %v6853_v7  ;;  %v6818_v7 = vld [vmem:[%s8992_s0 + $0x258] ss:$92 sps:$4 sm:$0xff]  }
 0x106   :  { %v5499_v17 = vpop.f32.mrb[9].mxu1  ;;  %v5463_v18 = vpop.f32.mrb[9].mxu0 }
 0x107   :  { %v5500_v19 = vadd.f32 %v5499_v17, %v5498_v13  ;;  %v5501_v20 = vpop.f32.mrb[10].mxu1  ;;  %v7871_v23 = vadd.f32 %v5463_v18, %v5462_v15  ;;  %v5465_v24 = vpop.f32.mrb[10].mxu0  ;;  %v6884_v13 = vld [vmem:[%s8991_s1 + $0x4c0] sm:$0xff]  }
 0x108   :  { %v5502_v26 = vpop.f32.mrb[11].mxu1  ;;  %v5466_v27 = vpop.f32.mrb[11].mxu0  ;;  %6015 = vmatpush3.bf16.msra.mxu1 %v6820_v8  ;;  %6093 = vmatpush3.bf16.msra.mxu0 %v6854_v12  ;;  %v6876_v8 = vld [vmem:[%s8991_s1 + $0x428] sm:$0xff]   ;;  %v6821_v12 = vld [vmem:[%s8992_s0 + $0x3c4] ss:$92 sps:$4 sm:$0xff]  }
 0x109   :  { %v5503_v29 = vadd.f32 %v5502_v26, %v5501_v20  ;;  %v7879_v30 = vadd.f32 %v5466_v27, %v5465_v24  ;;  %6016 = vmatprep.subr.bf16.mxu1 %v6827_v9  ;;  %6094 = vmatprep.subr.bf16.mxu0 %v6861_v16  ;;  %v7891_v34 = vadd.f32 %v5500_v19, %v7866_v21  ;;  %v6883_v9 = vld [vmem:[%s8991_s1 + $0x470] sm:$0xff]  }
 0x10a   :  { %3709 = vmatmul.mubr.bf16.gmra.mrb[116].mxu1 %v6803_v10  ;;  %3822 = vmatmul.mubr.bf16.gmra.mrb[116].mxu0 %v6804_v11  ;;  %v6823_v16 = vld [vmem:[%s8992_s0 + $0x314] ss:$92 sps:$4 sm:$0xff]  }
 0x10b   :  { %3716 = vmatprep.mubr.bf16.mxu1 %v6806_v14  ;;  %3829 = vmatprep.mubr.bf16.mxu0 %v6808_v22  ;;  %v7897_v36 = vadd.f32 %v5503_v29, %v7866_v21 }
 0x10c   :  { %6017 = vmatpush3.bf16.msra.mxu1 %v6828_v25  ;;  %6095 = vmatpush3.bf16.msra.mxu0 %v6862_v28  ;;  %v6885_v25 = vld [vmem:[%s8991_s1 + $0x430] sm:$0xff]   ;;  %v6887_v28 = vld [vmem:[%s8991_s1 + $0x478] sm:$0xff]  }
 0x10d   :  { %v5504_v41 = vpop.f32.mrb[12].mxu1  ;;  %v5468_v42 = vpop.f32.mrb[12].mxu0  ;;  %6018 = vmatprep.subr.bf16.mxu1 %v6839_v31  ;;  %6096 = vmatprep.subr.bf16.mxu0 %v6863_v32  ;;  %v6825_v32 = vld [vmem:[%s8992_s0 + $0x3c0] ss:$92 sps:$4 sm:$0xff]  }
 0x10e   :  { %v5505_v46 = vpop.f32.mrb[13].mxu1  ;;  %v5469_v50 = vpop.f32.mrb[13].mxu0 }
 0x10f   :  { %v5506_v51 = vadd.f32 %v5505_v46, %v5504_v41  ;;  %v5507_v52 = vpop.f32.mrb[14].mxu1  ;;  %v7917_v53 = vadd.f32 %v5469_v50, %v5468_v42  ;;  %v5471_v54 = vpop.f32.mrb[14].mxu0  ;;  %v6829_v41 = vld [vmem:[%s8992_s0 + $0x47c] ss:$92 sps:$4 sm:$0xff]   ;;  %v6831_v42 = vld [vmem:[%s8992_s0 + $0x3cc] ss:$92 sps:$4 sm:$0xff]  }
 0x110   :  { %v5508_v58 = vpop.f32.mrb[15].mxu1  ;;  %v5472_v59 = vpop.f32.mrb[15].mxu0  ;;  %6019 = vmatpush3.bf16.msra.mxu1 %v6842_v33  ;;  %6097 = vmatpush3.bf16.msra.mxu0 %v6865_v39  ;;  %v6826_v33 = vld [vmem:[%s8992_s0 + $0x310] ss:$92 sps:$4 sm:$0xff]  }
 0x111   :  { %v5509_v60 = vadd.f32 %v5508_v58, %v5507_v52  ;;  %v7928_v62 = vadd.f32 %v5472_v59, %v5471_v54  ;;  %6020 = vmatprep.subr.bf16.mxu1 %v6851_v35  ;;  %6098 = vmatprep.subr.bf16.mxu0 %v6873_v45  ;;  %v7934_v1 = vadd.f32 %v5506_v51, %v7866_v21  ;;  %v6888_v35 = vld [vmem:[%s8991_s1 + $0x438] sm:$0xff]  }
 0x112   :  { %3717 = vmatmul.mubr.bf16.gmra.mrb[120].mxu1 %v6811_v37  ;;  %3830 = vmatmul.mubr.bf16.gmra.mrb[120].mxu0 %v6812_v38  ;;  %v3090_v37 = vadd.f32 %v7798_v44, %v7866_v21  ;;  %v3093_v44 = vadd.f32 %v7802_v49, %v7866_v21  ;;  %v3098_v49 = vadd.f32 %v7827_v63, %v7866_v21 }
 0x113   :  { %3724 = vmatprep.mubr.bf16.mxu1 %v6813_v43  ;;  %3837 = vmatprep.mubr.bf16.mxu0 %v6815_v47  ;;  %v7940_v3 = vadd.f32 %v5509_v60, %v7866_v21  ;;  %v6947_v43 = vld [vmem:[%s8991_s1 + $0x540] sm:$0xff]  }
 0x114   :  { %6021 = vmatpush3.bf16.msra.mxu1 %v6852_v55  ;;  %6099 = vmatpush3.bf16.msra.mxu0 %v6874_v57 }
 0x115   :  { %v5510_v10 = vpop.f32.mrb[16].mxu1  ;;  %v5474_v11 = vpop.f32.mrb[16].mxu0  ;;  %6022 = vmatprep.subr.bf16.mxu1 %v6864_v56  ;;  %6100 = vmatprep.subr.bf16.mxu0 %v6875_v0 }
 0x116   :  { %v5511_v14 = vpop.f32.mrb[17].mxu1  ;;  %v5475_v15 = vpop.f32.mrb[17].mxu0 }
 0x117   :  { %v5512_v17 = vadd.f32 %v5511_v14, %v5510_v10  ;;  %v5513_v18 = vpop.f32.mrb[18].mxu1  ;;  %v7963_v19 = vadd.f32 %v5475_v15, %v5474_v11  ;;  %v5477_v20 = vpop.f32.mrb[18].mxu0  ;;  %v3101_v10 = vadd.f32 %v7837_v6, %v7866_v21  ;;  %v6837_v14 = vld [vmem:[%s8992_s0 + $0x484] ss:$92 sps:$4 sm:$0xff]  }
 0x118   :  { %v5514_v22 = vpop.f32.mrb[19].mxu1  ;;  %v5478_v24 = vpop.f32.mrb[19].mxu0  ;;  %6023 = vmatpush3.bf16.msra.mxu1 %v6866_v2  ;;  %6101 = vmatpush3.bf16.msra.mxu0 %v6876_v8  ;;  %v6833_v2 = vld [vmem:[%s8992_s0 + $0x478] ss:$92 sps:$4 sm:$0xff]  }
 0x119   :  { %v5515_v26 = vadd.f32 %v5514_v22, %v5513_v18  ;;  %v7968_v27 = vadd.f32 %v5478_v24, %v5477_v20  ;;  %6102 = vmatprep.subr.bf16.mxu0 %v6883_v9  ;;  %6172 = vmatprep.subr.bf16.mxu1 %v6884_v13  ;;  %v7974_v29 = vadd.f32 %v5512_v17, %v7866_v21  ;;  %v6835_v9 = vld [vmem:[%s8992_s0 + $0x534] ss:$92 sps:$4 sm:$0xff]  }
 0x11a   :  { %3725 = vmatmul.mubr.bf16.gmra.mrb[124].mxu1 %v6817_v4  ;;  %3838 = vmatmul.mubr.bf16.gmra.mrb[124].mxu0 %v6818_v7  ;;  %v6834_v4 = vld [vmem:[%s8992_s0 + $0x3c8] ss:$92 sps:$4 sm:$0xff]  }
 0x11b   :  { %3732 = vmatprep.mubr.bf16.mxu1 %v6821_v12  ;;  %3845 = vmatprep.mubr.bf16.mxu0 %v6823_v16  ;;  %v7977_v31 = vadd.f32 %v5515_v26, %v7866_v21 }
 0x11c   :  { %6103 = vmatpush3.bf16.msra.mxu0 %v6885_v25 }
 0x11d   :  { %v5532_v38 = vpop.f32.mrb[20].mxu1  ;;  %v5480_v39 = vpop.f32.mrb[20].mxu0  ;;  %6104 = vmatprep.subr.bf16.mxu0 %v6887_v28  ;;  %v3106_v28 = vadd.f32 %v7871_v23, %v7866_v21  ;;  %v6843_v23 = vld [vmem:[%s8992_s0 + $0x5ec] ss:$92 sps:$4 sm:$0xff]  }
 0x11e   :  { %v5533_v45 = vpop.f32.mrb[21].mxu1  ;;  %v5481_v46 = vpop.f32.mrb[21].mxu0 }
 0x11f   :  { %v5534_v47 = vadd.f32 %v5533_v45, %v5532_v38  ;;  %v5535_v50 = vpop.f32.mrb[22].mxu1  ;;  %v8001_v51 = vadd.f32 %v5481_v46, %v5480_v39  ;;  %v5483_v52 = vpop.f32.mrb[22].mxu0  ;;  %v6845_v45 = vld [vmem:[%s8992_s0 + $0x53c] ss:$92 sps:$4 sm:$0xff]  }
 0x120   :  { %v5536_v54 = vpop.f32.mrb[23].mxu1  ;;  %v5484_v55 = vpop.f32.mrb[23].mxu0  ;;  %6105 = vmatpush3.bf16.msra.mxu0 %v6888_v35 }
 0x121   :  { %v3211_v56 = vadd.f32 %v5534_v47, %v3090_v37  ;;  %v5537_v57 = vadd.f32 %v5536_v54, %v5535_v50  ;;  %v8003_v58 = vadd.f32 %v5484_v55, %v5483_v52  ;;  %6254 = vmatprep.subr.bf16.mxu0 %v6947_v43  ;;  %v6841_v37 = vld [vmem:[%s8992_s0 + $0x480] ss:$92 sps:$4 sm:$0xff]   ;;  %v3109_v43 = vadd.f32 %v7879_v30, %v7866_v21 }
 0x122   :  { %3733 = vmatmul.mubr.bf16.gmra.mrb[128].mxu1 %v6825_v32  ;;  %3846 = vmatmul.mubr.bf16.gmra.mrb[128].mxu0 %v6826_v33  ;;  %v6840_v32 = vld [vmem:[%s8992_s0 + $0x530] ss:$92 sps:$4 sm:$0xff]  }
 0x123   :  { %v3214_v59 = vadd.f32 %v5537_v57, %v3093_v44  ;;  %3740 = vmatprep.mubr.bf16.mxu1 %v6829_v41  ;;  %3853 = vmatprep.mubr.bf16.mxu0 %v6831_v42 }
 0x125   :  { %v5538_v60 = vpop.f32.mrb[24].mxu1  ;;  %v5614_v0 = vpop.f32.mrb[24].mxu0 }
 0x126   :  { %v5539_v7 = vpop.f32.mrb[25].mxu1  ;;  %v5615_v8 = vpop.f32.mrb[25].mxu0 }
 0x127   :  { %v5540_v63 = vadd.f32 %v5539_v7, %v5538_v60  ;;  %v5616_v11 = vadd.f32 %v5615_v8, %v5614_v0  ;;  %v5541_v12 = vpop.f32.mrb[26].mxu1  ;;  %v5617_v13 = vpop.f32.mrb[26].mxu0 }
 0x128   :  { %v5542_v15 = vpop.f32.mrb[27].mxu1  ;;  %v5618_v16 = vpop.f32.mrb[27].mxu0 }
 0x129   :  { %v3219_v17 = vadd.f32 %v5540_v63, %v3098_v49  ;;  %v5543_v18 = vadd.f32 %v5542_v15, %v5541_v12  ;;  %v5619_v20 = vadd.f32 %v5618_v16, %v5617_v13  ;;  %v8021_v22 = vadd.f32 %v5616_v11, %v3211_v56  ;;  %v6847_v49 = vld [vmem:[%s8992_s0 + $0x5e8] ss:$92 sps:$4 sm:$0xff]   ;;  %v6857_v63 = vld [vmem:[%s8992_s0 + $0x5f4] ss:$92 sps:$4 sm:$0xff]  }
 0x12a   :  { %3741 = vmatmul.mubr.bf16.gmra.mrb[132].mxu1 %v6833_v2  ;;  %3854 = vmatmul.mubr.bf16.gmra.mrb[132].mxu0 %v6834_v4  ;;  %v6848_v2 = vld [vmem:[%s8992_s0 + $0x538] ss:$92 sps:$4 sm:$0xff]   ;;  %v6855_v4 = vld [vmem:[%s8992_s0 + $0x6a4] ss:$92 sps:$4 sm:$0xff]  }
 0x12b   :  { %v3222_v24 = vadd.f32 %v5543_v18, %v3101_v10  ;;  %3748 = vmatprep.mubr.bf16.mxu1 %v6835_v9  ;;  %3861 = vmatprep.mubr.bf16.mxu0 %v6837_v14  ;;  %v8023_v6 = vadd.f32 %v5619_v20, %v3214_v59  ;;  %v3114_v59 = vadd.f32 %v7917_v53, %v7866_v21 }
 0x12c   :  { %v3117_v53 = vadd.f32 %v7928_v62, %v7866_v21 }
 0x12d   :  { %v5544_v25 = vpop.f32.mrb[28].mxu1  ;;  %v5620_v26 = vpop.f32.mrb[28].mxu0 }
 0x12e   :  { %v5545_v33 = vpop.f32.mrb[29].mxu1  ;;  %v5621_v35 = vpop.f32.mrb[29].mxu0 }
 0x12f   :  { %v5546_v38 = vadd.f32 %v5545_v33, %v5544_v25  ;;  %v5622_v39 = vadd.f32 %v5621_v35, %v5620_v26  ;;  %v5547_v41 = vpop.f32.mrb[30].mxu1  ;;  %v5623_v42 = vpop.f32.mrb[30].mxu0  ;;  %v6859_v25 = vld [vmem:[%s8992_s0 + $0x6a0] ss:$92 sps:$4 sm:$0xff]  }
 0x130   :  { %v5548_v46 = vpop.f32.mrb[31].mxu1  ;;  %v5624_v44 = vpop.f32.mrb[31].mxu0 }
 0x131   :  { %v3227_v47 = vadd.f32 %v5546_v38, %v3106_v28  ;;  %v5549_v50 = vadd.f32 %v5548_v46, %v5547_v41  ;;  %v5625_v52 = vadd.f32 %v5624_v44, %v5623_v42  ;;  %v8041_v54 = vadd.f32 %v5622_v39, %v3219_v17  ;;  %v6869_v41 = vld [vmem:[%s8992_s0 + $0x6ac] ss:$92 sps:$4 sm:$0xff]  }
 0x132   :  { %3749 = vmatmul.mubr.bf16.gmra.mrb[136].mxu1 %v6840_v32  ;;  %3862 = vmatmul.mubr.bf16.gmra.mrb[136].mxu0 %v6841_v37  ;;  %v6860_v32 = vld [vmem:[%s8992_s0 + $0x5f0] ss:$92 sps:$4 sm:$0xff]   ;;  %v3125_v39 = vadd.f32 %v7968_v27, %v7866_v21  ;;  %v6871_v27 = vld [vmem:[%s8992_s0 + $0x758] ss:$92 sps:$4 sm:$0xff]  }
 0x133   :  { %v3230_v55 = vadd.f32 %v5549_v50, %v3109_v43  ;;  %3756 = vmatprep.mubr.bf16.mxu1 %v6843_v23  ;;  %3869 = vmatprep.mubr.bf16.mxu0 %v6845_v45  ;;  %v8043_v30 = vadd.f32 %v5625_v52, %v3222_v24  ;;  %v3122_v24 = vadd.f32 %v7963_v19, %v7866_v21  ;;  %v6867_v19 = vld [vmem:[%s8992_s0 + $0x75c] ss:$92 sps:$4 sm:$0xff]  }
 0x135   :  { %v5550_v56 = vpop.f32.mrb[32].mxu1  ;;  %v5626_v57 = vpop.f32.mrb[32].mxu0 }
 0x136   :  { %v5551_v60 = vpop.f32.mrb[33].mxu1  ;;  %v5627_v0 = vpop.f32.mrb[33].mxu0 }
 0x137   :  { %v5552_v7 = vadd.f32 %v5551_v60, %v5550_v56  ;;  %v5628_v8 = vadd.f32 %v5627_v0, %v5626_v57  ;;  %v5553_v9 = vpop.f32.mrb[34].mxu1  ;;  %v5629_v10 = vpop.f32.mrb[34].mxu0  ;;  %v3130_v56 = vadd.f32 %v8001_v51, %v7866_v21  ;;  %v6872_v57 = vld [vmem:[%s8992_s0 + $0x6a8] ss:$92 sps:$4 sm:$0xff]   ;;  %v6881_v0 = vld [vmem:[%s8992_s0 + $0x3c] ss:$92 sps:$4 sm:$0xff]   ;;  %v3133_v51 = vadd.f32 %v8003_v58, %v7866_v21 }
 0x138   :  { %v5554_v11 = vpop.f32.mrb[35].mxu1  ;;  %v5630_v12 = vpop.f32.mrb[35].mxu0  ;;  %v6877_v60 = vld [vmem:[%s8992_s0 + $0x764] ss:$92 sps:$4 sm:$0xff]  }
 0x139   :  { %v3235_v13 = vadd.f32 %v5552_v7, %v3114_v59  ;;  %v8061_v14 = vadd.f32 %v5628_v8, %v3227_v47  ;;  %v5555_v15 = vadd.f32 %v5554_v11, %v5553_v9  ;;  %v5631_v16 = vadd.f32 %v5630_v12, %v5629_v10  ;;  %v6882_v58 = vld [vmem:[%s8992_s0 + $0x760] ss:$92 sps:$4 sm:$0xff]  }
 0x13a   :  { %3757 = vmatmul.mubr.bf16.gmra.mrb[140].mxu1 %v6847_v49  ;;  %3870 = vmatmul.mubr.bf16.gmra.mrb[140].mxu0 %v6848_v2 }
 0x13b   :  { %v3238_v17 = vadd.f32 %v5555_v15, %v3117_v53  ;;  %v8063_v18 = vadd.f32 %v5631_v16, %v3230_v55  ;;  %3764 = vmatprep.mubr.bf16.mxu1 %v6855_v4  ;;  %3877 = vmatprep.mubr.bf16.mxu0 %v6857_v63  ;;  %v6879_v16 = vld [vmem:[%s8992_s0 + $0x38] ss:$92 sps:$4 sm:$0xff]  }
 0x13d   :  { %v5556_v20 = vpop.f32.mrb[36].mxu1  ;;  %v5632_v62 = vpop.f32.mrb[36].mxu0 }
 0x13e   :  { %v5557_v26 = vpop.f32.mrb[37].mxu1  ;;  %v5633_v28 = vpop.f32.mrb[37].mxu0 }
 0x13f   :  { %v5558_v33 = vadd.f32 %v5557_v26, %v5556_v20  ;;  %v5634_v35 = vadd.f32 %v5633_v28, %v5632_v62  ;;  %v5559_v37 = vpop.f32.mrb[38].mxu1  ;;  %v5635_v38 = vpop.f32.mrb[38].mxu0  ;;  %v6886_v62 = vld [vmem:[%s8991_s1 + $0x480] sm:$0xff]   ;;  %v3138_v28 = vadd.f32 %v7790_v40, %v7866_v21 }
 0x140   :  { %v5560_v42 = vpop.f32.mrb[39].mxu1  ;;  %v5636_v43 = vpop.f32.mrb[39].mxu0 }
 0x141   :  { %v3243_v23 = vadd.f32 %v5558_v33, %v3122_v24  ;;  %v8081_v45 = vadd.f32 %v5634_v35, %v3235_v13  ;;  %v5561_v46 = vadd.f32 %v5560_v42, %v5559_v37  ;;  %v5637_v44 = vadd.f32 %v5636_v43, %v5635_v38  ;;  %v6889_v24 = vld [vmem:[%s8992_s0 + $0xf4] ss:$92 sps:$4 sm:$0xff]   ;;  %v6895_v42 = vld [vmem:[%s8991_s1 + $0x4c8] sm:$0xff]  }
 0x142   :  { %3765 = vmatmul.mubr.bf16.gmra.mrb[144].mxu1 %v6859_v25  ;;  %3878 = vmatmul.mubr.bf16.gmra.mrb[144].mxu0 %v6860_v32  ;;  %v3141_v38 = vadd.f32 %v7800_v48, %v7866_v21 }
 0x143   :  { %v3246_v47 = vadd.f32 %v5561_v46, %v3125_v39  ;;  %v8083_v50 = vadd.f32 %v5637_v44, %v3238_v17  ;;  %3772 = vmatprep.mubr.bf16.mxu1 %v6867_v19  ;;  %3885 = vmatprep.mubr.bf16.mxu0 %v6869_v41  ;;  %v6893_v41 = vld [vmem:[%s8992_s0 + $0x44] ss:$92 sps:$4 sm:$0xff]   ;;  %v6896_v44 = vld [vmem:[%s8991_s1 + $0x488] sm:$0xff]  }
 0x145   :  { %v5562_v52 = vpop.f32.mrb[40].mxu1  ;;  %v5638_v55 = vpop.f32.mrb[40].mxu0 }
 0x146   :  { %v5563_v59 = vpop.f32.mrb[41].mxu1  ;;  %v5639_v49 = vpop.f32.mrb[41].mxu0 }
 0x147   :  { %v5564_v2 = vadd.f32 %v5563_v59, %v5562_v52  ;;  %v5640_v4 = vadd.f32 %v5639_v49, %v5638_v55  ;;  %v5565_v7 = vpop.f32.mrb[42].mxu1  ;;  %v5641_v8 = vpop.f32.mrb[42].mxu0  ;;  %v6891_v52 = vld [vmem:[%s8992_s0 + $0x40] ss:$92 sps:$4 sm:$0xff]   ;;  %v6894_v55 = vld [vmem:[%s8992_s0 + $0xf0] ss:$92 sps:$4 sm:$0xff]  }
 0x148   :  { %v5566_v9 = vpop.f32.mrb[43].mxu1  ;;  %v5642_v10 = vpop.f32.mrb[43].mxu0  ;;  %v6897_v59 = vld [vmem:[%s8992_s0 + $0x1ac] ss:$92 sps:$4 sm:$0xff]   ;;  %v6899_v49 = vld [vmem:[%s8992_s0 + $0xfc] ss:$92 sps:$4 sm:$0xff]  }
 0x149   :  { %v3251_v53 = vadd.f32 %v5564_v2, %v3130_v56  ;;  %v8101_v63 = vadd.f32 %v5640_v4, %v3243_v23  ;;  %v5567_v11 = vadd.f32 %v5566_v9, %v5565_v7  ;;  %v5643_v12 = vadd.f32 %v5642_v10, %v5641_v8 }
 0x14a   :  { %3773 = vmatmul.mubr.bf16.gmra.mrb[148].mxu1 %v6871_v27  ;;  %3886 = vmatmul.mubr.bf16.gmra.mrb[148].mxu0 %v6872_v57  ;;  %v6903_v27 = vld [vmem:[%s8991_s1 + $0x4d0] sm:$0xff]   ;;  %v3146_v2 = vadd.f32 %v7825_v61, %v7866_v21  ;;  %v3149_v9 = vadd.f32 %v7835_v5, %v7866_v21  ;;  %v6917_v5 = vld [vmem:[%s8991_s1 + $0x4d8] sm:$0xff]   ;;  %v6951_v21 = vld [vmem:[%s8991_s1 + $0x548] sm:$0xff]  }
 0x14b   :  { %v3254_v13 = vadd.f32 %v5567_v11, %v3133_v51  ;;  %v8103_v15 = vadd.f32 %v5643_v12, %v3246_v47  ;;  %3893 = vmatprep.mubr.bf16.mxu0 %v6877_v60  ;;  %3934 = vmatprep.mubr.bf16.mxu1 %v6881_v0  ;;  %v6908_v11 = vld [vmem:[%s8991_s1 + $0x490] sm:$0xff]   ;;  %v6948_v12 = vld [vmem:[%s8991_s1 + $0x500] sm:$0xff]  }
 0x14d   :  { %v5568_v17 = vpop.f32.mrb[44].mxu1  ;;  %v5644_v20 = vpop.f32.mrb[44].mxu0 }
 0x14e   :  { %v5569_v25 = vpop.f32.mrb[45].mxu1  ;;  %v5645_v26 = vpop.f32.mrb[45].mxu0 }
 0x14f   :  { %v5570_v32 = vadd.f32 %v5569_v25, %v5568_v17  ;;  %v5646_v33 = vadd.f32 %v5645_v26, %v5644_v20  ;;  %v5571_v35 = vpop.f32.mrb[46].mxu1  ;;  %v5647_v37 = vpop.f32.mrb[46].mxu0  ;;  %v6918_v17 = vld [vmem:[%s8991_s1 + $0x498] sm:$0xff]   ;;  %v6952_v20 = vld [vmem:[%s8991_s1 + $0x508] sm:$0xff]   ;;  %v6925_v25 = vld [vmem:[%s8991_s1 + $0x4e0] sm:$0xff]  }
 0x150   :  { %v5572_v39 = vpop.f32.mrb[47].mxu1  ;;  %v5648_v19 = vpop.f32.mrb[47].mxu0  ;;  %v6901_v26 = vld [vmem:[%s8992_s0 + $0x1a8] ss:$92 sps:$4 sm:$0xff]  }
 0x151   :  { %v3259_v43 = vadd.f32 %v5570_v32, %v3138_v28  ;;  %v8127_v23 = vadd.f32 %v5646_v33, %v3251_v53  ;;  %v5573_v40 = vadd.f32 %v5572_v39, %v5571_v35  ;;  %v5649_v46 = vadd.f32 %v5648_v19, %v5647_v37  ;;  %v6902_v28 = vld [vmem:[%s8992_s0 + $0xf8] ss:$92 sps:$4 sm:$0xff]   ;;  %v6904_v35 = vld [vmem:[%s8992_s0 + $0x264] ss:$92 sps:$4 sm:$0xff]  }
 0x152   :  { %3894 = vmatmul.mubr.bf16.gmra.mrb[152].mxu0 %v6882_v58  ;;  %3935 = vmatmul.mubr.bf16.vlgmr.msra.gmra.mrb[152].mxu1 %v6879_v16  ;;  %v6906_v37 = vld [vmem:[%s8992_s0 + $0x1b4] ss:$92 sps:$4 sm:$0xff]  }
 0x153   :  { %v3262_v48 = vadd.f32 %v5573_v40, %v3141_v38  ;;  %v8132_v47 = vadd.f32 %v5649_v46, %v3254_v13  ;;  %6173 = vmatpush3.bf16.msra.mxu1 %v6886_v62  ;;  %3942 = vmatprep.mubr.bf16.mxu1 %v6889_v24 }
 0x154   :  { %4055 = vmatprep.mubr.bf16.mxu0 %v6893_v41  ;;  %6174 = vmatprep.subr.bf16.mxu1 %v6895_v42 }
 0x155   :  { %v5574_v56 = vpop.f32.mrb[48].mxu1  ;;  %v5650_v57 = vpop.f32.mrb[48].mxu0 }
 0x156   :  { %v5575_v60 = vpop.f32.mrb[49].mxu1  ;;  %v5651_v0 = vpop.f32.mrb[49].mxu0 }
 0x157   :  { %v5576_v4 = vadd.f32 %v5575_v60, %v5574_v56  ;;  %v5652_v7 = vadd.f32 %v5651_v0, %v5650_v57  ;;  %v5577_v8 = vpop.f32.mrb[50].mxu1  ;;  %v5653_v51 = vpop.f32.mrb[50].mxu0  ;;  %6175 = vmatpush3.bf16.msra.mxu1 %v6896_v44  ;;  %v6926_v44 = vld [vmem:[%s8991_s1 + $0x4a0] sm:$0xff]   ;;  %v6937_v57 = vld [vmem:[%s8991_s1 + $0x4e8] sm:$0xff]  }
 0x158   :  { %v5578_v10 = vpop.f32.mrb[51].mxu1  ;;  %v5654_v53 = vpop.f32.mrb[51].mxu0  ;;  %6176 = vmatprep.subr.bf16.mxu1 %v6903_v27  ;;  %v6940_v0 = vld [vmem:[%s8991_s1 + $0x4a8] sm:$0xff]  }
 0x159   :  { %v3267_v61 = vadd.f32 %v5576_v4, %v3146_v2  ;;  %v8159_v13 = vadd.f32 %v5652_v7, %v3259_v43  ;;  %v5579_v16 = vadd.f32 %v5578_v10, %v5577_v8  ;;  %v5655_v58 = vadd.f32 %v5654_v53, %v5653_v51  ;;  %v6949_v7 = vld [vmem:[%s8991_s1 + $0x4f0] sm:$0xff]   ;;  %v6909_v51 = vld [vmem:[%s8992_s0 + $0x260] ss:$92 sps:$4 sm:$0xff]  }
 0x15a   :  { %3943 = vmatmul.mubr.bf16.gmra.mrb[156].mxu1 %v6894_v55  ;;  %4056 = vmatmul.mubr.bf16.vlgmr.msra.gmra.mrb[156].mxu0 %v6891_v52 }
 0x15b   :  { %v3270_v62 = vadd.f32 %v5579_v16, %v3149_v9  ;;  %v8173_v24 = vadd.f32 %v5655_v58, %v3262_v48  ;;  %3950 = vmatprep.mubr.bf16.mxu1 %v6897_v59  ;;  %4063 = vmatprep.mubr.bf16.mxu0 %v6899_v49  ;;  %v6959_v48 = vld [vmem:[%s8991_s1 + $0x550] sm:$0xff]   ;;  %v6961_v49 = vld [vmem:[%s8991_s1 + $0x558] sm:$0xff]   ;;  %v6913_v16 = vld [vmem:[%s8992_s0 + $0x26c] ss:$92 sps:$4 sm:$0xff]  }
 0x15c   :  { %6177 = vmatpush3.bf16.msra.mxu1 %v6908_v11  ;;  %6255 = vmatpush3.bf16.msra.mxu0 %v6948_v12  ;;  %v6960_v59 = vld [vmem:[%s8991_s1 + $0x510] sm:$0xff]  }
 0x15d   :  { %v5580_v32 = vpop.f32.mrb[52].mxu1  ;;  %v5656_v33 = vpop.f32.mrb[52].mxu0  ;;  %6178 = vmatprep.subr.bf16.mxu1 %v6917_v5  ;;  %6256 = vmatprep.subr.bf16.mxu0 %v6951_v21  ;;  %v6910_v9 = vld [vmem:[%s8992_s0 + $0x1b0] ss:$92 sps:$4 sm:$0xff]  }
 0x15e   :  { %v5581_v38 = vpop.f32.mrb[53].mxu1  ;;  %v5657_v39 = vpop.f32.mrb[53].mxu0  ;;  %v6950_v21 = vld [vmem:[%s8991_s1 + $0x4b0] sm:$0xff]  }
 0x15f   :  { %v5582_v19 = vadd.f32 %v5581_v38, %v5580_v32  ;;  %v5658_v41 = vadd.f32 %v5657_v39, %v5656_v33  ;;  %v5583_v42 = vpop.f32.mrb[54].mxu1  ;;  %v5659_v43 = vpop.f32.mrb[54].mxu0  ;;  %v6971_v32 = vld [vmem:[%s8991_s1 + $0x560] sm:$0xff]  }
 0x160   :  { %v5584_v40 = vpop.f32.mrb[55].mxu1  ;;  %v5660_v46 = vpop.f32.mrb[55].mxu0  ;;  %6179 = vmatpush3.bf16.msra.mxu1 %v6918_v17  ;;  %6257 = vmatpush3.bf16.msra.mxu0 %v6952_v20  ;;  %v6963_v17 = vld [vmem:[%s8991_s1 + $0x518] sm:$0xff]  }
 0x161   :  { %v3275_v27 = vadd.f32 %v5582_v19, %v7891_v34  ;;  %v8197_v52 = vadd.f32 %v5658_v41, %v3267_v61  ;;  %v5585_v55 = vadd.f32 %v5584_v40, %v5583_v42  ;;  %v5661_v56 = vadd.f32 %v5660_v46, %v5659_v43  ;;  %6180 = vmatprep.subr.bf16.mxu1 %v6925_v25  ;;  %v6911_v61 = vld [vmem:[%s8992_s0 + $0x31c] ss:$92 sps:$4 sm:$0xff]   ;;  %v6916_v43 = vld [vmem:[%s8992_s0 + $0x268] ss:$92 sps:$4 sm:$0xff]  }
 0x162   :  { %3951 = vmatmul.mubr.bf16.gmra.mrb[160].mxu1 %v6901_v26  ;;  %4064 = vmatmul.mubr.bf16.gmra.mrb[160].mxu0 %v6902_v28  ;;  %v6962_v28 = vld [vmem:[%s8991_s1 + $0x4f8] sm:$0xff]  }
 0x163   :  { %v3278_v34 = vadd.f32 %v5585_v55, %v7897_v36  ;;  %v8209_v60 = vadd.f32 %v5661_v56, %v3270_v62  ;;  %3958 = vmatprep.mubr.bf16.mxu1 %v6904_v35  ;;  %4071 = vmatprep.mubr.bf16.mxu0 %v6906_v37  ;;  %v6972_v37 = vld [vmem:[%s8991_s1 + $0x520] sm:$0xff]   ;;  %v6915_v42 = vld [vmem:[%s8992_s0 + $0x318] ss:$92 sps:$4 sm:$0xff]  }
 0x164   :  { %6181 = vmatpush3.bf16.msra.mxu1 %v6926_v44  ;;  %6258 = vmatprep.subr.bf16.mxu0 %v6959_v48  ;;  %v6921_v55 = vld [vmem:[%s8992_s0 + $0x324] ss:$92 sps:$4 sm:$0xff]  }
 0x165   :  { %v5586_v2 = vpop.f32.mrb[56].mxu1  ;;  %v5662_v4 = vpop.f32.mrb[56].mxu0  ;;  %6182 = vmatprep.subr.bf16.mxu1 %v6937_v57  ;;  %6259 = vmatpush3.bf16.msra.mxu0 %v6960_v59  ;;  %v6974_v59 = vld [vmem:[%s8991_s1 + $0x528] sm:$0xff]  }
 0x166   :  { %v5587_v8 = vpop.f32.mrb[57].mxu1  ;;  %v5663_v36 = vpop.f32.mrb[57].mxu0  ;;  %6260 = vmatprep.subr.bf16.mxu0 %v6961_v49 }
 0x167   :  { %v5588_v10 = vadd.f32 %v5587_v8, %v5586_v2  ;;  %v5664_v53 = vadd.f32 %v5663_v36, %v5662_v4  ;;  %v5589_v11 = vpop.f32.mrb[58].mxu1  ;;  %v5665_v12 = vpop.f32.mrb[58].mxu0  ;;  %v6981_v4 = vld [vmem:[%s8991_s1 + $0x570] sm:$0xff]   ;;  %v7074_v36 = vmov 0.0  }
 0x168   :  { %v5590_v58 = vpop.f32.mrb[59].mxu1  ;;  %v5666_v5 = vpop.f32.mrb[59].mxu0  ;;  %6183 = vmatpush3.bf16.msra.mxu1 %v6940_v0 }
 0x169   :  { %v3283_v20 = vadd.f32 %v5588_v10, %v7934_v1  ;;  %v8236_v62 = vadd.f32 %v5664_v53, %v3275_v27  ;;  %v5591_v25 = vadd.f32 %v5590_v58, %v5589_v11  ;;  %v5667_v26 = vadd.f32 %v5666_v5, %v5665_v12  ;;  %6184 = vmatprep.subr.bf16.mxu1 %v6949_v7  ;;  %v6964_v1 = vld [vmem:[%s8991_s1 + $0x4b8] sm:$0xff]   ;;  %v6919_v27 = vld [vmem:[%s8992_s0 + $0x3d4] ss:$92 sps:$4 sm:$0xff]  }
 0x16a   :  { %3959 = vmatmul.mubr.bf16.gmra.mrb[164].mxu1 %v6909_v51  ;;  %4072 = vmatmul.mubr.bf16.gmra.mrb[164].mxu0 %v6910_v9  ;;  %v6984_v10 = vld [vmem:[%s8991_s1 + $0x578] sm:$0xff]   ;;  %v6923_v11 = vld [vmem:[%s8992_s0 + $0x3d0] ss:$92 sps:$4 sm:$0xff]  }
 0x16b   :  { %v3286_v33 = vadd.f32 %v5591_v25, %v7940_v3  ;;  %v8245_v35 = vadd.f32 %v5667_v26, %v3278_v34  ;;  %3966 = vmatprep.mubr.bf16.mxu1 %v6911_v61  ;;  %4079 = vmatprep.mubr.bf16.mxu0 %v6913_v16  ;;  %v6973_v3 = vld [vmem:[%s8991_s1 + $0x568] sm:$0xff]   ;;  %v6924_v12 = vld [vmem:[%s8992_s0 + $0x320] ss:$92 sps:$4 sm:$0xff]  }
 0x16c   :  { %6185 = vmatpush3.bf16.msra.mxu1 %v6950_v21  ;;  %6261 = vmatpush3.bf16.msra.mxu0 %v6963_v17  ;;  %v6927_v21 = vld [vmem:[%s8992_s0 + $0x48c] ss:$92 sps:$4 sm:$0xff]   ;;  %v6929_v17 = vld [vmem:[%s8992_s0 + $0x3dc] ss:$92 sps:$4 sm:$0xff]  }
 0x16d   :  { %v5592_v38 = vpop.f32.mrb[60].mxu1  ;;  %v5668_v39 = vpop.f32.mrb[60].mxu0  ;;  %6186 = vmatprep.subr.bf16.mxu1 %v6962_v28  ;;  %6262 = vmatprep.subr.bf16.mxu0 %v6971_v32  ;;  %v6985_v26 = vld [vmem:[%s8991_s1 + $0x538] sm:$0xff]  }
 0x16e   :  { %v5593_v19 = vpop.f32.mrb[61].mxu1  ;;  %v5669_v41 = vpop.f32.mrb[61].mxu0 }
 0x16f   :  { %v5594_v40 = vadd.f32 %v5593_v19, %v5592_v38  ;;  %v5670_v46 = vadd.f32 %v5669_v41, %v5668_v39  ;;  %v5595_v44 = vpop.f32.mrb[62].mxu1  ;;  %v5671_v48 = vpop.f32.mrb[62].mxu0 }
 0x170   :  { %v5596_v56 = vpop.f32.mrb[63].mxu1  ;;  %v5672_v57 = vpop.f32.mrb[63].mxu0  ;;  %6187 = vmatpush3.bf16.msra.mxu1 %v6964_v1  ;;  %6263 = vmatpush3.bf16.msra.mxu0 %v6972_v37 }
 0x171   :  { %v3291_v49 = vadd.f32 %v5594_v40, %v7974_v29  ;;  %v8272_v34 = vadd.f32 %v5670_v46, %v3283_v20  ;;  %v5597_v0 = vadd.f32 %v5596_v56, %v5595_v44  ;;  %v5673_v2 = vadd.f32 %v5672_v57, %v5671_v48  ;;  %6264 = vmatprep.subr.bf16.mxu0 %v6973_v3  ;;  %v6982_v29 = vld [vmem:[%s8991_s1 + $0x530] sm:$0xff]   ;;  %v6933_v44 = vld [vmem:[%s8992_s0 + $0x544] ss:$92 sps:$4 sm:$0xff]  }
 0x172   :  { %3967 = vmatmul.mubr.bf16.gmra.mrb[168].mxu1 %v6915_v42  ;;  %4080 = vmatmul.mubr.bf16.gmra.mrb[168].mxu0 %v6916_v43  ;;  %v6932_v42 = vld [vmem:[%s8992_s0 + $0x3d8] ss:$92 sps:$4 sm:$0xff]  }
 0x173   :  { %v3294_v7 = vadd.f32 %v5597_v0, %v7977_v31  ;;  %v8278_v8 = vadd.f32 %v5673_v2, %v3286_v33  ;;  %3974 = vmatprep.mubr.bf16.mxu1 %v6919_v27  ;;  %4087 = vmatprep.mubr.bf16.mxu0 %v6921_v55  ;;  %v6935_v48 = vld [vmem:[%s8992_s0 + $0x494] ss:$92 sps:$4 sm:$0xff]  }
 0x174   :  { %6265 = vmatpush3.bf16.msra.mxu0 %v6974_v59  ;;  %6373 = vmatprep.subr.bf16.mxu1 %v7074_v36 }
 0x175   :  { %v5674_v51 = vpop.f32.mrb[64].mxu0  ;;  %v5696_v9 = vpop.f32.mrb[64].mxu1  ;;  %6266 = vmatprep.subr.bf16.mxu0 %v6981_v4 }
 0x176   :  { %v5675_v31 = vpop.f32.mrb[65].mxu0  ;;  %v5697_v53 = vpop.f32.mrb[65].mxu1 }
 0x177   :  { %v5676_v61 = vadd.f32 %v5675_v31, %v5674_v51  ;;  %v5698_v16 = vadd.f32 %v5697_v53, %v5696_v9  ;;  %v5677_v58 = vpop.f32.mrb[66].mxu0  ;;  %v5699_v5 = vpop.f32.mrb[66].mxu1  ;;  %v6939_v9 = vld [vmem:[%s8992_s0 + $0x490] ss:$92 sps:$4 sm:$0xff]  }
 0x178   :  { %v5678_v20 = vpop.f32.mrb[67].mxu0  ;;  %v5700_v25 = vpop.f32.mrb[67].mxu1  ;;  %6267 = vmatpush3.bf16.msra.mxu0 %v6982_v29 }
 0x179   :  { %v8302_v28 = vadd.f32 %v5676_v61, %v3291_v49  ;;  %v3453_v32 = vadd.f32 %v5698_v16, %v8021_v22  ;;  %v5679_v33 = vadd.f32 %v5678_v20, %v5677_v58  ;;  %v5701_v1 = vadd.f32 %v5700_v25, %v5699_v5  ;;  %6268 = vmatprep.subr.bf16.mxu0 %v6984_v10  ;;  %v6931_v22 = vld [vmem:[%s8992_s0 + $0x488] ss:$92 sps:$4 sm:$0xff]  }
 0x17a   :  { %3975 = vmatmul.mubr.bf16.gmra.mrb[172].mxu1 %v6923_v11  ;;  %4088 = vmatmul.mubr.bf16.gmra.mrb[172].mxu0 %v6924_v12  ;;  %v6941_v11 = vld [vmem:[%s8992_s0 + $0x5fc] ss:$92 sps:$4 sm:$0xff]   ;;  %v6943_v12 = vld [vmem:[%s8992_s0 + $0x54c] ss:$92 sps:$4 sm:$0xff]  }
 0x17b   :  { %v8305_v37 = vadd.f32 %v5679_v33, %v3294_v7  ;;  %v3456_v38 = vadd.f32 %v5701_v1, %v8023_v6  ;;  %3982 = vmatprep.mubr.bf16.mxu1 %v6927_v21  ;;  %4095 = vmatprep.mubr.bf16.mxu0 %v6929_v17 }
 0x17c   :  { %6269 = vmatpush3.bf16.msra.mxu0 %v6985_v26 }
 0x17d   :  { %v5702_v39 = vpop.f32.mrb[68].mxu1  ;;  %v5778_v3 = vpop.f32.mrb[68].mxu0  ;;  %6431 = vmatprep.subr.bf16.mxu0 %v7074_v36 }
 0x17e   :  { %v5703_v19 = vpop.f32.mrb[69].mxu1  ;;  %v5779_v41 = vpop.f32.mrb[69].mxu0 }
 0x17f   :  { %v5704_v43 = vadd.f32 %v5703_v19, %v5702_v39  ;;  %v5780_v40 = vadd.f32 %v5779_v41, %v5778_v3  ;;  %v5705_v6 = vpop.f32.mrb[70].mxu1  ;;  %v5781_v46 = vpop.f32.mrb[70].mxu0  ;;  %v6953_v41 = vld [vmem:[%s8992_s0 + $0x6b4] ss:$92 sps:$4 sm:$0xff]  }
 0x180   :  { %v5706_v27 = vpop.f32.mrb[71].mxu1  ;;  %v5782_v55 = vpop.f32.mrb[71].mxu0 }
 0x181   :  { %v3461_v56 = vadd.f32 %v5704_v43, %v8041_v54  ;;  %v8322_v57 = vadd.f32 %v5780_v40, %v3453_v32  ;;  %v5707_v59 = vadd.f32 %v5706_v27, %v5705_v6  ;;  %v5783_v49 = vadd.f32 %v5782_v55, %v5781_v46  ;;  %v6938_v54 = vld [vmem:[%s8992_s0 + $0x540] ss:$92 sps:$4 sm:$0xff]  }
 0x182   :  { %3983 = vmatmul.mubr.bf16.gmra.mrb[176].mxu1 %v6931_v22  ;;  %4096 = vmatmul.mubr.bf16.gmra.mrb[176].mxu0 %v6932_v42  ;;  %v6955_v22 = vld [vmem:[%s8992_s0 + $0x604] ss:$92 sps:$4 sm:$0xff]  }
 0x183   :  { %v3464_v0 = vadd.f32 %v5707_v59, %v8043_v30  ;;  %v8325_v2 = vadd.f32 %v5783_v49, %v3456_v38  ;;  %3990 = vmatprep.mubr.bf16.mxu1 %v6933_v44  ;;  %4103 = vmatprep.mubr.bf16.mxu0 %v6935_v48  ;;  %v6946_v38 = vld [vmem:[%s8992_s0 + $0x548] ss:$92 sps:$4 sm:$0xff]  }
 0x185   :  { %v5708_v4 = vpop.f32.mrb[72].mxu1  ;;  %v5784_v7 = vpop.f32.mrb[72].mxu0 }
 0x186   :  { %v5709_v29 = vpop.f32.mrb[73].mxu1  ;;  %v5785_v51 = vpop.f32.mrb[73].mxu0 }
 0x187   :  { %v5710_v10 = vadd.f32 %v5709_v29, %v5708_v4  ;;  %v5786_v31 = vadd.f32 %v5785_v51, %v5784_v7  ;;  %v5711_v53 = vpop.f32.mrb[74].mxu1  ;;  %v5787_v30 = vpop.f32.mrb[74].mxu0  ;;  %v6965_v51 = vld [vmem:[%s8992_s0 + $0x76c] ss:$92 sps:$4 sm:$0xff]  }
 0x188   :  { %v5712_v61 = vpop.f32.mrb[75].mxu1  ;;  %v5788_v16 = vpop.f32.mrb[75].mxu0 }
 0x189   :  { %v3469_v58 = vadd.f32 %v5710_v10, %v8061_v14  ;;  %v8340_v5 = vadd.f32 %v5786_v31, %v3461_v56  ;;  %v5713_v21 = vadd.f32 %v5712_v61, %v5711_v53  ;;  %v5789_v17 = vadd.f32 %v5788_v16, %v5787_v30  ;;  %v6945_v14 = vld [vmem:[%s8992_s0 + $0x5f8] ss:$92 sps:$4 sm:$0xff]  }
 0x18a   :  { %3991 = vmatmul.mubr.bf16.gmra.mrb[180].mxu1 %v6938_v54  ;;  %4104 = vmatmul.mubr.bf16.gmra.mrb[180].mxu0 %v6939_v9  ;;  %v6967_v54 = vld [vmem:[%s8992_s0 + $0x6bc] ss:$92 sps:$4 sm:$0xff]  }
 0x18b   :  { %v3472_v20 = vadd.f32 %v5713_v21, %v8063_v18  ;;  %v8343_v25 = vadd.f32 %v5789_v17, %v3464_v0  ;;  %3998 = vmatprep.mubr.bf16.mxu1 %v6941_v11  ;;  %4111 = vmatprep.mubr.bf16.mxu0 %v6943_v12  ;;  %v6958_v0 = vld [vmem:[%s8992_s0 + $0x600] ss:$92 sps:$4 sm:$0xff]  }
 0x18d   :  { %v5714_v26 = vpop.f32.mrb[76].mxu1  ;;  %v5790_v32 = vpop.f32.mrb[76].mxu0 }
 0x18e   :  { %v5715_v33 = vpop.f32.mrb[77].mxu1  ;;  %v5791_v1 = vpop.f32.mrb[77].mxu0 }
 0x18f   :  { %v5716_v39 = vadd.f32 %v5715_v33, %v5714_v26  ;;  %v5792_v3 = vadd.f32 %v5791_v1, %v5790_v32  ;;  %v5717_v19 = vpop.f32.mrb[78].mxu1  ;;  %v5793_v18 = vpop.f32.mrb[78].mxu0  ;;  %v6975_v1 = vld [vmem:[%s8992_s0 + $0x774] ss:$92 sps:$4 sm:$0xff]  }
 0x190   :  { %v5718_v42 = vpop.f32.mrb[79].mxu1  ;;  %v5794_v43 = vpop.f32.mrb[79].mxu0 }
 0x191   :  { %v3477_v40 = vadd.f32 %v5716_v39, %v8081_v45  ;;  %v8358_v6 = vadd.f32 %v5792_v3, %v3469_v58  ;;  %v5719_v46 = vadd.f32 %v5718_v42, %v5717_v19  ;;  %v5795_v44 = vadd.f32 %v5794_v43, %v5793_v18  ;;  %v6957_v45 = vld [vmem:[%s8992_s0 + $0x6b0] ss:$92 sps:$4 sm:$0xff]  }
 0x192   :  { %3999 = vmatmul.mubr.bf16.gmra.mrb[184].mxu1 %v6945_v14  ;;  %4112 = vmatmul.mubr.bf16.gmra.mrb[184].mxu0 %v6946_v38  ;;  %v6979_v14 = vld [vmem:[%s8992_s0 + $0x4c] ss:$92 sps:$4 sm:$0xff]  }
 0x193   :  { %v3480_v48 = vadd.f32 %v5719_v46, %v8083_v50  ;;  %v8361_v27 = vadd.f32 %v5795_v44, %v3472_v20  ;;  %4006 = vmatprep.mubr.bf16.mxu1 %v6953_v41  ;;  %4119 = vmatprep.mubr.bf16.mxu0 %v6955_v22  ;;  %v6970_v20 = vld [vmem:[%s8992_s0 + $0x6b8] ss:$92 sps:$4 sm:$0xff]  }
 0x195   :  { %v5720_v55 = vpop.f32.mrb[80].mxu1  ;;  %v5796_v56 = vpop.f32.mrb[80].mxu0 }
 0x196   :  { %v5721_v59 = vpop.f32.mrb[81].mxu1  ;;  %v5797_v49 = vpop.f32.mrb[81].mxu0 }
 0x197   :  { %v5722_v4 = vadd.f32 %v5721_v59, %v5720_v55  ;;  %v5798_v7 = vadd.f32 %v5797_v49, %v5796_v56  ;;  %v5723_v29 = vpop.f32.mrb[82].mxu1  ;;  %v5799_v50 = vpop.f32.mrb[82].mxu0  ;;  %v6983_v49 = vld [vmem:[%s8991_s1 + $0x580] sm:$0xff]  }
 0x198   :  { %v5724_v9 = vpop.f32.mrb[83].mxu1  ;;  %v5800_v10 = vpop.f32.mrb[83].mxu0 }
 0x199   :  { %v3485_v31 = vadd.f32 %v5722_v4, %v8101_v63  ;;  %v8376_v53 = vadd.f32 %v5798_v7, %v3477_v40  ;;  %v5725_v30 = vadd.f32 %v5724_v9, %v5723_v29  ;;  %v5801_v11 = vadd.f32 %v5800_v10, %v5799_v50  ;;  %v6969_v63 = vld [vmem:[%s8992_s0 + $0x768] ss:$92 sps:$4 sm:$0xff]   ;;  %v6990_v7 = vld [vmem:[%s8992_s0 + $0x54] ss:$92 sps:$4 sm:$0xff]  }
 0x19a   :  { %4007 = vmatmul.mubr.bf16.gmra.mrb[188].mxu1 %v6957_v45  ;;  %4120 = vmatmul.mubr.bf16.gmra.mrb[188].mxu0 %v6958_v0  ;;  %v6986_v45 = vld [vmem:[%s8992_s0 + $0x104] ss:$92 sps:$4 sm:$0xff]  }
 0x19b   :  { %v3488_v12 = vadd.f32 %v5725_v30, %v8103_v15  ;;  %v8379_v61 = vadd.f32 %v5801_v11, %v3480_v48  ;;  %4014 = vmatprep.mubr.bf16.mxu1 %v6965_v51  ;;  %4127 = vmatprep.mubr.bf16.mxu0 %v6967_v54  ;;  %v6980_v48 = vld [vmem:[%s8992_s0 + $0x770] ss:$92 sps:$4 sm:$0xff]  }
 0x19d   :  { %v5726_v16 = vpop.f32.mrb[84].mxu1  ;;  %v5802_v58 = vpop.f32.mrb[84].mxu0 }
 0x19e   :  { %v5727_v21 = vpop.f32.mrb[85].mxu1  ;;  %v5803_v17 = vpop.f32.mrb[85].mxu0 }
 0x19f   :  { %v5728_v26 = vadd.f32 %v5727_v21, %v5726_v16  ;;  %v5804_v32 = vadd.f32 %v5803_v17, %v5802_v58  ;;  %v5729_v33 = vpop.f32.mrb[86].mxu1  ;;  %v5805_v15 = vpop.f32.mrb[86].mxu0  ;;  %v6988_v16 = vld [vmem:[%s8992_s0 + $0x50] ss:$92 sps:$4 sm:$0xff]  }
 0x1a0   :  { %v5730_v38 = vpop.f32.mrb[87].mxu1  ;;  %v5806_v39 = vpop.f32.mrb[87].mxu0 }
 0x1a1   :  { %v3493_v3 = vadd.f32 %v5728_v26, %v8127_v23  ;;  %v8394_v19 = vadd.f32 %v5804_v32, %v3485_v31  ;;  %v5731_v18 = vadd.f32 %v5730_v38, %v5729_v33  ;;  %v5807_v41 = vadd.f32 %v5806_v39, %v5805_v15  ;;  %v6977_v23 = vld [vmem:[%s8992_s0 + $0x48] ss:$92 sps:$4 sm:$0xff]   ;;  %v7005_v15 = vld [vmem:[%s8991_s1 + $0x590] sm:$0xff]  }
 0x1a2   :  { %4015 = vmatmul.mubr.bf16.gmra.mrb[192].mxu1 %v6969_v63  ;;  %4128 = vmatmul.mubr.bf16.gmra.mrb[192].mxu0 %v6970_v20  ;;  %v6992_v31 = vld [vmem:[%s8991_s1 + $0x588] sm:$0xff]   ;;  %v6993_v20 = vld [vmem:[%s8992_s0 + $0x1bc] ss:$92 sps:$4 sm:$0xff]  }
 0x1a3   :  { %v3496_v22 = vadd.f32 %v5731_v18, %v8132_v47  ;;  %v8397_v42 = vadd.f32 %v5807_v41, %v3488_v12  ;;  %4135 = vmatprep.mubr.bf16.mxu0 %v6975_v1  ;;  %4176 = vmatprep.mubr.bf16.mxu1 %v6979_v14  ;;  %v6995_v26 = vld [vmem:[%s8992_s0 + $0x10c] ss:$92 sps:$4 sm:$0xff]   ;;  %v7016_v41 = vld [vmem:[%s8991_s1 + $0x598] sm:$0xff]  }
 0x1a5   :  { %v5732_v43 = vpop.f32.mrb[88].mxu1  ;;  %v5808_v40 = vpop.f32.mrb[88].mxu0 }
 0x1a6   :  { %v5733_v46 = vpop.f32.mrb[89].mxu1  ;;  %v5809_v44 = vpop.f32.mrb[89].mxu0 }
 0x1a7   :  { %v5734_v55 = vadd.f32 %v5733_v46, %v5732_v43  ;;  %v5810_v56 = vadd.f32 %v5809_v44, %v5808_v40  ;;  %v5735_v59 = vpop.f32.mrb[90].mxu1  ;;  %v5811_v47 = vpop.f32.mrb[90].mxu0  ;;  %v6997_v46 = vld [vmem:[%s8992_s0 + $0x1b8] ss:$92 sps:$4 sm:$0xff]  }
 0x1a8   :  { %v5736_v0 = vpop.f32.mrb[91].mxu1  ;;  %v5812_v4 = vpop.f32.mrb[91].mxu0 }
 0x1a9   :  { %v3501_v29 = vadd.f32 %v5734_v55, %v8159_v13  ;;  %v8415_v50 = vadd.f32 %v5810_v56, %v3493_v3  ;;  %v5737_v51 = vadd.f32 %v5736_v0, %v5735_v59  ;;  %v5813_v54 = vadd.f32 %v5812_v4, %v5811_v47  ;;  %v6999_v56 = vld [vmem:[%s8992_s0 + $0x274] ss:$92 sps:$4 sm:$0xff]   ;;  %v7001_v59 = vld [vmem:[%s8992_s0 + $0x1c4] ss:$92 sps:$4 sm:$0xff]  }
 0x1aa   :  { %4136 = vmatmul.mubr.bf16.gmra.mrb[196].mxu0 %v6980_v48  ;;  %4177 = vmatmul.mubr.bf16.vlgmr.msra.gmra.mrb[196].mxu1 %v6977_v23 }
 0x1ab   :  { %v3504_v9 = vadd.f32 %v5737_v51, %v8173_v24  ;;  %v8418_v10 = vadd.f32 %v5813_v54, %v3496_v22  ;;  %6374 = vmatpush3.bf16.msra.mxu1 %v6983_v49  ;;  %4184 = vmatprep.mubr.bf16.mxu1 %v6986_v45  ;;  %v6991_v24 = vld [vmem:[%s8992_s0 + $0x100] ss:$92 sps:$4 sm:$0xff]  }
 0x1ac   :  { %4297 = vmatprep.mubr.bf16.mxu0 %v6990_v7  ;;  %6375 = vmatprep.subr.bf16.mxu1 %v7074_v36  ;;  %v7025_v45 = vld [vmem:[%s8991_s1 + $0x5a0] sm:$0xff]  }
 0x1ad   :  { %v5738_v13 = vpop.f32.mrb[92].mxu1  ;;  %v5814_v30 = vpop.f32.mrb[92].mxu0 }
 0x1ae   :  { %v5739_v11 = vpop.f32.mrb[93].mxu1  ;;  %v5815_v12 = vpop.f32.mrb[93].mxu0 }
 0x1af   :  { %v5740_v58 = vadd.f32 %v5739_v11, %v5738_v13  ;;  %v5816_v21 = vadd.f32 %v5815_v12, %v5814_v30  ;;  %v5741_v17 = vpop.f32.mrb[94].mxu1  ;;  %v5817_v63 = vpop.f32.mrb[94].mxu0  ;;  %6376 = vmatpush3.bf16.msra.mxu1 %v6992_v31  ;;  %v7003_v11 = vld [vmem:[%s8992_s0 + $0x270] ss:$92 sps:$4 sm:$0xff]   ;;  %v7004_v12 = vld [vmem:[%s8992_s0 + $0x1c0] ss:$92 sps:$4 sm:$0xff]  }
 0x1b0   :  { %v5742_v32 = vpop.f32.mrb[95].mxu1  ;;  %v5818_v33 = vpop.f32.mrb[95].mxu0  ;;  %6377 = vmatprep.subr.bf16.mxu1 %v7074_v36 }
 0x1b1   :  { %v3509_v1 = vadd.f32 %v5740_v58, %v8197_v52  ;;  %v8441_v14 = vadd.f32 %v5816_v21, %v3501_v29  ;;  %v5743_v38 = vadd.f32 %v5742_v32, %v5741_v17  ;;  %v5819_v39 = vadd.f32 %v5818_v33, %v5817_v63  ;;  %v7006_v17 = vld [vmem:[%s8992_s0 + $0x32c] ss:$92 sps:$4 sm:$0xff]   ;;  %v7008_v63 = vld [vmem:[%s8992_s0 + $0x27c] ss:$92 sps:$4 sm:$0xff]  }
 0x1b2   :  { %4185 = vmatmul.mubr.bf16.gmra.mrb[200].mxu1 %v6991_v24  ;;  %4298 = vmatmul.mubr.bf16.vlgmr.msra.gmra.mrb[200].mxu0 %v6988_v16 }
 0x1b3   :  { %v3512_v3 = vadd.f32 %v5743_v38, %v8209_v60  ;;  %v8444_v18 = vadd.f32 %v5819_v39, %v3504_v9  ;;  %4192 = vmatprep.mubr.bf16.mxu1 %v6993_v20  ;;  %4305 = vmatprep.mubr.bf16.mxu0 %v6995_v26  ;;  %v6998_v60 = vld [vmem:[%s8992_s0 + $0x108] ss:$92 sps:$4 sm:$0xff]  }
 0x1b4   :  { %6378 = vmatpush3.bf16.msra.mxu1 %v7005_v15  ;;  %v7038_v9 = vld [vmem:[%s8991_s1 + $0x5a8] sm:$0xff]  }
 0x1b5   :  { %v5744_v22 = vpop.f32.mrb[96].mxu1  ;;  %v5820_v43 = vpop.f32.mrb[96].mxu0  ;;  %6379 = vmatprep.subr.bf16.mxu1 %v7074_v36 }
 0x1b6   :  { %v5745_v52 = vpop.f32.mrb[97].mxu1  ;;  %v5821_v40 = vpop.f32.mrb[97].mxu0 }
 0x1b7   :  { %v5746_v44 = vadd.f32 %v5745_v52, %v5744_v22  ;;  %v5822_v23 = vadd.f32 %v5821_v40, %v5820_v43  ;;  %v5747_v48 = vpop.f32.mrb[98].mxu1  ;;  %v5823_v55 = vpop.f32.mrb[98].mxu0  ;;  %v7011_v40 = vld [vmem:[%s8992_s0 + $0x278] ss:$92 sps:$4 sm:$0xff]  }
 0x1b8   :  { %v5748_v47 = vpop.f32.mrb[99].mxu1  ;;  %v5824_v49 = vpop.f32.mrb[99].mxu0  ;;  %6380 = vmatpush3.bf16.msra.mxu1 %v7016_v41 }
 0x1b9   :  { %v3517_v0 = vadd.f32 %v5746_v44, %v8236_v62  ;;  %v8466_v4 = vadd.f32 %v5822_v23, %v3509_v1  ;;  %v5749_v7 = vadd.f32 %v5748_v47, %v5747_v48  ;;  %v5825_v29 = vadd.f32 %v5824_v49, %v5823_v55  ;;  %6381 = vmatprep.subr.bf16.mxu1 %v7074_v36  ;;  %v7045_v62 = vld [vmem:[%s8991_s1 + $0x5b0] ss:$0 sps:$4 sm:$0x33]   ;;  %v7012_v23 = vld [vmem:[%s8992_s0 + $0x3e4] ss:$92 sps:$4 sm:$0xff]  }
 0x1ba   :  { %4193 = vmatmul.mubr.bf16.gmra.mrb[204].mxu1 %v6997_v46  ;;  %4306 = vmatmul.mubr.bf16.gmra.mrb[204].mxu0 %v6998_v60  ;;  %v3053_v32 = vsel %vm3051_vm0, %v7045_v62, 0  ;;  %v7014_v48 = vld [vmem:[%s8992_s0 + $0x334] ss:$92 sps:$4 sm:$0xff]  }
 0x1bb   :  { %v3520_v51 = vadd.f32 %v5749_v7, %v8245_v35  ;;  %v8470_v54 = vadd.f32 %v5825_v29, %v3512_v3  ;;  %4200 = vmatprep.mubr.bf16.mxu1 %v6999_v56  ;;  %4313 = vmatprep.mubr.bf16.mxu0 %v7001_v59 }
 0x1bc   :  { %6382 = vmatpush3.bf16.msra.mxu1 %v7025_v45 }
 0x1bd   :  { %v5750_v31 = vpop.f32.mrb[100].mxu1  ;;  %v5826_v13 = vpop.f32.mrb[100].mxu0  ;;  %6383 = vmatprep.subr.bf16.mxu1 %v7074_v36 }
 0x1be   :  { %v5751_v30 = vpop.f32.mrb[101].mxu1  ;;  %v5827_v35 = vpop.f32.mrb[101].mxu0 }
 0x1bf   :  { %v5752_v16 = vadd.f32 %v5751_v30, %v5750_v31  ;;  %v5828_v24 = vadd.f32 %v5827_v35, %v5826_v13  ;;  %v5753_v58 = vpop.f32.mrb[102].mxu1  ;;  %v5829_v21 = vpop.f32.mrb[102].mxu0  ;;  %v7018_v31 = vld [vmem:[%s8992_s0 + $0x330] ss:$92 sps:$4 sm:$0xff]  }
 0x1c0   :  { %v5754_v20 = vpop.f32.mrb[103].mxu1  ;;  %v5830_v26 = vpop.f32.mrb[103].mxu0  ;;  %6384 = vmatpush3.bf16.msra.mxu1 %v7038_v9 }
 0x1c1   :  { %v3525_v33 = vadd.f32 %v5752_v16, %v8272_v34  ;;  %v8492_v15 = vadd.f32 %v5828_v24, %v3517_v0  ;;  %v5755_v1 = vadd.f32 %v5754_v20, %v5753_v58  ;;  %v5831_v38 = vadd.f32 %v5830_v26, %v5829_v21  ;;  %6385 = vmatprep.subr.bf16.mxu1 %v7074_v36  ;;  %v7010_v34 = vld [vmem:[%s8992_s0 + $0x328] ss:$92 sps:$4 sm:$0xff]  }
 0x1c2   :  { %4201 = vmatmul.mubr.bf16.gmra.mrb[208].mxu1 %v7003_v11  ;;  %4314 = vmatmul.mubr.bf16.gmra.mrb[208].mxu0 %v7004_v12  ;;  %v7019_v11 = vld [vmem:[%s8992_s0 + $0x49c] ss:$92 sps:$4 sm:$0xff]   ;;  %v7021_v12 = vld [vmem:[%s8992_s0 + $0x3ec] ss:$92 sps:$4 sm:$0xff]  }
 0x1c3   :  { %v3528_v39 = vadd.f32 %v5755_v1, %v8278_v8  ;;  %v8496_v3 = vadd.f32 %v5831_v38, %v3520_v51  ;;  %4208 = vmatprep.mubr.bf16.mxu1 %v7006_v17  ;;  %4321 = vmatprep.mubr.bf16.mxu0 %v7008_v63 }
 0x1c4   :  { %6386 = vmatpush3.bf16.msra.mxu1 %v3053_v32 }
 0x1c5   :  { %v5756_v41 = vpop.f32.mrb[104].mxu1  ;;  %v5832_v22 = vpop.f32.mrb[104].mxu0 }
 0x1c6   :  { %v5757_v43 = vpop.f32.mrb[105].mxu1  ;;  %v5833_v52 = vpop.f32.mrb[105].mxu0 }
 0x1c7   :  { %v5758_v46 = vadd.f32 %v5757_v43, %v5756_v41  ;;  %v5834_v60 = vadd.f32 %v5833_v52, %v5832_v22  ;;  %v5759_v8 = vpop.f32.mrb[106].mxu1  ;;  %v5835_v44 = vpop.f32.mrb[106].mxu0 }
 0x1c8   :  { %v5760_v55 = vpop.f32.mrb[107].mxu1  ;;  %v5836_v56 = vpop.f32.mrb[107].mxu0 }
 0x1c9   :  { %v3533_v59 = vadd.f32 %v5758_v46, %v8302_v28  ;;  %v8511_v47 = vadd.f32 %v5834_v60, %v3525_v33  ;;  %v5761_v49 = vadd.f32 %v5760_v55, %v5759_v8  ;;  %v5837_v45 = vadd.f32 %v5836_v56, %v5835_v44  ;;  %v7017_v28 = vld [vmem:[%s8992_s0 + $0x3e0] ss:$92 sps:$4 sm:$0xff]  }
 0x1ca   :  { %4209 = vmatmul.mubr.bf16.gmra.mrb[212].mxu1 %v7010_v34  ;;  %4322 = vmatmul.mubr.bf16.gmra.mrb[212].mxu0 %v7011_v40  ;;  %v7028_v34 = vld [vmem:[%s8992_s0 + $0x4a4] ss:$92 sps:$4 sm:$0xff]  }
 0x1cb   :  { %v3536_v0 = vadd.f32 %v5761_v49, %v8305_v37  ;;  %v8514_v7 = vadd.f32 %v5837_v45, %v3528_v39  ;;  %4216 = vmatprep.mubr.bf16.mxu1 %v7012_v23  ;;  %4329 = vmatprep.mubr.bf16.mxu0 %v7014_v48  ;;  %v7023_v39 = vld [vmem:[%s8992_s0 + $0x498] ss:$92 sps:$4 sm:$0xff]  }
 0x1cd   :  { %v5838_v29 = vpop.f32.mrb[108].mxu0  ;;  %v5860_v51 = vpop.f32.mrb[108].mxu1 }
 0x1ce   :  { %v5839_v9 = vpop.f32.mrb[109].mxu0  ;;  %v5861_v62 = vpop.f32.mrb[109].mxu1 }
 0x1cf   :  { %v5840_v13 = vadd.f32 %v5839_v9, %v5838_v29  ;;  %v5862_v30 = vadd.f32 %v5861_v62, %v5860_v51  ;;  %v5841_v35 = vpop.f32.mrb[110].mxu0  ;;  %v5863_v37 = vpop.f32.mrb[110].mxu1  ;;  %v7032_v62 = vld [vmem:[%s8992_s0 + $0x60c] ss:$92 sps:$4 sm:$0xff]  }
 0x1d0   :  { %v5842_v16 = vpop.f32.mrb[111].mxu0  ;;  %v5864_v24 = vpop.f32.mrb[111].mxu1 }
 0x1d1   :  { %v8528_v58 = vadd.f32 %v5840_v13, %v3533_v59  ;;  %v3695_v21 = vadd.f32 %v5862_v30, %v8322_v57  ;;  %v5843_v17 = vadd.f32 %v5842_v16, %v5841_v35  ;;  %v5865_v63 = vadd.f32 %v5864_v24, %v5863_v37  ;;  %v7024_v57 = vld [vmem:[%s8992_s0 + $0x3e8] ss:$92 sps:$4 sm:$0xff]  }
 0x1d2   :  { %4217 = vmatmul.mubr.bf16.gmra.mrb[216].mxu1 %v7017_v28  ;;  %4330 = vmatmul.mubr.bf16.gmra.mrb[216].mxu0 %v7018_v31  ;;  %v7034_v28 = vld [vmem:[%s8992_s0 + $0x55c] ss:$92 sps:$4 sm:$0xff]  }
 0x1d3   :  { %v8531_v20 = vadd.f32 %v5843_v17, %v3536_v0  ;;  %v3698_v26 = vadd.f32 %v5865_v63, %v8325_v2  ;;  %4224 = vmatprep.mubr.bf16.mxu1 %v7019_v11  ;;  %4337 = vmatprep.mubr.bf16.mxu0 %v7021_v12  ;;  %v7026_v2 = vld [vmem:[%s8992_s0 + $0x554] ss:$92 sps:$4 sm:$0xff]   ;;  %v7031_v0 = vld [vmem:[%s8992_s0 + $0x4a0] ss:$92 sps:$4 sm:$0xff]  }
 0x1d5   :  { %v5866_v32 = vpop.f32.mrb[112].mxu1  ;;  %v5942_v33 = vpop.f32.mrb[112].mxu0 }
 0x1d6   :  { %v5867_v1 = vpop.f32.mrb[113].mxu1  ;;  %v5943_v38 = vpop.f32.mrb[113].mxu0 }
 0x1d7   :  { %v5868_v41 = vadd.f32 %v5867_v1, %v5866_v32  ;;  %v5944_v22 = vadd.f32 %v5943_v38, %v5942_v33  ;;  %v5869_v43 = vpop.f32.mrb[114].mxu1  ;;  %v5945_v52 = vpop.f32.mrb[114].mxu0  ;;  %v7039_v38 = vld [vmem:[%s8992_s0 + $0x6c4] ss:$92 sps:$4 sm:$0xff]  }
 0x1d8   :  { %v5870_v40 = vpop.f32.mrb[115].mxu1  ;;  %v5946_v46 = vpop.f32.mrb[115].mxu0 }
 0x1d9   :  { %v3703_v60 = vadd.f32 %v5868_v41, %v8340_v5  ;;  %v8547_v8 = vadd.f32 %v5944_v22, %v3695_v21  ;;  %v5871_v44 = vadd.f32 %v5870_v40, %v5869_v43  ;;  %v5947_v23 = vadd.f32 %v5946_v46, %v5945_v52  ;;  %v7030_v5 = vld [vmem:[%s8992_s0 + $0x550] ss:$92 sps:$4 sm:$0xff]  }
 0x1da   :  { %4225 = vmatmul.mubr.bf16.gmra.mrb[220].mxu1 %v7023_v39  ;;  %4338 = vmatmul.mubr.bf16.gmra.mrb[220].mxu0 %v7024_v57  ;;  %v7041_v39 = vld [vmem:[%s8992_s0 + $0x614] ss:$92 sps:$4 sm:$0xff]  }
 0x1db   :  { %v3706_v48 = vadd.f32 %v5871_v44, %v8343_v25  ;;  %v8550_v55 = vadd.f32 %v5947_v23, %v3698_v26  ;;  %4232 = vmatprep.mubr.bf16.mxu1 %v7026_v2  ;;  %4345 = vmatprep.mubr.bf16.mxu0 %v7028_v34  ;;  %v7037_v26 = vld [vmem:[%s8992_s0 + $0x558] ss:$92 sps:$4 sm:$0xff]  }
 0x1dd   :  { %v5872_v56 = vpop.f32.mrb[116].mxu1  ;;  %v5948_v59 = vpop.f32.mrb[116].mxu0 }
 0x1de   :  { %v5873_v49 = vpop.f32.mrb[117].mxu1  ;;  %v5949_v45 = vpop.f32.mrb[117].mxu0 }
 0x1df   :  { %v5874_v29 = vadd.f32 %v5873_v49, %v5872_v56  ;;  %v5950_v51 = vadd.f32 %v5949_v45, %v5948_v59  ;;  %v5875_v9 = vpop.f32.mrb[118].mxu1  ;;  %v5951_v25 = vpop.f32.mrb[118].mxu0  ;;  %v7046_v45 = vld [vmem:[%s8992_s0 + $0x77c] ss:$92 sps:$4 sm:$0xff]  }
 0x1e0   :  { %v5876_v31 = vpop.f32.mrb[119].mxu1  ;;  %v5952_v13 = vpop.f32.mrb[119].mxu0 }
 0x1e1   :  { %v3711_v30 = vadd.f32 %v5874_v29, %v8358_v6  ;;  %v8565_v35 = vadd.f32 %v5950_v51, %v3703_v60  ;;  %v5877_v37 = vadd.f32 %v5876_v31, %v5875_v9  ;;  %v5953_v11 = vadd.f32 %v5952_v13, %v5951_v25  ;;  %v7036_v6 = vld [vmem:[%s8992_s0 + $0x608] ss:$92 sps:$4 sm:$0xff]  }
 0x1e2   :  { %4233 = vmatmul.mubr.bf16.gmra.mrb[224].mxu1 %v7030_v5  ;;  %4346 = vmatmul.mubr.bf16.gmra.mrb[224].mxu0 %v7031_v0  ;;  %v7048_v5 = vld [vmem:[%s8992_s0 + $0x6cc] ss:$92 sps:$4 sm:$0xff]  }
 0x1e3   :  { %v3714_v12 = vadd.f32 %v5877_v37, %v8361_v27  ;;  %v8568_v16 = vadd.f32 %v5953_v11, %v3706_v48  ;;  %4240 = vmatprep.mubr.bf16.mxu1 %v7032_v62  ;;  %4353 = vmatprep.mubr.bf16.mxu0 %v7034_v28  ;;  %v7044_v48 = vld [vmem:[%s8992_s0 + $0x610] ss:$92 sps:$4 sm:$0xff]  }
 0x1e5   :  { %v5878_v24 = vpop.f32.mrb[120].mxu1  ;;  %v5954_v21 = vpop.f32.mrb[120].mxu0 }
 0x1e6   :  { %v5879_v17 = vpop.f32.mrb[121].mxu1  ;;  %v5955_v63 = vpop.f32.mrb[121].mxu0 }
 0x1e7   :  { %v5880_v32 = vadd.f32 %v5879_v17, %v5878_v24  ;;  %v5956_v33 = vadd.f32 %v5955_v63, %v5954_v21  ;;  %v5881_v1 = vpop.f32.mrb[122].mxu1  ;;  %v5957_v27 = vpop.f32.mrb[122].mxu0  ;;  %v7052_v63 = vld [vmem:[%s8992_s0 + $0x784] ss:$92 sps:$4 sm:$0xff]  }
 0x1e8   :  { %v5882_v57 = vpop.f32.mrb[123].mxu1  ;;  %v5958_v41 = vpop.f32.mrb[123].mxu0 }
 0x1e9   :  { %v3719_v22 = vadd.f32 %v5880_v32, %v8376_v53  ;;  %v8583_v43 = vadd.f32 %v5956_v33, %v3711_v30  ;;  %v5883_v52 = vadd.f32 %v5882_v57, %v5881_v1  ;;  %v5959_v2 = vadd.f32 %v5958_v41, %v5957_v27  ;;  %v7043_v53 = vld [vmem:[%s8992_s0 + $0x6c0] ss:$92 sps:$4 sm:$0xff]  }
 0x1ea   :  { %4241 = vmatmul.mubr.bf16.gmra.mrb[228].mxu1 %v7036_v6  ;;  %4354 = vmatmul.mubr.bf16.gmra.mrb[228].mxu0 %v7037_v26 }
 0x1eb   :  { %v3722_v34 = vadd.f32 %v5883_v52, %v8379_v61  ;;  %v8586_v40 = vadd.f32 %v5959_v2, %v3714_v12  ;;  %4248 = vmatprep.mubr.bf16.mxu1 %v7039_v38  ;;  %4361 = vmatprep.mubr.bf16.mxu0 %v7041_v39  ;;  %v7051_v12 = vld [vmem:[%s8992_s0 + $0x6c8] ss:$92 sps:$4 sm:$0xff]   ;;  %v7055_v2 = vld [vmem:[%s8992_s0 + $0x58] ss:$92 sps:$4 sm:$0xff]  }
 0x1ed   :  { %v5884_v46 = vpop.f32.mrb[124].mxu1  ;;  %v5960_v60 = vpop.f32.mrb[124].mxu0 }
 0x1ee   :  { %v5885_v44 = vpop.f32.mrb[125].mxu1  ;;  %v5961_v23 = vpop.f32.mrb[125].mxu0 }
 0x1ef   :  { %v5886_v56 = vadd.f32 %v5885_v44, %v5884_v46  ;;  %v5962_v59 = vadd.f32 %v5961_v23, %v5960_v60  ;;  %v5887_v49 = vpop.f32.mrb[126].mxu1  ;;  %v5963_v61 = vpop.f32.mrb[126].mxu0 }
 0x1f0   :  { %v5888_v0 = vpop.f32.mrb[127].mxu1  ;;  %v5964_v29 = vpop.f32.mrb[127].mxu0 }
 0x1f1   :  { %v3727_v51 = vadd.f32 %v5886_v56, %v8394_v19  ;;  %v8601_v9 = vadd.f32 %v5962_v59, %v3719_v22  ;;  %v5889_v25 = vadd.f32 %v5888_v0, %v5887_v49  ;;  %v5965_v62 = vadd.f32 %v5964_v29, %v5963_v61  ;;  %v7050_v19 = vld [vmem:[%s8992_s0 + $0x778] ss:$92 sps:$4 sm:$0xff]   ;;  %v7056_v29 = vld [vmem:[%s8992_s0 + $0x110] ss:$92 sps:$4 sm:$0xff]  }
 0x1f2   :  { %4249 = vmatmul.mubr.bf16.gmra.mrb[232].mxu1 %v7043_v53  ;;  %4362 = vmatmul.mubr.bf16.gmra.mrb[232].mxu0 %v7044_v48 }
 0x1f3   :  { %v3730_v28 = vadd.f32 %v5889_v25, %v8397_v42  ;;  %v8604_v31 = vadd.f32 %v5965_v62, %v3722_v34  ;;  %4256 = vmatprep.mubr.bf16.mxu1 %v7046_v45  ;;  %4369 = vmatprep.mubr.bf16.mxu0 %v7048_v5 }
 0x1f5   :  { %v5890_v13 = vpop.f32.mrb[128].mxu1  ;;  %v5966_v30 = vpop.f32.mrb[128].mxu0 }
 0x1f6   :  { %v5891_v37 = vpop.f32.mrb[129].mxu1  ;;  %v5967_v11 = vpop.f32.mrb[129].mxu0 }
 0x1f7   :  { %v5892_v24 = vadd.f32 %v5891_v37, %v5890_v13  ;;  %v5968_v21 = vadd.f32 %v5967_v11, %v5966_v30  ;;  %v5893_v17 = vpop.f32.mrb[130].mxu1  ;;  %v5969_v42 = vpop.f32.mrb[130].mxu0 }
 0x1f8   :  { %v5894_v6 = vpop.f32.mrb[131].mxu1  ;;  %v5970_v26 = vpop.f32.mrb[131].mxu0 }
 0x1f9   :  { %v3735_v32 = vadd.f32 %v5892_v24, %v8415_v50  ;;  %v8616_v33 = vadd.f32 %v5968_v21, %v3727_v51  ;;  %v5895_v1 = vadd.f32 %v5894_v6, %v5893_v17  ;;  %v5971_v27 = vadd.f32 %v5970_v26, %v5969_v42  ;;  %v7054_v50 = vld [vmem:[%s8992_s0 + $0x780] ss:$92 sps:$4 sm:$0xff]  }
 0x1fa   :  { %4257 = vmatmul.mubr.bf16.gmra.mrb[236].mxu1 %v7050_v19  ;;  %4370 = vmatmul.mubr.bf16.gmra.mrb[236].mxu0 %v7051_v12  ;;  %v7066_v12 = vld [vmem:[%s8994_s3] sm:$0xff]  }
 0x1fb   :  { %v3738_v38 = vadd.f32 %v5895_v1, %v8418_v10  ;;  %v8619_v39 = vadd.f32 %v5971_v27, %v3730_v28  ;;  %4377 = vmatprep.mubr.bf16.mxu0 %v7052_v63  ;;  %6387 = vmatprep.mubr.msk.bf16.mxu1 %vm7075_vm1, %v7074_v36 }
 0x1fc   :  { %6432 = vmatpush3.bf16.msra.mxu0 %v7066_v12 }
 0x1fd   :  { %v5896_v57 = vpop.f32.mrb[132].mxu1  ;;  %v5972_v41 = vpop.f32.mrb[132].mxu0  ;;  %6433 = vmatprep.subr.bf16.mxu0 %v7074_v36 }
 0x1fe   :  { %v5897_v22 = vpop.f32.mrb[133].mxu1  ;;  %v5973_v52 = vpop.f32.mrb[133].mxu0 }
 0x1ff   :  { %v5898_v10 = vadd.f32 %v5897_v22, %v5896_v57  ;;  %v5974_v34 = vadd.f32 %v5973_v52, %v5972_v41  ;;  %v5899_v46 = vpop.f32.mrb[134].mxu1  ;;  %v5975_v60 = vpop.f32.mrb[134].mxu0 }
 0x200   :  { %v5900_v44 = vpop.f32.mrb[135].mxu1  ;;  %v5976_v23 = vpop.f32.mrb[135].mxu0 }
 0x201   :  { %v3743_v53 = vadd.f32 %v5898_v10, %v8441_v14  ;;  %v8630_v48 = vadd.f32 %v5974_v34, %v3735_v32  ;;  %v5901_v56 = vadd.f32 %v5900_v44, %v5899_v46  ;;  %v5977_v59 = vadd.f32 %v5976_v23, %v5975_v60  ;;  %v7067_v10 = vld [vmem:[%s8994_s3 + $0x8] sm:$0xff]   ;;  %v7058_v44 = vld [vmem:[%s8992_s0 + $0x280] ss:$92 sps:$4 sm:$0xff]  }
 0x202   :  { %4378 = vmatmul.mubr.bf16.gmra.mrb[240].mxu0 %v7054_v50  ;;  %6388 = vmatmul.mubr.msk.bf16.vlgmr.msra.gmra.mrb[240].mxu1 %vm3017_vm2, %v7055_v2 }
 0x203   :  { %v3746_v49 = vadd.f32 %v5901_v56, %v8444_v18  ;;  %v8634_v61 = vadd.f32 %v5977_v59, %v3738_v38  ;;  %6391 = vmatprep.mubr.msk.bf16.mxu1 %vm7075_vm1, %v7074_v36  ;;  %6447 = vmatprep.mubr.msk.bf16.mxu0 %vm7075_vm1, %v7074_v36 }
 0x204   :  { %6434 = vmatpush3.bf16.msra.mxu0 %v7067_v10 }
 0x205   :  { %v5902_v45 = vpop.f32.mrb[136].mxu1  ;;  %v5978_v5 = vpop.f32.mrb[136].mxu0  ;;  %6435 = vmatprep.subr.bf16.mxu0 %v7074_v36 }
 0x206   :  { %v5903_v14 = vpop.f32.mrb[137].mxu1  ;;  %v5979_v0 = vpop.f32.mrb[137].mxu0 }
 0x207   :  { %v5904_v51 = vadd.f32 %v5903_v14, %v5902_v45  ;;  %v5980_v25 = vadd.f32 %v5979_v0, %v5978_v5  ;;  %v5905_v62 = vpop.f32.mrb[138].mxu1  ;;  %v5981_v18 = vpop.f32.mrb[138].mxu0 }
 0x208   :  { %v5906_v28 = vpop.f32.mrb[139].mxu1  ;;  %v5982_v13 = vpop.f32.mrb[139].mxu0 }
 0x209   :  { %v3751_v30 = vadd.f32 %v5904_v51, %v8466_v4  ;;  %v8644_v37 = vadd.f32 %v5980_v25, %v3743_v53  ;;  %v5907_v11 = vadd.f32 %v5906_v28, %v5905_v62  ;;  %v5983_v19 = vadd.f32 %v5982_v13, %v5981_v18  ;;  %v7057_v4 = vld [vmem:[%s8992_s0 + $0x1c8] ss:$92 sps:$4 sm:$0xff]   ;;  %v7068_v18 = vld [vmem:[%s8994_s3 + $0x10] sm:$0xff]  }
 0x20a   :  { %6392 = vmatmul.mubr.msk.bf16.gmra.mrb[244].mxu1 %vm3017_vm2, %v7056_v29  ;;  %v7059_v13 = vld [vmem:[%s8992_s0 + $0x338] ss:$92 sps:$4 sm:$0xff]   ;;  %6436 = vmatpush3.bf16.msra.mxu0 %v7068_v18 }
 0x20b   :  { %v3754_v24 = vadd.f32 %v5907_v11, %v8470_v54  ;;  %v8651_v21 = vadd.f32 %v5983_v19, %v3746_v49  ;;  %6395 = vmatprep.mubr.msk.bf16.mxu1 %vm7075_vm1, %v7074_v36  ;;  %6437 = vmatprep.subr.bf16.mxu0 %v7074_v36 }
 0x20d   :  { %v5908_v17 = vpop.f32.mrb[140].mxu1  ;;  %v5984_v42 = vpop.f32.mrb[140].mxu0 }
 0x20e   :  { %v5909_v63 = vpop.f32.mrb[141].mxu1  ;;  %v5985_v6 = vpop.f32.mrb[141].mxu0 }
 0x20f   :  { %v5910_v26 = vadd.f32 %v5909_v63, %v5908_v17  ;;  %v5986_v32 = vadd.f32 %v5985_v6, %v5984_v42  ;;  %v5911_v1 = vpop.f32.mrb[142].mxu1  ;;  %v5987_v54 = vpop.f32.mrb[142].mxu0 }
 0x210   :  { %v5912_v27 = vpop.f32.mrb[143].mxu1  ;;  %v5988_v38 = vpop.f32.mrb[143].mxu0 }
 0x211   :  { %v3759_v57 = vadd.f32 %v5910_v26, %v8492_v15  ;;  %v8660_v41 = vadd.f32 %v5986_v32, %v3751_v30  ;;  %v5913_v22 = vadd.f32 %v5912_v27, %v5911_v1  ;;  %v5989_v52 = vadd.f32 %v5988_v38, %v5987_v54 }
 0x212   :  { %6396 = vmatmul.mubr.msk.bf16.gmra.mrb[248].mxu1 %vm3017_vm2, %v7057_v4 }
 0x213   :  { %v3762_v50 = vadd.f32 %v5913_v22, %v8496_v3  ;;  %v8664_v2 = vadd.f32 %v5989_v52, %v3754_v24  ;;  %6399 = vmatprep.mubr.msk.bf16.mxu1 %vm7075_vm1, %v7074_v36 }
 0x215   :  { %v5914_v34 = vpop.f32.mrb[144].mxu1  ;;  %v5990_v46 = vpop.f32.mrb[144].mxu0 }
 0x216   :  { %v5915_v15 = vpop.f32.mrb[145].mxu1  ;;  %v5991_v60 = vpop.f32.mrb[145].mxu0 }
 0x217   :  { %v5916_v3 = vadd.f32 %v5915_v15, %v5914_v34  ;;  %v5992_v23 = vadd.f32 %v5991_v60, %v5990_v46  ;;  %v5917_v53 = vpop.f32.mrb[146].mxu1  ;;  %v5993_v56 = vpop.f32.mrb[146].mxu0 }
 0x218   :  { %v5918_v59 = vpop.f32.mrb[147].mxu1  ;;  %v5994_v49 = vpop.f32.mrb[147].mxu0 }
 0x219   :  { %v3767_v45 = vadd.f32 %v5916_v3, %v8511_v47  ;;  %v8676_v5 = vadd.f32 %v5992_v23, %v3759_v57  ;;  %v5919_v14 = vadd.f32 %v5918_v59, %v5917_v53  ;;  %v5995_v0 = vadd.f32 %v5994_v49, %v5993_v56  ;;  %v7069_v3 = vld [vmem:[%s8994_s3 + $0x18] sm:$0xff]   ;;  %v7061_v59 = vld [vmem:[%s8992_s0 + $0x4a8] ss:$92 sps:$4 sm:$0xff]  }
 0x21a   :  { %6400 = vmatmul.mubr.msk.bf16.gmra.mrb[252].mxu1 %vm3017_vm2, %v7058_v44  ;;  %6438 = vmatpush3.bf16.msra.mxu0 %v7069_v3 }
 0x21b   :  { %v3770_v29 = vadd.f32 %v5919_v14, %v8514_v7  ;;  %v8680_v51 = vadd.f32 %v5995_v0, %v3762_v50  ;;  %6403 = vmatprep.mubr.msk.bf16.mxu1 %vm7075_vm1, %v7074_v36  ;;  %6439 = vmatprep.subr.bf16.mxu0 %v7074_v36 }
 0x21d   :  { %v5920_v25 = vpop.f32.mrb[148].mxu1  ;;  %v5996_v62 = vpop.f32.mrb[148].mxu0 }
 0x21e   :  { %v5921_v47 = vpop.f32.mrb[149].mxu1  ;;  %v5997_v28 = vpop.f32.mrb[149].mxu0 }
 0x21f   :  { %v5922_v30 = vadd.f32 %v5921_v47, %v5920_v25  ;;  %v5998_v11 = vadd.f32 %v5997_v28, %v5996_v62  ;;  %v5923_v7 = vpop.f32.mrb[150].mxu1  ;;  %v5999_v19 = vpop.f32.mrb[150].mxu0 }
 0x220   :  { %v5924_v12 = vpop.f32.mrb[151].mxu1  ;;  %v6000_v24 = vpop.f32.mrb[151].mxu0 }
 0x221   :  { %v3775_v4 = vadd.f32 %v5922_v30, %v8528_v58  ;;  %v8692_v17 = vadd.f32 %v5998_v11, %v3767_v45  ;;  %v5925_v42 = vadd.f32 %v5924_v12, %v5923_v7  ;;  %v6001_v63 = vadd.f32 %v6000_v24, %v5999_v19  ;;  %v7060_v58 = vld [vmem:[%s8992_s0 + $0x3f0] ss:$92 sps:$4 sm:$0xff]   ;;  %v7070_v30 = vld [vmem:[%s8994_s3 + $0x20] sm:$0xff]  }
 0x222   :  { %6404 = vmatmul.mubr.msk.bf16.gmra.mrb[0].mxu1 %vm3017_vm2, %v7059_v13  ;;  %6440 = vmatpush3.bf16.msra.mxu0 %v7070_v30  ;;  %v7062_v12 = vld [vmem:[%s8992_s0 + $0x560] ss:$92 sps:$4 sm:$0xff]  }
 0x223   :  { %v3778_v6 = vadd.f32 %v5925_v42, %v8531_v20  ;;  %v8696_v26 = vadd.f32 %v6001_v63, %v3770_v29  ;;  %6407 = vmatprep.mubr.msk.bf16.mxu1 %vm7075_vm1, %v7074_v36  ;;  %6441 = vmatprep.subr.bf16.mxu0 %v7074_v36 }
 0x225   :  { %v6002_v32 = vpop.f32.mrb[152].mxu0  ;;  %v6024_v1 = vpop.f32.mrb[152].mxu1 }
 0x226   :  { %v6003_v54 = vpop.f32.mrb[153].mxu0  ;;  %v6025_v27 = vpop.f32.mrb[153].mxu1 }
 0x227   :  { %v6004_v38 = vadd.f32 %v6003_v54, %v6002_v32  ;;  %v6026_v57 = vadd.f32 %v6025_v27, %v6024_v1  ;;  %v6005_v22 = vpop.f32.mrb[154].mxu0  ;;  %v6027_v52 = vpop.f32.mrb[154].mxu1 }
 0x228   :  { %v6006_v50 = vpop.f32.mrb[155].mxu0  ;;  %v6028_v10 = vpop.f32.mrb[155].mxu1 }
 0x229   :  { %v8703_v20 = vadd.f32 %v6004_v38, %v3775_v4  ;;  %v3937_v34 = vadd.f32 %v6026_v57, %v8547_v8  ;;  %v6007_v46 = vadd.f32 %v6006_v50, %v6005_v22  ;;  %v6029_v15 = vadd.f32 %v6028_v10, %v6027_v52 }
 0x22a   :  { %6408 = vmatmul.mubr.msk.bf16.gmra.mrb[4].mxu1 %vm3017_vm2, %v7060_v58 }
 0x22b   :  { %v8707_v60 = vadd.f32 %v6007_v46, %v3778_v6  ;;  %v3940_v44 = vadd.f32 %v6029_v15, %v8550_v55  ;;  %6411 = vmatprep.mubr.msk.bf16.mxu1 %vm7075_vm1, %v7074_v36 }
 0x22d   :  { %v6030_v23 = vpop.f32.mrb[156].mxu1  ;;  %v6106_v53 = vpop.f32.mrb[156].mxu0 }
 0x22e   :  { %v6031_v56 = vpop.f32.mrb[157].mxu1  ;;  %v6107_v8 = vpop.f32.mrb[157].mxu0 }
 0x22f   :  { %v6032_v49 = vadd.f32 %v6031_v56, %v6030_v23  ;;  %v6108_v55 = vadd.f32 %v6107_v8, %v6106_v53  ;;  %v6033_v45 = vpop.f32.mrb[158].mxu1  ;;  %v6109_v14 = vpop.f32.mrb[158].mxu0  ;;  %v7071_v8 = vld [vmem:[%s8994_s3 + $0x28] sm:$0xff]  }
 0x230   :  { %v6034_v0 = vpop.f32.mrb[159].mxu1  ;;  %v6110_v29 = vpop.f32.mrb[159].mxu0  ;;  %6442 = vmatpush3.bf16.msra.mxu0 %v7071_v8 }
 0x231   :  { %v3945_v25 = vadd.f32 %v6032_v49, %v8565_v35  ;;  %v8720_v62 = vadd.f32 %v6108_v55, %v3937_v34  ;;  %v6035_v18 = vadd.f32 %v6034_v0, %v6033_v45  ;;  %v6111_v47 = vadd.f32 %v6110_v29, %v6109_v14  ;;  %6443 = vmatprep.subr.bf16.mxu0 %v7074_v36  ;;  %v7064_v0 = vld [vmem:[%s8992_s0 + $0x6d0] ss:$92 sps:$4 sm:$0xff]  }
 0x232   :  { %6412 = vmatmul.mubr.msk.bf16.gmra.mrb[8].mxu1 %vm3017_vm2, %v7061_v59 }
 0x233   :  { %v3948_v28 = vadd.f32 %v6035_v18, %v8568_v16  ;;  %v8724_v13 = vadd.f32 %v6111_v47, %v3940_v44  ;;  %6415 = vmatprep.mubr.msk.bf16.mxu1 %vm7075_vm1, %v7074_v36 }
 0x235   :  { %v6036_v11 = vpop.f32.mrb[160].mxu1  ;;  %v6112_v7 = vpop.f32.mrb[160].mxu0 }
 0x236   :  { %v6037_v35 = vpop.f32.mrb[161].mxu1  ;;  %v6113_v19 = vpop.f32.mrb[161].mxu0 }
 0x237   :  { %v6038_v16 = vadd.f32 %v6037_v35, %v6036_v11  ;;  %v6114_v24 = vadd.f32 %v6113_v19, %v6112_v7  ;;  %v6039_v4 = vpop.f32.mrb[162].mxu1  ;;  %v6115_v42 = vpop.f32.mrb[162].mxu0 }
 0x238   :  { %v6040_v63 = vpop.f32.mrb[163].mxu1  ;;  %v6116_v6 = vpop.f32.mrb[163].mxu0 }
 0x239   :  { %v3953_v32 = vadd.f32 %v6038_v16, %v8583_v43  ;;  %v8736_v1 = vadd.f32 %v6114_v24, %v3945_v25  ;;  %v6041_v54 = vadd.f32 %v6040_v63, %v6039_v4  ;;  %v6117_v27 = vadd.f32 %v6116_v6, %v6115_v42  ;;  %v7063_v43 = vld [vmem:[%s8992_s0 + $0x618] ss:$92 sps:$4 sm:$0xff]   ;;  %v7065_v63 = vld [vmem:[%s8992_s0 + $0x788] ss:$92 sps:$4 sm:$0xff]  }
 0x23a   :  { %6416 = vmatmul.mubr.msk.bf16.gmra.mrb[12].mxu1 %vm3017_vm2, %v7062_v12  ;;  %v7072_v16 = vld [vmem:[%s8994_s3 + $0x30] sm:$0xff]  }
 0x23b   :  { %v3956_v58 = vadd.f32 %v6041_v54, %v8586_v40  ;;  %v8740_v38 = vadd.f32 %v6117_v27, %v3948_v28  ;;  %6419 = vmatprep.mubr.msk.bf16.mxu1 %vm7075_vm1, %v7074_v36  ;;  %6444 = vmatpush3.bf16.msra.mxu0 %v7072_v16 }
 0x23c   :  { %6445 = vmatprep.subr.bf16.mxu0 %v7074_v36 }
 0x23d   :  { %v6042_v57 = vpop.f32.mrb[164].mxu1  ;;  %v6118_v22 = vpop.f32.mrb[164].mxu0 }
 0x23e   :  { %v6043_v52 = vpop.f32.mrb[165].mxu1  ;;  %v6119_v50 = vpop.f32.mrb[165].mxu0 }
 0x23f   :  { %v6044_v10 = vadd.f32 %v6043_v52, %v6042_v57  ;;  %v6120_v34 = vadd.f32 %v6119_v50, %v6118_v22  ;;  %v6045_v46 = vpop.f32.mrb[166].mxu1  ;;  %v6121_v15 = vpop.f32.mrb[166].mxu0 }
 0x240   :  { %v6046_v44 = vpop.f32.mrb[167].mxu1  ;;  %v6122_v3 = vpop.f32.mrb[167].mxu0 }
 0x241   :  { %v3961_v40 = vadd.f32 %v6044_v10, %v8601_v9  ;;  %v8748_v23 = vadd.f32 %v6120_v34, %v3953_v32  ;;  %v6047_v53 = vadd.f32 %v6046_v44, %v6045_v46  ;;  %v6123_v56 = vadd.f32 %v6122_v3, %v6121_v15  ;;  %v7073_v34 = vld [vmem:[%s8994_s3 + $0x38] sm:$0xff]  }
 0x242   :  { %6420 = vmatmul.mubr.msk.bf16.gmra.mrb[16].mxu1 %vm3017_vm2, %v7063_v43  ;;  %6446 = vmatpush3.bf16.msra.mxu0 %v7073_v34 }
 0x243   :  { %v3964_v59 = vadd.f32 %v6047_v53, %v8604_v31  ;;  %v8755_v49 = vadd.f32 %v6123_v56, %v3956_v58  ;;  %6423 = vmatprep.mubr.msk.bf16.mxu1 %vm7075_vm1, %v7074_v36 }
 0x245   :  { %v6048_v9 = vpop.f32.mrb[168].mxu1  ;;  %v6124_v55 = vpop.f32.mrb[168].mxu0 }
 0x246   :  { %v6049_v45 = vpop.f32.mrb[169].mxu1  ;;  %v6125_v14 = vpop.f32.mrb[169].mxu0 }
 0x247   :  { %v6050_v29 = vadd.f32 %v6049_v45, %v6048_v9  ;;  %v6126_v25 = vadd.f32 %v6125_v14, %v6124_v55  ;;  %v6051_v18 = vpop.f32.mrb[170].mxu1  ;;  %v6127_v31 = vpop.f32.mrb[170].mxu0 }
 0x248   :  { %v6052_v47 = vpop.f32.mrb[171].mxu1  ;;  %v6128_v28 = vpop.f32.mrb[171].mxu0 }
 0x249   :  { %v3969_v30 = vadd.f32 %v6050_v29, %v8616_v33  ;;  %v8764_v11 = vadd.f32 %v6126_v25, %v3961_v40  ;;  %v6053_v7 = vadd.f32 %v6052_v47, %v6051_v18  ;;  %v6129_v35 = vadd.f32 %v6128_v28, %v6127_v31 }
 0x24a   :  { %6424 = vmatmul.mubr.msk.bf16.gmra.mrb[20].mxu1 %vm3017_vm2, %v7064_v0 }
 0x24b   :  { %v3972_v19 = vadd.f32 %v6053_v7, %v8619_v39  ;;  %v8768_v12 = vadd.f32 %v6129_v35, %v3964_v59  ;;  %6427 = vmatprep.mubr.msk.bf16.mxu1 %vm7075_vm1, %v7074_v36 }
 0x24d   :  { %v6054_v24 = vpop.f32.mrb[172].mxu1  ;;  %v6130_v4 = vpop.f32.mrb[172].mxu0 }
 0x24e   :  { %v6055_v33 = vpop.f32.mrb[173].mxu1  ;;  %v6131_v42 = vpop.f32.mrb[173].mxu0 }
 0x24f   :  { %v6056_v39 = vadd.f32 %v6055_v33, %v6054_v24  ;;  %v6132_v6 = vadd.f32 %v6131_v42, %v6130_v4  ;;  %v6057_v32 = vpop.f32.mrb[174].mxu1  ;;  %v6133_v54 = vpop.f32.mrb[174].mxu0 }
 0x250   :  { %v6058_v27 = vpop.f32.mrb[175].mxu1  ;;  %v6134_v58 = vpop.f32.mrb[175].mxu0 }
 0x251   :  { %v3977_v57 = vadd.f32 %v6056_v39, %v8630_v48  ;;  %v8780_v22 = vadd.f32 %v6132_v6, %v3969_v30  ;;  %v6059_v52 = vadd.f32 %v6058_v27, %v6057_v32  ;;  %v6135_v50 = vadd.f32 %v6134_v58, %v6133_v54 }
 0x252   :  { %6428 = vmatmul.mubr.msk.bf16.gmra.mrb[24].mxu1 %vm3017_vm2, %v7065_v63 }
 0x253   :  { %v3980_v43 = vadd.f32 %v6059_v52, %v8634_v61  ;;  %v8784_v10 = vadd.f32 %v6135_v50, %v3972_v19 }
 0x255   :  { %v6060_v46 = vpop.f32.mrb[176].mxu1  ;;  %v6136_v15 = vpop.f32.mrb[176].mxu0 }
 0x256   :  { %v6061_v44 = vpop.f32.mrb[177].mxu1  ;;  %v6137_v3 = vpop.f32.mrb[177].mxu0 }
 0x257   :  { %v6062_v48 = vadd.f32 %v6061_v44, %v6060_v46  ;;  %v6138_v40 = vadd.f32 %v6137_v3, %v6136_v15  ;;  %v6063_v53 = vpop.f32.mrb[178].mxu1  ;;  %v6139_v56 = vpop.f32.mrb[178].mxu0 }
 0x258   :  { %v6064_v8 = vpop.f32.mrb[179].mxu1  ;;  %v6140_v59 = vpop.f32.mrb[179].mxu0 }
 0x259   :  { %v3985_v9 = vadd.f32 %v6062_v48, %v8644_v37  ;;  %v8790_v61 = vadd.f32 %v6138_v40, %v3977_v57  ;;  %v6065_v55 = vadd.f32 %v6064_v8, %v6063_v53  ;;  %v6141_v45 = vadd.f32 %v6140_v59, %v6139_v56 }
 0x25b   :  { %v3988_v14 = vadd.f32 %v6065_v55, %v8651_v21  ;;  %v8793_v0 = vadd.f32 %v6141_v45, %v3980_v43 }
 0x25d   :  { %v6066_v29 = vpop.f32.mrb[180].mxu1  ;;  %v6142_v25 = vpop.f32.mrb[180].mxu0 }
 0x25e   :  { %v6067_v18 = vpop.f32.mrb[181].mxu1  ;;  %v6143_v31 = vpop.f32.mrb[181].mxu0 }
 0x25f   :  { %v6068_v47 = vadd.f32 %v6067_v18, %v6066_v29  ;;  %v6144_v28 = vadd.f32 %v6143_v31, %v6142_v25  ;;  %v6069_v30 = vpop.f32.mrb[182].mxu1  ;;  %v6145_v7 = vpop.f32.mrb[182].mxu0 }
 0x260   :  { %v6070_v35 = vpop.f32.mrb[183].mxu1  ;;  %v6146_v19 = vpop.f32.mrb[183].mxu0 }
 0x261   :  { %v3993_v37 = vadd.f32 %v6068_v47, %v8660_v41  ;;  %v8796_v16 = vadd.f32 %v6144_v28, %v3985_v9  ;;  %v6071_v24 = vadd.f32 %v6070_v35, %v6069_v30  ;;  %v6147_v4 = vadd.f32 %v6146_v19, %v6145_v7 }
 0x263   :  { %v3996_v21 = vadd.f32 %v6071_v24, %v8664_v2  ;;  %v8799_v33 = vadd.f32 %v6147_v4, %v3988_v14 }
 0x265   :  { %v6072_v42 = vpop.f32.mrb[184].mxu1  ;;  %v6148_v63 = vpop.f32.mrb[184].mxu0 }
 0x266   :  { %v6073_v39 = vpop.f32.mrb[185].mxu1  ;;  %v6149_v6 = vpop.f32.mrb[185].mxu0 }
 0x267   :  { %v6074_v32 = vadd.f32 %v6073_v39, %v6072_v42  ;;  %v6150_v54 = vadd.f32 %v6149_v6, %v6148_v63  ;;  %v6075_v27 = vpop.f32.mrb[186].mxu1  ;;  %v6151_v58 = vpop.f32.mrb[186].mxu0 }
 0x268   :  { %v6076_v57 = vpop.f32.mrb[187].mxu1  ;;  %v6152_v52 = vpop.f32.mrb[187].mxu0 }
 0x269   :  { %v4001_v41 = vadd.f32 %v6074_v32, %v8676_v5  ;;  %v8802_v50 = vadd.f32 %v6150_v54, %v3993_v37  ;;  %v6077_v43 = vadd.f32 %v6076_v57, %v6075_v27  ;;  %v6153_v34 = vadd.f32 %v6152_v52, %v6151_v58 }
 0x26b   :  { %v4004_v2 = vadd.f32 %v6077_v43, %v8680_v51  ;;  %v8805_v46 = vadd.f32 %v6153_v34, %v3996_v21 }
 0x26d   :  { %v6078_v15 = vpop.f32.mrb[188].mxu1  ;;  %v6154_v44 = vpop.f32.mrb[188].mxu0 }
 0x26e   :  { %v6079_v3 = vpop.f32.mrb[189].mxu1  ;;  %v6155_v48 = vpop.f32.mrb[189].mxu0 }
 0x26f   :  { %v6080_v40 = vadd.f32 %v6079_v3, %v6078_v15  ;;  %v6156_v53 = vadd.f32 %v6155_v48, %v6154_v44  ;;  %v6081_v56 = vpop.f32.mrb[190].mxu1  ;;  %v6157_v8 = vpop.f32.mrb[190].mxu0 }
 0x270   :  { %v6082_v59 = vpop.f32.mrb[191].mxu1  ;;  %v6158_v9 = vpop.f32.mrb[191].mxu0 }
 0x271   :  { %v4009_v5 = vadd.f32 %v6080_v40, %v8692_v17  ;;  %v8808_v55 = vadd.f32 %v6156_v53, %v4001_v41  ;;  %v6083_v45 = vadd.f32 %v6082_v59, %v6081_v56  ;;  %v6159_v14 = vadd.f32 %v6158_v9, %v6157_v8 }
 0x273   :  { %v4012_v51 = vadd.f32 %v6083_v45, %v8696_v26  ;;  %v8811_v29 = vadd.f32 %v6159_v14, %v4004_v2 }
 0x275   :  { %v6084_v25 = vpop.f32.mrb[192].mxu1  ;;  %v6160_v18 = vpop.f32.mrb[192].mxu0 }
 0x276   :  { %v6085_v31 = vpop.f32.mrb[193].mxu1  ;;  %v6161_v47 = vpop.f32.mrb[193].mxu0 }
 0x277   :  { %v6086_v28 = vadd.f32 %v6085_v31, %v6084_v25  ;;  %v6162_v30 = vadd.f32 %v6161_v47, %v6160_v18  ;;  %v6087_v7 = vpop.f32.mrb[194].mxu1  ;;  %v6163_v35 = vpop.f32.mrb[194].mxu0 }
 0x278   :  { %v6088_v19 = vpop.f32.mrb[195].mxu1  ;;  %v6164_v37 = vpop.f32.mrb[195].mxu0 }
 0x279   :  { %v4017_v17 = vadd.f32 %v6086_v28, %v8703_v20  ;;  %v8814_v24 = vadd.f32 %v6162_v30, %v4009_v5  ;;  %v6089_v4 = vadd.f32 %v6088_v19, %v6087_v7  ;;  %v6165_v21 = vadd.f32 %v6164_v37, %v6163_v35 }
 0x27b   :  { %v4020_v26 = vadd.f32 %v6089_v4, %v8707_v60  ;;  %v8817_v42 = vadd.f32 %v6165_v21, %v4012_v51 }
 0x27d   :  { %v6166_v63 = vpop.f32.mrb[196].mxu0  ;;  %v6188_v39 = vpop.f32.mrb[196].mxu1 }
 0x27e   :  { %v6167_v6 = vpop.f32.mrb[197].mxu0  ;;  %v6189_v32 = vpop.f32.mrb[197].mxu1 }
 0x27f   :  { %v6168_v54 = vadd.f32 %v6167_v6, %v6166_v63  ;;  %v6190_v27 = vadd.f32 %v6189_v32, %v6188_v39  ;;  %v6169_v58 = vpop.f32.mrb[198].mxu0  ;;  %v6191_v57 = vpop.f32.mrb[198].mxu1 }
 0x280   :  { %v6170_v52 = vpop.f32.mrb[199].mxu0  ;;  %v6192_v41 = vpop.f32.mrb[199].mxu1 }
 0x281   :  { %v8819_v43 = vadd.f32 %v6168_v54, %v4017_v17  ;;  %v4179_v20 = vadd.f32 %v6190_v27, %v8720_v62  ;;  %v6171_v34 = vadd.f32 %v6170_v52, %v6169_v58  ;;  %v6193_v2 = vadd.f32 %v6192_v41, %v6191_v57 }
 0x283   :  { %v8822_v15 = vadd.f32 %v6171_v34, %v4020_v26  ;;  %v4182_v60 = vadd.f32 %v6193_v2, %v8724_v13 }
 0x285   :  { %v6194_v44 = vpop.f32.mrb[200].mxu1  ;;  %v6270_v3 = vpop.f32.mrb[200].mxu0 }
 0x286   :  { %v6195_v48 = vpop.f32.mrb[201].mxu1  ;;  %v6271_v40 = vpop.f32.mrb[201].mxu0 }
 0x287   :  { %v6196_v53 = vadd.f32 %v6195_v48, %v6194_v44  ;;  %v6272_v56 = vadd.f32 %v6271_v40, %v6270_v3  ;;  %v6197_v8 = vpop.f32.mrb[202].mxu1  ;;  %v6273_v59 = vpop.f32.mrb[202].mxu0 }
 0x288   :  { %v6198_v9 = vpop.f32.mrb[203].mxu1  ;;  %v6274_v5 = vpop.f32.mrb[203].mxu0 }
 0x289   :  { %v4187_v45 = vadd.f32 %v6196_v53, %v8736_v1  ;;  %v6199_v14 = vadd.f32 %v6198_v9, %v6197_v8  ;;  %v6275_v62 = vadd.f32 %v6274_v5, %v6273_v59  ;;  %v8826_v51 = vadd.f32 %v6272_v56, %v4179_v20 }
 0x28b   :  { %v4190_v25 = vadd.f32 %v6199_v14, %v8740_v38  ;;  %v8829_v18 = vadd.f32 %v6275_v62, %v4182_v60 }
 0x28d   :  { %v6200_v13 = vpop.f32.mrb[204].mxu1  ;;  %v6276_v31 = vpop.f32.mrb[204].mxu0 }
 0x28e   :  { %v6201_v47 = vpop.f32.mrb[205].mxu1  ;;  %v6277_v28 = vpop.f32.mrb[205].mxu0 }
 0x28f   :  { %v6202_v30 = vadd.f32 %v6201_v47, %v6200_v13  ;;  %v6278_v7 = vadd.f32 %v6277_v28, %v6276_v31  ;;  %v6203_v35 = vpop.f32.mrb[206].mxu1  ;;  %v6279_v19 = vpop.f32.mrb[206].mxu0 }
 0x290   :  { %v6204_v37 = vpop.f32.mrb[207].mxu1  ;;  %v6280_v17 = vpop.f32.mrb[207].mxu0 }
 0x291   :  { %v4195_v1 = vadd.f32 %v6202_v30, %v8748_v23  ;;  %v6205_v4 = vadd.f32 %v6204_v37, %v6203_v35  ;;  %v6281_v21 = vadd.f32 %v6280_v17, %v6279_v19  ;;  %v8832_v26 = vadd.f32 %v6278_v7, %v4187_v45 }
 0x293   :  { %v4198_v38 = vadd.f32 %v6205_v4, %v8755_v49  ;;  %v8835_v63 = vadd.f32 %v6281_v21, %v4190_v25 }
 0x295   :  { %v6206_v39 = vpop.f32.mrb[208].mxu1  ;;  %v6282_v6 = vpop.f32.mrb[208].mxu0 }
 0x296   :  { %v6207_v32 = vpop.f32.mrb[209].mxu1  ;;  %v6283_v54 = vpop.f32.mrb[209].mxu0 }
 0x297   :  { %v6208_v27 = vadd.f32 %v6207_v32, %v6206_v39  ;;  %v6284_v58 = vadd.f32 %v6283_v54, %v6282_v6  ;;  %v6209_v57 = vpop.f32.mrb[210].mxu1  ;;  %v6285_v52 = vpop.f32.mrb[210].mxu0 }
 0x298   :  { %v6210_v41 = vpop.f32.mrb[211].mxu1  ;;  %v6286_v20 = vpop.f32.mrb[211].mxu0 }
 0x299   :  { %v4203_v23 = vadd.f32 %v6208_v27, %v8764_v11  ;;  %v6211_v34 = vadd.f32 %v6210_v41, %v6209_v57  ;;  %v6287_v2 = vadd.f32 %v6286_v20, %v6285_v52  ;;  %v8838_v60 = vadd.f32 %v6284_v58, %v4195_v1 }
 0x29b   :  { %v4206_v49 = vadd.f32 %v6211_v34, %v8768_v12  ;;  %v8841_v44 = vadd.f32 %v6287_v2, %v4198_v38 }
 0x29d   :  { %v6212_v3 = vpop.f32.mrb[212].mxu1  ;;  %v6288_v48 = vpop.f32.mrb[212].mxu0 }
 0x29e   :  { %v6213_v40 = vpop.f32.mrb[213].mxu1  ;;  %v6289_v53 = vpop.f32.mrb[213].mxu0 }
 0x29f   :  { %v6214_v56 = vadd.f32 %v6213_v40, %v6212_v3  ;;  %v6290_v8 = vadd.f32 %v6289_v53, %v6288_v48  ;;  %v6215_v59 = vpop.f32.mrb[214].mxu1  ;;  %v6291_v9 = vpop.f32.mrb[214].mxu0 }
 0x2a0   :  { %v6216_v5 = vpop.f32.mrb[215].mxu1  ;;  %v6292_v45 = vpop.f32.mrb[215].mxu0 }
 0x2a1   :  { %v4211_v11 = vadd.f32 %v6214_v56, %v8780_v22  ;;  %v6217_v14 = vadd.f32 %v6216_v5, %v6215_v59  ;;  %v6293_v62 = vadd.f32 %v6292_v45, %v6291_v9  ;;  %v8844_v25 = vadd.f32 %v6290_v8, %v4203_v23 }
 0x2a3   :  { %v4214_v12 = vadd.f32 %v6217_v14, %v8784_v10  ;;  %v8847_v13 = vadd.f32 %v6293_v62, %v4206_v49 }
 0x2a5   :  { %v6218_v31 = vpop.f32.mrb[216].mxu1  ;;  %v6294_v47 = vpop.f32.mrb[216].mxu0 }
 0x2a6   :  { %v6219_v28 = vpop.f32.mrb[217].mxu1  ;;  %v6295_v30 = vpop.f32.mrb[217].mxu0 }
 0x2a7   :  { %v6220_v7 = vadd.f32 %v6219_v28, %v6218_v31  ;;  %v6296_v35 = vadd.f32 %v6295_v30, %v6294_v47  ;;  %v6221_v19 = vpop.f32.mrb[218].mxu1  ;;  %v6297_v37 = vpop.f32.mrb[218].mxu0 }
 0x2a8   :  { %v6222_v17 = vpop.f32.mrb[219].mxu1  ;;  %v6298_v1 = vpop.f32.mrb[219].mxu0 }
 0x2a9   :  { %v4219_v22 = vadd.f32 %v6220_v7, %v8790_v61  ;;  %v6223_v4 = vadd.f32 %v6222_v17, %v6221_v19  ;;  %v6299_v21 = vadd.f32 %v6298_v1, %v6297_v37  ;;  %v8850_v38 = vadd.f32 %v6296_v35, %v4211_v11 }
 0x2ab   :  { %v4222_v10 = vadd.f32 %v6223_v4, %v8793_v0  ;;  %v8853_v39 = vadd.f32 %v6299_v21, %v4214_v12 }
 0x2ad   :  { %v6224_v6 = vpop.f32.mrb[220].mxu1  ;;  %v6300_v32 = vpop.f32.mrb[220].mxu0 }
 0x2ae   :  { %v6225_v54 = vpop.f32.mrb[221].mxu1  ;;  %v6301_v27 = vpop.f32.mrb[221].mxu0 }
 0x2af   :  { %v6226_v58 = vadd.f32 %v6225_v54, %v6224_v6  ;;  %v6302_v57 = vadd.f32 %v6301_v27, %v6300_v32  ;;  %v6227_v52 = vpop.f32.mrb[222].mxu1  ;;  %v6303_v41 = vpop.f32.mrb[222].mxu0 }
 0x2b0   :  { %v6228_v20 = vpop.f32.mrb[223].mxu1  ;;  %v6304_v23 = vpop.f32.mrb[223].mxu0 }
 0x2b1   :  { %v4227_v61 = vadd.f32 %v6226_v58, %v8796_v16  ;;  %v6229_v34 = vadd.f32 %v6228_v20, %v6227_v52  ;;  %v6305_v2 = vadd.f32 %v6304_v23, %v6303_v41  ;;  %v8856_v49 = vadd.f32 %v6302_v57, %v4219_v22 }
 0x2b3   :  { %v4230_v0 = vadd.f32 %v6229_v34, %v8799_v33  ;;  %v8859_v3 = vadd.f32 %v6305_v2, %v4222_v10 }
 0x2b5   :  { %v6230_v48 = vpop.f32.mrb[224].mxu1  ;;  %v6306_v40 = vpop.f32.mrb[224].mxu0 }
 0x2b6   :  { %v6231_v53 = vpop.f32.mrb[225].mxu1  ;;  %v6307_v56 = vpop.f32.mrb[225].mxu0 }
 0x2b7   :  { %v6232_v8 = vadd.f32 %v6231_v53, %v6230_v48  ;;  %v6308_v59 = vadd.f32 %v6307_v56, %v6306_v40  ;;  %v6233_v9 = vpop.f32.mrb[226].mxu1  ;;  %v6309_v5 = vpop.f32.mrb[226].mxu0 }
 0x2b8   :  { %v6234_v45 = vpop.f32.mrb[227].mxu1  ;;  %v6310_v11 = vpop.f32.mrb[227].mxu0 }
 0x2b9   :  { %v4235_v16 = vadd.f32 %v6232_v8, %v8802_v50  ;;  %v6235_v14 = vadd.f32 %v6234_v45, %v6233_v9  ;;  %v6311_v62 = vadd.f32 %v6310_v11, %v6309_v5  ;;  %v8862_v12 = vadd.f32 %v6308_v59, %v4227_v61 }
 0x2bb   :  { %v4238_v33 = vadd.f32 %v6235_v14, %v8805_v46  ;;  %v8865_v31 = vadd.f32 %v6311_v62, %v4230_v0 }
 0x2bd   :  { %v6236_v47 = vpop.f32.mrb[228].mxu1  ;;  %v6312_v28 = vpop.f32.mrb[228].mxu0 }
 0x2be   :  { %v6237_v30 = vpop.f32.mrb[229].mxu1  ;;  %v6313_v7 = vpop.f32.mrb[229].mxu0 }
 0x2bf   :  { %v6238_v35 = vadd.f32 %v6237_v30, %v6236_v47  ;;  %v6314_v19 = vadd.f32 %v6313_v7, %v6312_v28  ;;  %v6239_v37 = vpop.f32.mrb[230].mxu1  ;;  %v6315_v17 = vpop.f32.mrb[230].mxu0 }
 0x2c0   :  { %v6240_v1 = vpop.f32.mrb[231].mxu1  ;;  %v6316_v22 = vpop.f32.mrb[231].mxu0 }
 0x2c1   :  { %v4243_v50 = vadd.f32 %v6238_v35, %v8808_v55  ;;  %v6241_v4 = vadd.f32 %v6240_v1, %v6239_v37  ;;  %v6317_v21 = vadd.f32 %v6316_v22, %v6315_v17  ;;  %v8868_v10 = vadd.f32 %v6314_v19, %v4235_v16 }
 0x2c3   :  { %v4246_v46 = vadd.f32 %v6241_v4, %v8811_v29  ;;  %v8871_v6 = vadd.f32 %v6317_v21, %v4238_v33 }
 0x2c5   :  { %v6242_v32 = vpop.f32.mrb[232].mxu1  ;;  %v6318_v54 = vpop.f32.mrb[232].mxu0 }
 0x2c6   :  { %v6243_v27 = vpop.f32.mrb[233].mxu1  ;;  %v6319_v58 = vpop.f32.mrb[233].mxu0 }
 0x2c7   :  { %v6244_v57 = vadd.f32 %v6243_v27, %v6242_v32  ;;  %v6320_v52 = vadd.f32 %v6319_v58, %v6318_v54  ;;  %v6245_v41 = vpop.f32.mrb[234].mxu1  ;;  %v6321_v20 = vpop.f32.mrb[234].mxu0 }
 0x2c8   :  { %v6246_v23 = vpop.f32.mrb[235].mxu1  ;;  %v6322_v61 = vpop.f32.mrb[235].mxu0 }
 0x2c9   :  { %v4251_v55 = vadd.f32 %v6244_v57, %v8814_v24  ;;  %v6247_v34 = vadd.f32 %v6246_v23, %v6245_v41  ;;  %v6323_v2 = vadd.f32 %v6322_v61, %v6321_v20  ;;  %v8874_v0 = vadd.f32 %v6320_v52, %v4243_v50 }
 0x2cb   :  { %v4254_v29 = vadd.f32 %v6247_v34, %v8817_v42  ;;  %v8877_v48 = vadd.f32 %v6323_v2, %v4246_v46 }
 0x2cd   :  { %v6248_v40 = vpop.f32.mrb[236].mxu1  ;;  %v6324_v53 = vpop.f32.mrb[236].mxu0 }
 0x2ce   :  { %v6249_v56 = vpop.f32.mrb[237].mxu1  ;;  %v6325_v8 = vpop.f32.mrb[237].mxu0 }
 0x2cf   :  { %v6250_v59 = vadd.f32 %v6249_v56, %v6248_v40  ;;  %v6326_v9 = vadd.f32 %v6325_v8, %v6324_v53  ;;  %v6251_v5 = vpop.f32.mrb[238].mxu1  ;;  %v6327_v45 = vpop.f32.mrb[238].mxu0 }
 0x2d0   :  { %v6252_v11 = vpop.f32.mrb[239].mxu1  ;;  %v6328_v16 = vpop.f32.mrb[239].mxu0 }
 0x2d1   :  { %v4259_v24 = vadd.f32 %v6250_v59, %v8819_v43  ;;  %v6253_v14 = vadd.f32 %v6252_v11, %v6251_v5  ;;  %v6329_v62 = vadd.f32 %v6328_v16, %v6327_v45  ;;  %v8880_v33 = vadd.f32 %v6326_v9, %v4251_v55 }
 0x2d3   :  { %v4262_v42 = vadd.f32 %v6253_v14, %v8822_v15  ;;  %v8883_v47 = vadd.f32 %v6329_v62, %v4254_v29 }
 0x2d5   :  { %v6330_v28 = vpop.f32.mrb[240].mxu0  ;;  %v4420_v30 = vpop.f32.mrb[240].mxu1 }
 0x2d6   :  { %v4421_v7 = vadd.f32 %v4420_v30, %v8826_v51  ;;  %v6331_v35 = vpop.f32.mrb[241].mxu0  ;;  %v6389_v19 = vpop.f32.mrb[241].mxu1 }
 0x2d7   :  { %v6332_v37 = vadd.f32 %v6331_v35, %v6330_v28  ;;  %v6333_v17 = vpop.f32.mrb[242].mxu0  ;;  %v4423_v1 = vpop.f32.mrb[242].mxu1 }
 0x2d8   :  { %v4424_v22 = vadd.f32 %v4423_v1, %v8829_v18  ;;  %v6334_v43 = vpop.f32.mrb[243].mxu0  ;;  %v6390_v50 = vpop.f32.mrb[243].mxu1  ;;  %v4507_v46 = vmax.f32 %v4421_v7, 0.0 }
 0x2d9   :  { %v6335_v4 = vadd.f32 %v6334_v43, %v6333_v17  ;;  %v8887_v21 = vadd.f32 %v6332_v37, %v4259_v24 }
 0x2da   :  { %v4508_v15 = vmax.f32 %v4424_v22, 0.0 }
 0x2db   :  { %v8889_v32 = vadd.f32 %v6335_v4, %v4262_v42 }
 0x2dc   :  { %v4529_v54 = vpack.c.bf16 %v4508_v15, %v4507_v46 }
 0x2dd   :  { %v4428_v27 = vpop.f32.mrb[244].mxu1 }
 0x2de   :  { %v4429_v51 = vadd.f32 %v4428_v27, %v8832_v26  ;;  %v6393_v58 = vpop.f32.mrb[245].mxu1  ;;  %6448 = vmatmul.mubr.bf16.vlgmr.msra.gmra.mrb[244].mxu0 %v4529_v54 }
 0x2df   :  { %v4431_v57 = vpop.f32.mrb[246].mxu1  ;;  %6451 = vmatprep.mubr.msk.bf16.mxu0 %vm7075_vm1, %v7074_v36 }
 0x2e0   :  { %v4432_v18 = vadd.f32 %v4431_v57, %v8835_v63  ;;  %v6394_v52 = vpop.f32.mrb[247].mxu1  ;;  %v4509_v41 = vmax.f32 %v4429_v51, 0.0 }
 0x2e2   :  { %v4510_v20 = vmax.f32 %v4432_v18, 0.0 }
 0x2e4   :  { %v4530_v23 = vpack.c.bf16 %v4510_v20, %v4509_v41 }
 0x2e5   :  { %v4436_v61 = vpop.f32.mrb[248].mxu1 }
 0x2e6   :  { %v4437_v55 = vadd.f32 %v4436_v61, %v8838_v60  ;;  %v6397_v34 = vpop.f32.mrb[249].mxu1  ;;  %6452 = vmatmul.mubr.bf16.gmra.mrb[248].mxu0 %v4530_v23 }
 0x2e7   :  { %v4439_v2 = vpop.f32.mrb[250].mxu1  ;;  %6455 = vmatprep.mubr.msk.bf16.mxu0 %vm7075_vm1, %v7074_v36 }
 0x2e8   :  { %v4440_v26 = vadd.f32 %v4439_v2, %v8841_v44  ;;  %v6398_v29 = vpop.f32.mrb[251].mxu1  ;;  %v4511_v40 = vmax.f32 %v4437_v55, 0.0 }
 0x2ea   :  { %v4512_v53 = vmax.f32 %v4440_v26, 0.0 }
 0x2ec   :  { %v4531_v56 = vpack.c.bf16 %v4512_v53, %v4511_v40 }
 0x2ed   :  { %v4444_v63 = vpop.f32.mrb[252].mxu1 }
 0x2ee   :  { %v4445_v8 = vadd.f32 %v4444_v63, %v8844_v25  ;;  %v6401_v59 = vpop.f32.mrb[253].mxu1  ;;  %6456 = vmatmul.mubr.bf16.gmra.mrb[252].mxu0 %v4531_v56 }
 0x2ef   :  { %v4447_v9 = vpop.f32.mrb[254].mxu1  ;;  %6459 = vmatprep.mubr.msk.bf16.mxu0 %vm7075_vm1, %v7074_v36 }
 0x2f0   :  { %v4448_v60 = vadd.f32 %v4447_v9, %v8847_v13  ;;  %v6402_v5 = vpop.f32.mrb[255].mxu1  ;;  %v4513_v45 = vmax.f32 %v4445_v8, 0.0 }
 0x2f2   :  { %v4514_v11 = vmax.f32 %v4448_v60, 0.0 }
 0x2f4   :  { %v4532_v16 = vpack.c.bf16 %v4514_v11, %v4513_v45 }
 0x2f5   :  { %v4452_v44 = vpop.f32.mrb[0].mxu1 }
 0x2f6   :  { %v4453_v24 = vadd.f32 %v4452_v44, %v8850_v38  ;;  %v6405_v14 = vpop.f32.mrb[1].mxu1  ;;  %6460 = vmatmul.mubr.bf16.gmra.mrb[0].mxu0 %v4532_v16 }
 0x2f7   :  { %v4455_v62 = vpop.f32.mrb[2].mxu1  ;;  %6463 = vmatprep.mubr.msk.bf16.mxu0 %vm7075_vm1, %v7074_v36 }
 0x2f8   :  { %v4456_v25 = vadd.f32 %v4455_v62, %v8853_v39  ;;  %v6406_v42 = vpop.f32.mrb[3].mxu1  ;;  %v4515_v28 = vmax.f32 %v4453_v24, 0.0 }
 0x2fa   :  { %v4516_v30 = vmax.f32 %v4456_v25, 0.0 }
 0x2fc   :  { %v4533_v7 = vpack.c.bf16 %v4516_v30, %v4515_v28 }
 0x2fd   :  { %v4460_v13 = vpop.f32.mrb[4].mxu1 }
 0x2fe   :  { %v4461_v35 = vadd.f32 %v4460_v13, %v8856_v49  ;;  %v6409_v19 = vpop.f32.mrb[5].mxu1  ;;  %6464 = vmatmul.mubr.bf16.gmra.mrb[4].mxu0 %v4533_v7 }
 0x2ff   :  { %v4463_v37 = vpop.f32.mrb[6].mxu1  ;;  %6467 = vmatprep.mubr.msk.bf16.mxu0 %vm7075_vm1, %v7074_v36 }
 0x300   :  { %v4464_v38 = vadd.f32 %v4463_v37, %v8859_v3  ;;  %v6410_v17 = vpop.f32.mrb[7].mxu1  ;;  %v4517_v1 = vmax.f32 %v4461_v35, 0.0 }
 0x302   :  { %v4518_v22 = vmax.f32 %v4464_v38, 0.0 }
 0x304   :  { %v4534_v43 = vpack.c.bf16 %v4518_v22, %v4517_v1 }
 0x305   :  { %v4468_v39 = vpop.f32.mrb[8].mxu1 }
 0x306   :  { %v4469_v50 = vadd.f32 %v4468_v39, %v8862_v12  ;;  %v6413_v4 = vpop.f32.mrb[9].mxu1  ;;  %6468 = vmatmul.mubr.bf16.gmra.mrb[8].mxu0 %v4534_v43 }
 0x307   :  { %v4471_v46 = vpop.f32.mrb[10].mxu1  ;;  %6471 = vmatprep.mubr.msk.bf16.mxu0 %vm7075_vm1, %v7074_v36 }
 0x308   :  { %v4472_v49 = vadd.f32 %v4471_v46, %v8865_v31  ;;  %v6414_v15 = vpop.f32.mrb[11].mxu1  ;;  %v4519_v54 = vmax.f32 %v4469_v50, 0.0 }
 0x30a   :  { %v4520_v27 = vmax.f32 %v4472_v49, 0.0 }
 0x30c   :  { %v4535_v51 = vpack.c.bf16 %v4520_v27, %v4519_v54 }
 0x30d   :  { %v4476_v3 = vpop.f32.mrb[12].mxu1 }
 0x30e   :  { %v4477_v58 = vadd.f32 %v4476_v3, %v8868_v10  ;;  %v6417_v57 = vpop.f32.mrb[13].mxu1  ;;  %6472 = vmatmul.mubr.bf16.gmra.mrb[12].mxu0 %v4535_v51 }
 0x30f   :  { %v4479_v18 = vpop.f32.mrb[14].mxu1  ;;  %6475 = vmatprep.mubr.msk.bf16.mxu0 %vm7075_vm1, %v7074_v36 }
 0x310   :  { %v4480_v12 = vadd.f32 %v4479_v18, %v8871_v6  ;;  %v6418_v52 = vpop.f32.mrb[15].mxu1  ;;  %v4521_v41 = vmax.f32 %v4477_v58, 0.0 }
 0x312   :  { %v4522_v20 = vmax.f32 %v4480_v12, 0.0 }
 0x314   :  { %v4536_v23 = vpack.c.bf16 %v4522_v20, %v4521_v41 }
 0x315   :  { %v4484_v31 = vpop.f32.mrb[16].mxu1 }
 0x316   :  { %v4485_v61 = vadd.f32 %v4484_v31, %v8874_v0  ;;  %v6421_v55 = vpop.f32.mrb[17].mxu1  ;;  %6476 = vmatmul.mubr.bf16.gmra.mrb[16].mxu0 %v4536_v23 }
 0x317   :  { %v4487_v34 = vpop.f32.mrb[18].mxu1  ;;  %6479 = vmatprep.mubr.msk.bf16.mxu0 %vm7075_vm1, %v7074_v36 }
 0x318   :  { %v4488_v10 = vadd.f32 %v4487_v34, %v8877_v48  ;;  %v6422_v2 = vpop.f32.mrb[19].mxu1  ;;  %v4523_v26 = vmax.f32 %v4485_v61, 0.0 }
 0x31a   :  { %v4524_v29 = vmax.f32 %v4488_v10, 0.0 }
 0x31c   :  { %v4537_v40 = vpack.c.bf16 %v4524_v29, %v4523_v26 }
 0x31d   :  { %v4492_v6 = vpop.f32.mrb[20].mxu1 }
 0x31e   :  { %v4493_v53 = vadd.f32 %v4492_v6, %v8880_v33  ;;  %v6425_v56 = vpop.f32.mrb[21].mxu1  ;;  %6480 = vmatmul.mubr.bf16.gmra.mrb[20].mxu0 %v4537_v40 }
 0x31f   :  { %v4495_v63 = vpop.f32.mrb[22].mxu1  ;;  %6483 = vmatprep.mubr.msk.bf16.mxu0 %vm7075_vm1, %v7074_v36 }
 0x320   :  { %v4496_v0 = vadd.f32 %v4495_v63, %v8883_v47  ;;  %v6426_v8 = vpop.f32.mrb[23].mxu1  ;;  %v4525_v59 = vmax.f32 %v4493_v53, 0.0  ;;  %v8934_v47 = vld [vmem:[%s8995_s4] ss:$0 sm:$0xff] }
 0x322   :  { %v4526_v9 = vmax.f32 %v4496_v0, 0.0 }
 0x324   :  { %v4538_v60 = vpack.c.bf16 %v4526_v9, %v4525_v59 }
 0x325   :  { %v4500_v48 = vpop.f32.mrb[24].mxu1 }
 0x326   :  { %v4501_v5 = vadd.f32 %v4500_v48, %v8887_v21  ;;  %v6429_v45 = vpop.f32.mrb[25].mxu1  ;;  %6484 = vmatmul.mubr.bf16.gmra.mrb[24].mxu0 %v4538_v60 }
 0x327   :  { %v4503_v11 = vpop.f32.mrb[26].mxu1  ;;  %6487 = vmatprep.mubr.msk.bf16.mxu0 %vm7075_vm1, %v7074_v36 }
 0x328   :  { %v4504_v33 = vadd.f32 %v4503_v11, %v8889_v32  ;;  %v6430_v16 = vpop.f32.mrb[27].mxu1  ;;  %v4527_v44 = vmax.f32 %v4501_v5, 0.0 }
 0x32a   :  { %v4528_v24 = vmax.f32 %v4504_v33, 0.0 }
 0x32c   :  { %v4539_v14 = vpack.c.bf16 %v4528_v24, %v4527_v44 }
 0x32e   :  { %6488 = vmatmul.mubr.bf16.gmra.mrb[28].mxu0 %v4539_v14 }
 0x3b1   :  { %v4645_v62 = vpop.f32.mrb[244].mxu0 }
 0x3b2   :  { %v4646_v21 = vadd.f32 %v8934_v47, %v4645_v62  ;;  %v6449_v25 = vpop.f32.mrb[245].mxu0 }
 0x3b3   :  { %v4648_v42 = vpop.f32.mrb[246].mxu0 }
 0x3b4   :  { %v4649_v28 = vadd.f32 %v8934_v47, %v4648_v42  ;;  %v6450_v36 = vpop.f32.mrb[247].mxu0  ;;  %v4732_v30 = vmax.f32 %v4646_v21, 0.0 }
 0x3b6   :  { %v4733_v32 = vmax.f32 %v4649_v28, 0.0 }
 0x3b8   :  { %v5372_v7 = vpack.c.bf16 %v4733_v32, %v4732_v30 }
 0x3b9   :  { %v4653_v13 = vpop.f32.mrb[248].mxu0 }
 0x3ba   :  { %5373 = vst [vmem:[%s8996_s5] sm:$0xff] %v5372_v7   ;;  %v4654_v35 = vadd.f32 %v8934_v47, %v4653_v13  ;;  %v6453_v19 = vpop.f32.mrb[249].mxu0 }
 0x3bb   :  { %v4656_v37 = vpop.f32.mrb[250].mxu0 }
 0x3bc   :  { %v4657_v38 = vadd.f32 %v8934_v47, %v4656_v37  ;;  %v6454_v17 = vpop.f32.mrb[251].mxu0  ;;  %v4734_v1 = vmax.f32 %v4654_v35, 0.0 }
 0x3be   :  { %v4735_v22 = vmax.f32 %v4657_v38, 0.0 }
 0x3c0   :  { %v5377_v43 = vpack.c.bf16 %v4735_v22, %v4734_v1 }
 0x3c1   :  { %v4661_v39 = vpop.f32.mrb[252].mxu0 }
 0x3c2   :  { %5424 = vst [vmem:[%s8996_s5 + $0x8] sm:$0xff] %v5377_v43   ;;  %v4662_v50 = vadd.f32 %v8934_v47, %v4661_v39  ;;  %v6457_v4 = vpop.f32.mrb[253].mxu0 }
 0x3c3   :  { %v4664_v46 = vpop.f32.mrb[254].mxu0 }
 0x3c4   :  { %v4665_v49 = vadd.f32 %v8934_v47, %v4664_v46  ;;  %v6458_v15 = vpop.f32.mrb[255].mxu0  ;;  %v4736_v54 = vmax.f32 %v4662_v50, 0.0 }
 0x3c6   :  { %v4737_v27 = vmax.f32 %v4665_v49, 0.0 }
 0x3c8   :  { %v5382_v51 = vpack.c.bf16 %v4737_v27, %v4736_v54 }
 0x3c9   :  { %v4669_v3 = vpop.f32.mrb[0].mxu0 }
 0x3ca   :  { %5425 = vst [vmem:[%s8996_s5 + $0x10] sm:$0xff] %v5382_v51   ;;  %v4670_v58 = vadd.f32 %v8934_v47, %v4669_v3  ;;  %v6461_v57 = vpop.f32.mrb[1].mxu0 }
 0x3cb   :  { %v4672_v18 = vpop.f32.mrb[2].mxu0 }
 0x3cc   :  { %v4673_v12 = vadd.f32 %v8934_v47, %v4672_v18  ;;  %v6462_v52 = vpop.f32.mrb[3].mxu0  ;;  %v4738_v41 = vmax.f32 %v4670_v58, 0.0 }
 0x3ce   :  { %v4739_v20 = vmax.f32 %v4673_v12, 0.0 }
 0x3d0   :  { %v5387_v23 = vpack.c.bf16 %v4739_v20, %v4738_v41 }
 0x3d1   :  { %v4677_v31 = vpop.f32.mrb[4].mxu0 }
 0x3d2   :  { %5426 = vst [vmem:[%s8996_s5 + $0x18] sm:$0xff] %v5387_v23   ;;  %v4678_v61 = vadd.f32 %v8934_v47, %v4677_v31  ;;  %v6465_v55 = vpop.f32.mrb[5].mxu0 }
 0x3d3   :  { %v4680_v34 = vpop.f32.mrb[6].mxu0 }
 0x3d4   :  { %v4681_v10 = vadd.f32 %v8934_v47, %v4680_v34  ;;  %v6466_v2 = vpop.f32.mrb[7].mxu0  ;;  %v4740_v26 = vmax.f32 %v4678_v61, 0.0 }
 0x3d6   :  { %v4741_v29 = vmax.f32 %v4681_v10, 0.0 }
 0x3d8   :  { %v5392_v40 = vpack.c.bf16 %v4741_v29, %v4740_v26 }
 0x3d9   :  { %v4685_v6 = vpop.f32.mrb[8].mxu0 }
 0x3da   :  { %5427 = vst [vmem:[%s8996_s5 + $0x20] sm:$0xff] %v5392_v40   ;;  %v4686_v53 = vadd.f32 %v8934_v47, %v4685_v6  ;;  %v6469_v56 = vpop.f32.mrb[9].mxu0 }
 0x3db   :  { %v4688_v63 = vpop.f32.mrb[10].mxu0 }
 0x3dc   :  { %v4689_v0 = vadd.f32 %v8934_v47, %v4688_v63  ;;  %v6470_v8 = vpop.f32.mrb[11].mxu0  ;;  %v4742_v59 = vmax.f32 %v4686_v53, 0.0 }
 0x3de   :  { %v4743_v9 = vmax.f32 %v4689_v0, 0.0 }
 0x3e0   :  { %v5397_v60 = vpack.c.bf16 %v4743_v9, %v4742_v59 }
 0x3e1   :  { %v4693_v48 = vpop.f32.mrb[12].mxu0 }
 0x3e2   :  { %5428 = vst [vmem:[%s8996_s5 + $0x28] sm:$0xff] %v5397_v60   ;;  %v4694_v5 = vadd.f32 %v8934_v47, %v4693_v48  ;;  %v6473_v45 = vpop.f32.mrb[13].mxu0 }
 0x3e3   :  { %v4696_v11 = vpop.f32.mrb[14].mxu0 }
 0x3e4   :  { %v4697_v33 = vadd.f32 %v8934_v47, %v4696_v11  ;;  %v6474_v16 = vpop.f32.mrb[15].mxu0  ;;  %v4744_v44 = vmax.f32 %v4694_v5, 0.0 }
 0x3e6   :  { %v4745_v24 = vmax.f32 %v4697_v33, 0.0 }
 0x3e8   :  { %v5402_v14 = vpack.c.bf16 %v4745_v24, %v4744_v44 }
 0x3e9   :  { %v4701_v62 = vpop.f32.mrb[16].mxu0 }
 0x3ea   :  { %5429 = vst [vmem:[%s8996_s5 + $0x30] sm:$0xff] %v5402_v14   ;;  %v4702_v21 = vadd.f32 %v8934_v47, %v4701_v62  ;;  %v6477_v25 = vpop.f32.mrb[17].mxu0 }
 0x3eb   :  { %v4704_v42 = vpop.f32.mrb[18].mxu0 }
 0x3ec   :  { %v4705_v28 = vadd.f32 %v8934_v47, %v4704_v42  ;;  %v6478_v36 = vpop.f32.mrb[19].mxu0  ;;  %v4746_v30 = vmax.f32 %v4702_v21, 0.0 }
 0x3ee   :  { %v4747_v32 = vmax.f32 %v4705_v28, 0.0 }
 0x3f0   :  { %v5407_v7 = vpack.c.bf16 %v4747_v32, %v4746_v30 }
 0x3f1   :  { %v4709_v13 = vpop.f32.mrb[20].mxu0 }
 0x3f2   :  { %5430 = vst [vmem:[%s8996_s5 + $0x38] sm:$0xff] %v5407_v7   ;;  %v4710_v35 = vadd.f32 %v8934_v47, %v4709_v13  ;;  %v6481_v19 = vpop.f32.mrb[21].mxu0 }
 0x3f3   :  { %v4712_v37 = vpop.f32.mrb[22].mxu0 }
 0x3f4   :  { %v4713_v38 = vadd.f32 %v8934_v47, %v4712_v37  ;;  %v6482_v17 = vpop.f32.mrb[23].mxu0  ;;  %v4748_v1 = vmax.f32 %v4710_v35, 0.0 }
 0x3f6   :  { %v4749_v22 = vmax.f32 %v4713_v38, 0.0 }
 0x3f8   :  { %v5412_v43 = vpack.c.bf16 %v4749_v22, %v4748_v1 }
 0x3f9   :  { %v4717_v39 = vpop.f32.mrb[24].mxu0 }
 0x3fa   :  { %5431 = vst [vmem:[%s8996_s5 + $0x40] sm:$0xff] %v5412_v43   ;;  %v4718_v50 = vadd.f32 %v8934_v47, %v4717_v39  ;;  %v6485_v4 = vpop.f32.mrb[25].mxu0 }
 0x3fb   :  { %v4720_v46 = vpop.f32.mrb[26].mxu0 }
 0x3fc   :  { %v4721_v49 = vadd.f32 %v8934_v47, %v4720_v46  ;;  %v6486_v15 = vpop.f32.mrb[27].mxu0  ;;  %v4750_v54 = vmax.f32 %v4718_v50, 0.0 }
 0x3fe   :  { %v4751_v27 = vmax.f32 %v4721_v49, 0.0 }
 0x400   :  { %v5417_v51 = vpack.c.bf16 %v4751_v27, %v4750_v54 }
 0x401   :  { %v4725_v3 = vpop.f32.mrb[28].mxu0 }
 0x402   :  { %5432 = vst [vmem:[%s8996_s5 + $0x48] sm:$0xff] %v5417_v51   ;;  %v4726_v58 = vadd.f32 %v8934_v47, %v4725_v3  ;;  %v6489_v57 = vpop.f32.mrb[29].mxu0 }
 0x403   :  { %v4728_v18 = vpop.f32.mrb[30].mxu0 }
 0x404   :  { %v4729_v12 = vadd.f32 %v8934_v47, %v4728_v18  ;;  %v6490_v52 = vpop.f32.mrb[31].mxu0  ;;  %v4752_v41 = vmax.f32 %v4726_v58, 0.0 }
 0x406   :  { %v4753_v20 = vmax.f32 %v4729_v12, 0.0 }
 0x408   :  { %v5422_v23 = vpack.c.bf16 %v4753_v20, %v4752_v41 }
 0x40a   :  { %5433 = vst [vmem:[%s8996_s5 + $0x50] sm:$0xff] %v5422_v23  }

</bundles_post_ra>
